<compile_context>
chip_gen: v5e
topology: v5e:2x2
jax: 0.10.0
libtpu: 0.0.40
codegen_flags: <defaults>
</compile_context>

<pallas_src>
import numpy as np
import jax
import jax.numpy as jnp
from jax.experimental import pallas as pl
from jax.experimental.pallas import tpu as pltpu  # noqa: F401  (kept for TPU-specific tuning hooks)

B = 2
C = 3
IMG_SIZE = 16     # stands in for 128
CROP = 32         # stands in for 224
ARC_IN = 16       # stands in for 112
LATENT = 128      # stands in for 512

P_IMG = IMG_SIZE * IMG_SIZE    # 256  (lane-dense: 2 * 128)
P_CROP = CROP * CROP           # 1024 (lane-dense: 8 * 128)
SKIP = 0.1                     # source-skip strength of the synthetic generator

ARC_MEAN = np.array([0.485, 0.456, 0.406], np.float32)
ARC_STD = np.array([0.229, 0.224, 0.225], np.float32)


# ---------------------------------------------------------------------------
# host-side resize matrices (separable -> folded into per-plane kron matmuls)
# ---------------------------------------------------------------------------
def _bilinear_matrix(out_size, in_size):
    # TODO(synk): torchvision Resize uses antialiased bilinear when downscaling;
    # plain (non-antialiased, align_corners=False) bilinear weights are used here.
    m = np.zeros((out_size, in_size), np.float32)
    scale = in_size / out_size
    for o in range(out_size):
        src = max((o + 0.5) * scale - 0.5, 0.0)
        i0 = min(int(np.floor(src)), in_size - 1)
        i1 = min(i0 + 1, in_size - 1)
        frac = src - i0
        m[o, i0] += 1.0 - frac
        m[o, i1] += frac
    return m


def _nearest_matrix(out_size, in_size):
    # matches F.interpolate(mode='nearest') index rule: floor(o * in/out)
    m = np.zeros((out_size, in_size), np.float32)
    scale = in_size / out_size
    for o in range(out_size):
        m[o, min(int(np.floor(o * scale)), in_size - 1)] = 1.0
    return m


def _kron_resize(r):
    # out_plane = r @ X @ r.T   <=>   vec_row(out) = vec_row(X) @ kron(r, r).T
    return np.kron(r, r).T.astype(np.float32)   # (Hin*Win, Hout*Wout)


# ---------------------------------------------------------------------------
# the single fused Pallas kernel (identity path + generator + both resizes)
# ---------------------------------------------------------------------------
def _simswap_kernel(tgt_ref, im_ref, imf_ref, kup_ref, kback_ref,
                    warc_ref, barc_ref, rep_ref, wg_ref, wb_ref,
                    mix_ref, rollsc_ref, bshift_ref, out_ref):
    f32 = jnp.float32

    # --- identity path (netArc): up-resize + arcface affine + nearest down +
    #     linear all pre-folded into warc/barc; consumes the raw 16x16 source.
    lat = jnp.dot(imf_ref[...], warc_ref[...], preferred_element_type=f32)    # (n, D)
    lat = lat + barc_ref[...]
    lat = lat * jax.lax.rsqrt(jnp.sum(lat * lat, axis=-1, keepdims=True) + 1e-12)

    # roll (source at i+1 -> target at i) + replicate per channel row: (m*c, D)
    lat_rows = jnp.dot(rep_ref[...], lat, preferred_element_type=f32)
    gamma = jnp.sum(lat_rows * wg_ref[...], axis=-1, keepdims=True)           # (m*c, 1)
    beta = jnp.sum(lat_rows * wb_ref[...], axis=-1, keepdims=True) + bshift_ref[...]

    # --- generator: 1x1 channel mix hoisted to 16x16, fused with the up-resize
    feat = jnp.dot(jnp.dot(mix_ref[...], tgt_ref[...], preferred_element_type=f32),
                   kup_ref[...], preferred_element_type=f32)                   # (m*c, 1024)
    # rolled + (0.1 * arcface-scale) source skip, also hoisted to 16x16
    skip = jnp.dot(jnp.dot(rollsc_ref[...], im_ref[...], preferred_element_type=f32),
                   kup_ref[...], preferred_element_type=f32)                   # (m*c, 1024)

    face = jnp.tanh(gamma * feat + skip + beta)                                # (m*c, 1024)

    # --- fused bilinear resize back to 16x16 (lane-dense output) ---------------
    out_ref[...] = jnp.dot(face, kback_ref[...], preferred_element_type=f32)   # (m*c, 256)


# ---------------------------------------------------------------------------
# SimSwapModel.forward
# ---------------------------------------------------------------------------
def simswap_forward(img_wm, img, params, mode="test"):
    n, c, h, w = img.shape
    im_p = img.reshape(n * c, h * w)          # flattened planes (free reshape)
    im_f = img.reshape(n, c * h * w)          # per-batch flatten for netArc

    if mode == "train":
        # non-default path: both the watermarked and plain swaps are produced.
        tgt = jnp.concatenate([img_wm, img], axis=0).reshape(2 * n * c, h * w)
        rows = params["rows_train"]
        m = 2 * n
    else:
        # test mode (default, hot path): only the watermarked swap.
        tgt = img_wm.reshape(n * c, h * w)
        rows = params["rows_test"]
        m = n

    out = pl.pallas_call(
        _simswap_kernel,
        out_shape=jax.ShapeDtypeStruct((m * c, h * w), jnp.float32),
    )(tgt, im_p, im_f,
      params["k_up"], params["k_back"], params["w_arc_eff"], params["b_arc"],
      rows["rep"], rows["wg_sel"], rows["wb_sel"],
      rows["mix"], rows["rollsc"], rows["bshift"])

    out = out.reshape(m, c, h, w)
    if mode != "train":
        return out                      # swapped_face_wm
    return out[:n], out[n:]             # (swapped_face_wm, swapped_face)


# ---------------------------------------------------------------------------
# parameters (synthetic stand-ins for netArc / netG) + host-side folding
# ---------------------------------------------------------------------------
def _row_constants(m_batches, n, c, w_conv, w_gamma, w_beta):
    """Per-row (row = out_batch*c + channel) constants for the fused kernel."""
    scale = (1.0 / ARC_STD).astype(np.float32)
    shift = (-ARC_MEAN / ARC_STD).astype(np.float32)
    rows = m_batches * c
    rep = np.zeros((rows, n), np.float32)          # rolled latent replication
    rollsc = np.zeros((rows, n * c), np.float32)   # rolled + scaled source select
    bshift = np.zeros((rows, 1), np.float32)       # 0.1 * arcface shift per row
    for g in range(m_batches):
        src = (g % n - 1) % n                      # torch.roll(img, 1, 0) pairing
        for ch in range(c):
            r = g * c + ch
            rep[r, src] = 1.0
            rollsc[r, src * c + ch] = SKIP * scale[ch]
            bshift[r, 0] = SKIP * shift[ch]
    return {
        "rep": jnp.asarray(rep),
        "rollsc": jnp.asarray(rollsc),
        "bshift": jnp.asarray(bshift),
        "mix": jnp.kron(jnp.eye(m_batches, dtype=jnp.float32), w_conv.T),
        "wg_sel": jnp.tile(w_gamma.T, (m_batches, 1)),
        "wb_sel": jnp.tile(w_beta.T, (m_batches, 1)),
    }


def init_params(key):
    k1, k2, k3, k4 = jax.random.split(key, 4)
    feat_dim = C * ARC_IN * ARC_IN                                   # 768
    w_arc = 0.02 * jax.random.normal(k1, (feat_dim, LATENT), jnp.float32)
    w_conv = (jnp.eye(C, dtype=jnp.float32)
              + 0.05 * jax.random.normal(k2, (C, C), jnp.float32))
    w_gamma = 0.05 * jax.random.normal(k3, (LATENT, C), jnp.float32)
    w_beta = 0.05 * jax.random.normal(k4, (LATENT, C), jnp.float32)

    # separable resizes as single per-plane kron matmuls
    k_up = _kron_resize(_bilinear_matrix(CROP, IMG_SIZE))            # (256, 1024)
    k_back = _kron_resize(_bilinear_matrix(IMG_SIZE, CROP))          # (1024, 256)
    k_down = _kron_resize(_nearest_matrix(ARC_IN, CROP))             # (1024, 256)

    # Fold [bilinear up 16->32] o [arcface affine] o [nearest down 32->16] o
    # [netArc linear] into ONE (C*256, LATENT) matrix + (1, LATENT) bias.
    scale = (1.0 / ARC_STD).astype(np.float32)
    shift = (-ARC_MEAN / ARC_STD).astype(np.float32)
    k_ud = jnp.asarray(k_up @ k_down)                                # (256, 256)
    w_arc_c = w_arc.reshape(C, ARC_IN * ARC_IN, LATENT)              # (C, 256, D)
    w_arc_eff = jnp.einsum("pq,cqd->cpd", k_ud,
                           jnp.asarray(scale)[:, None, None] * w_arc_c)
    w_arc_eff = w_arc_eff.reshape(C * ARC_IN * ARC_IN, LATENT)       # (768, D)
    colsum = jnp.asarray(k_down.sum(axis=0))                         # ones @ k_down
    b_arc = jnp.einsum("c,q,cqd->d", jnp.asarray(shift), colsum, w_arc_c)[None, :]

    return {
        "k_up": jnp.asarray(k_up),
        "k_back": jnp.asarray(k_back),
        "w_arc_eff": w_arc_eff,
        "b_arc": b_arc,
        "rows_test": _row_constants(B, B, C, w_conv, w_gamma, w_beta),
        "rows_train": _row_constants(2 * B, B, C, w_conv, w_gamma, w_beta),
    }


if __name__ == "__main__":
    key = jax.random.PRNGKey(0)
    k_wm, k_img, k_params = jax.random.split(key, 3)
    img_wm = jax.random.uniform(k_wm, (B, C, IMG_SIZE, IMG_SIZE), jnp.float32)
    img = jax.random.uniform(k_img, (B, C, IMG_SIZE, IMG_SIZE), jnp.float32)
    params = init_params(k_params)

    fwd = jax.jit(lambda a, b: simswap_forward(a, b, params, mode="test"))
    out = jax.block_until_ready(fwd(img_wm, img))

    assert out.shape == (B, C, IMG_SIZE, IMG_SIZE), out.shape
    assert bool(jnp.all(jnp.isfinite(out)))
    print("KERNEL_OK")
</pallas_src>

<mosaic_0001>
module attributes {stable_mosaic.version = 11 : i64} {
  func.func @_simswap_kernel(%arg0: memref<6x256xf32, #tpu.memory_space<vmem>>, %arg1: memref<6x256xf32, #tpu.memory_space<vmem>>, %arg2: memref<2x768xf32, #tpu.memory_space<vmem>>, %arg3: memref<256x1024xf32, #tpu.memory_space<vmem>>, %arg4: memref<1024x256xf32, #tpu.memory_space<vmem>>, %arg5: memref<768x128xf32, #tpu.memory_space<vmem>>, %arg6: memref<1x128xf32, #tpu.memory_space<vmem>>, %arg7: memref<6x2xf32, #tpu.memory_space<vmem>>, %arg8: memref<6x128xf32, #tpu.memory_space<vmem>>, %arg9: memref<6x128xf32, #tpu.memory_space<vmem>>, %arg10: memref<6x6xf32, #tpu.memory_space<vmem>>, %arg11: memref<6x6xf32, #tpu.memory_space<vmem>>, %arg12: memref<6x1xf32, #tpu.memory_space<vmem>>, %arg13: memref<6x256xf32, #tpu.memory_space<vmem>>) attributes {dimension_semantics = [], scalar_prefetch = 0 : i64, scratch_operands = 0 : i64, tpu.core_type = #tpu.core_type<tc>} {
    %c0 = arith.constant 0 : index
    %c0_0 = arith.constant 0 : index
    %0 = vector.load %arg2[%c0, %c0_0] : memref<2x768xf32, #tpu.memory_space<vmem>>, vector<2x768xf32>
    %c0_1 = arith.constant 0 : index
    %c0_2 = arith.constant 0 : index
    %1 = vector.load %arg5[%c0_1, %c0_2] : memref<768x128xf32, #tpu.memory_space<vmem>>, vector<768x128xf32>
    %cst = arith.constant dense<0.000000e+00> : vector<2x128xf32>
    %2 = tpu.matmul %0, %1, %cst {dimension_numbers = #tpu.dot_dimension_numbers<[1], [0], [0], [1], [0, 0, 1, 1], [], []>} : vector<2x768xf32>, vector<768x128xf32>, vector<2x128xf32> -> vector<2x128xf32>
    %c0_3 = arith.constant 0 : index
    %c0_4 = arith.constant 0 : index
    %3 = vector.load %arg6[%c0_3, %c0_4] : memref<1x128xf32, #tpu.memory_space<vmem>>, vector<1x128xf32>
    %4 = vector.broadcast %3 : vector<1x128xf32> to vector<2x128xf32>
    %5 = arith.addf %2, %4 : vector<2x128xf32>
    %6 = arith.mulf %5, %5 : vector<2x128xf32>
    %cst_5 = arith.constant dense<0.000000e+00> : vector<2xf32>
    %7 = vector.multi_reduction <add>, %6, %cst_5 [1] : vector<2x128xf32> to vector<2xf32>
    %8 = vector.shape_cast %7 : vector<2xf32> to vector<2x1xf32>
    %cst_6 = arith.constant 9.99999996E-13 : f32
    %9 = vector.broadcast %cst_6 : f32 to vector<2x1xf32>
    %10 = arith.addf %8, %9 : vector<2x1xf32>
    %11 = math.rsqrt %10 : vector<2x1xf32>
    %12 = vector.broadcast %11 : vector<2x1xf32> to vector<2x128xf32>
    %13 = arith.mulf %5, %12 : vector<2x128xf32>
    %c0_7 = arith.constant 0 : index
    %c0_8 = arith.constant 0 : index
    %14 = vector.load %arg7[%c0_7, %c0_8] : memref<6x2xf32, #tpu.memory_space<vmem>>, vector<6x2xf32>
    %cst_9 = arith.constant dense<0.000000e+00> : vector<6x128xf32>
    %15 = tpu.matmul %14, %13, %cst_9 {dimension_numbers = #tpu.dot_dimension_numbers<[1], [0], [0], [1], [0, 0, 1, 1], [], []>} : vector<6x2xf32>, vector<2x128xf32>, vector<6x128xf32> -> vector<6x128xf32>
    %c0_10 = arith.constant 0 : index
    %c0_11 = arith.constant 0 : index
    %16 = vector.load %arg8[%c0_10, %c0_11] : memref<6x128xf32, #tpu.memory_space<vmem>>, vector<6x128xf32>
    %17 = arith.mulf %15, %16 : vector<6x128xf32>
    %cst_12 = arith.constant dense<0.000000e+00> : vector<6xf32>
    %18 = vector.multi_reduction <add>, %17, %cst_12 [1] : vector<6x128xf32> to vector<6xf32>
    %19 = vector.shape_cast %18 : vector<6xf32> to vector<6x1xf32>
    %c0_13 = arith.constant 0 : index
    %c0_14 = arith.constant 0 : index
    %20 = vector.load %arg9[%c0_13, %c0_14] : memref<6x128xf32, #tpu.memory_space<vmem>>, vector<6x128xf32>
    %21 = arith.mulf %15, %20 : vector<6x128xf32>
    %cst_15 = arith.constant dense<0.000000e+00> : vector<6xf32>
    %22 = vector.multi_reduction <add>, %21, %cst_15 [1] : vector<6x128xf32> to vector<6xf32>
    %23 = vector.shape_cast %22 : vector<6xf32> to vector<6x1xf32>
    %c0_16 = arith.constant 0 : index
    %c0_17 = arith.constant 0 : index
    %24 = vector.load %arg12[%c0_16, %c0_17] : memref<6x1xf32, #tpu.memory_space<vmem>>, vector<6x1xf32>
    %25 = arith.addf %23, %24 : vector<6x1xf32>
    %c0_18 = arith.constant 0 : index
    %c0_19 = arith.constant 0 : index
    %26 = vector.load %arg10[%c0_18, %c0_19] : memref<6x6xf32, #tpu.memory_space<vmem>>, vector<6x6xf32>
    %c0_20 = arith.constant 0 : index
    %c0_21 = arith.constant 0 : index
    %27 = vector.load %arg0[%c0_20, %c0_21] : memref<6x256xf32, #tpu.memory_space<vmem>>, vector<6x256xf32>
    %cst_22 = arith.constant dense<0.000000e+00> : vector<6x256xf32>
    %28 = tpu.matmul %26, %27, %cst_22 {dimension_numbers = #tpu.dot_dimension_numbers<[1], [0], [0], [1], [0, 0, 1, 1], [], []>} : vector<6x6xf32>, vector<6x256xf32>, vector<6x256xf32> -> vector<6x256xf32>
    %c0_23 = arith.constant 0 : index
    %c0_24 = arith.constant 0 : index
    %29 = vector.load %arg3[%c0_23, %c0_24] : memref<256x1024xf32, #tpu.memory_space<vmem>>, vector<256x1024xf32>
    %cst_25 = arith.constant dense<0.000000e+00> : vector<6x1024xf32>
    %30 = tpu.matmul %28, %29, %cst_25 {dimension_numbers = #tpu.dot_dimension_numbers<[1], [0], [0], [1], [0, 0, 1, 1], [], []>} : vector<6x256xf32>, vector<256x1024xf32>, vector<6x1024xf32> -> vector<6x1024xf32>
    %c0_26 = arith.constant 0 : index
    %c0_27 = arith.constant 0 : index
    %31 = vector.load %arg11[%c0_26, %c0_27] : memref<6x6xf32, #tpu.memory_space<vmem>>, vector<6x6xf32>
    %c0_28 = arith.constant 0 : index
    %c0_29 = arith.constant 0 : index
    %32 = vector.load %arg1[%c0_28, %c0_29] : memref<6x256xf32, #tpu.memory_space<vmem>>, vector<6x256xf32>
    %cst_30 = arith.constant dense<0.000000e+00> : vector<6x256xf32>
    %33 = tpu.matmul %31, %32, %cst_30 {dimension_numbers = #tpu.dot_dimension_numbers<[1], [0], [0], [1], [0, 0, 1, 1], [], []>} : vector<6x6xf32>, vector<6x256xf32>, vector<6x256xf32> -> vector<6x256xf32>
    %c0_31 = arith.constant 0 : index
    %c0_32 = arith.constant 0 : index
    %34 = vector.load %arg3[%c0_31, %c0_32] : memref<256x1024xf32, #tpu.memory_space<vmem>>, vector<256x1024xf32>
    %cst_33 = arith.constant dense<0.000000e+00> : vector<6x1024xf32>
    %35 = tpu.matmul %33, %34, %cst_33 {dimension_numbers = #tpu.dot_dimension_numbers<[1], [0], [0], [1], [0, 0, 1, 1], [], []>} : vector<6x256xf32>, vector<256x1024xf32>, vector<6x1024xf32> -> vector<6x1024xf32>
    %36 = vector.broadcast %19 : vector<6x1xf32> to vector<6x1024xf32>
    %37 = arith.mulf %36, %30 : vector<6x1024xf32>
    %38 = arith.addf %37, %35 : vector<6x1024xf32>
    %39 = vector.broadcast %25 : vector<6x1xf32> to vector<6x1024xf32>
    %40 = arith.addf %38, %39 : vector<6x1024xf32>
    %41 = math.tanh %40 : vector<6x1024xf32>
    %c0_34 = arith.constant 0 : index
    %c0_35 = arith.constant 0 : index
    %42 = vector.load %arg4[%c0_34, %c0_35] : memref<1024x256xf32, #tpu.memory_space<vmem>>, vector<1024x256xf32>
    %cst_36 = arith.constant dense<0.000000e+00> : vector<6x256xf32>
    %43 = tpu.matmul %41, %42, %cst_36 {dimension_numbers = #tpu.dot_dimension_numbers<[1], [0], [0], [1], [0, 0, 1, 1], [], []>} : vector<6x1024xf32>, vector<1024x256xf32>, vector<6x256xf32> -> vector<6x256xf32>
    %c0_37 = arith.constant 0 : index
    %c0_38 = arith.constant 0 : index
    %44 = vector.load %arg13[%c0_37, %c0_38] : memref<6x256xf32, #tpu.memory_space<vmem>>, vector<6x256xf32>
    tpu.vector_store %arg13[%c0_37, %c0_38], %43 {strides = array<i32>} : memref<6x256xf32, #tpu.memory_space<vmem>>, vector<6x256xf32>,
    return
  }
}

</mosaic_0001>

<bundles_post_ra>
// kernel: _lambda_.1
= control target key start
LH: loop header
LB: loop body
LE: loop exit
PB: predicated region body
PF: predicated region fallthrough
CT: control target
= control target key end

     0   :  { %18 = vsyncpa [#allocation3], 0  ;;  %s3412_s0 = inlined_call_operand.vmem [shape: f32[6,256], index: 0, kind: input, shape index: {}]   ;;  %s3413_s1 = inlined_call_operand.vmem [shape: f32[6,256], index: 1, kind: input, shape index: {}]   ;;  %s3414_s2 = inlined_call_operand.vmem [shape: f32[2,768], index: 2, kind: input, shape index: {}]   ;;  %s3415_s3 = inlined_call_operand.hbm [shape: f32[256,1024], index: 3, kind: input, shape index: {}]   ;;  %s3416_s4 = inlined_call_operand.hbm [shape: f32[1024,256], index: 4, kind: input, shape index: {}]   ;;  %s3417_s5 = inlined_call_operand.hbm [shape: f32[768,128], index: 5, kind: input, shape index: {}]   ;;  %s3418_s6 = inlined_call_operand.vmem [shape: f32[1,128], index: 6, kind: input, shape index: {}]   ;;  %s3419_s7 = inlined_call_operand.vmem [shape: f32[6,2], index: 7, kind: input, shape index: {}]   ;;  %s3420_s8 = inlined_call_operand.vmem [shape: f32[6,128], index: 8, kind: input, shape index: {}]   ;;  %s3421_s9 = inlined_call_operand.vmem [shape: f32[6,128], index: 9, kind: input, shape index: {}]   ;;  %s3422_s10 = inlined_call_operand.vmem [shape: f32[6,6], index: 10, kind: input, shape index: {}]   ;;  %s3423_s11 = inlined_call_operand.vmem [shape: f32[6,6], index: 11, kind: input, shape index: {}]   ;;  %s3424_s12 = inlined_call_operand.vmem [shape: f32[6,1], index: 12, kind: input, shape index: {}]   ;;  %s3425_s13 = inlined_call_operand.vmem [shape: f32[6,256], index: 13, kind: output, shape index: {}]  }
   0x1   :  { %19 = vsyncpa [#allocation5], 0  ;;  %s43_s27 = sshll.u32 %s3416_s4, 4  ;;  %s2137_s28 = smov [#allocation4]   ;;  %s44_s27 = int_to_ptr.hbm [resolvable:$true] %s43_s27 }
   0x2   :  { %s45_s29 = sshll.u32 %s2137_s28, 4  ;;  %s30_s15 = sshll.u32 %s3415_s3, 4  ;;  %s46_s29 = int_to_ptr.vmem [resolvable:$true] %s45_s29  ;;  %s31_s15 = int_to_ptr.hbm [resolvable:$true] %s30_s15 }
   0x3   :  { %s2138_s16 = smov 256   ;;  %s2139_s17 = smov 16  }
   0x4   :  { %51 = dma.hbm_to_vmem [thread:$0]  %s44_s27, 32768, %s46_s29, [#allocation5], %s2138_s16, %s2138_s16, %s2139_s17  }
   0x5   :  { %s2140_s18 = smov [#allocation2]   ;;  %s2141_s20 = smov 1024  }
   0x6   :  { %s32_s19 = sshll.u32 %s2140_s18, 4  ;;  %s2142_s21 = smov 64   ;;  %s33_s19 = int_to_ptr.vmem [resolvable:$true] %s32_s19 }
   0x7   :  { %38 = dma.hbm_to_vmem [thread:$0]  %s31_s15, 32768, %s33_s19, [#allocation3], %s2141_s20, %s2141_s20, %s2142_s21  }
   0x8   :  { %s56_s23 = sshll.u32 %s3417_s5, 4  ;;  %s2143_s24 = smov [#allocation6]   ;;  %s57_s23 = int_to_ptr.hbm [resolvable:$true] %s56_s23 }
   0x9   :  { %s58_s25 = sshll.u32 %s2143_s24, 4  ;;  %s2144_s26 = smov 128   ;;  %s59_s25 = int_to_ptr.vmem [resolvable:$true] %s58_s25 }
   0xa   :  { %s2145_s3 = smov 8  }
   0xb   :  { %64 = dma.hbm_to_vmem [thread:$0]  %s57_s23, 12288, %s59_s25, [#allocation5], %s2144_s26, %s2144_s26, %s2145_s3  }
   0xc   :  { %2133 = dma.done.wait [#allocation3], 32768  }
   0xd   :  { %2134 = vsyncadd [#allocation3], 4294934528 }
   0xe   :  { %2135 = dma.done.wait [#allocation5], 45056  }
   0xf   :  { %2136 = vsyncadd [#allocation5], 4294922240  ;;  %v108_v0 = vld [vmem:[#allocation6 + $0x78] sm:$0xff]  ;;  %v107_v1 = vld [vmem:[#allocation6 + $0x70] sm:$0xff]  ;;  %vm377_vm0 = vcmask 1045504   ;;  %vm391_vm1 = vcmask 48128  }
  0x10   :  { %v124_v2 = vld [vmem:[#allocation6 + $0xf8] sm:$0xff]  ;;  %210 = vmatpush.msra.mxu0 %v108_v0  ;;  %v123_v3 = vld [vmem:[#allocation6 + $0xf0] sm:$0xff]  ;;  %v106_v4 = vld [vmem:[#allocation6 + $0x68] sm:$0xff]  ;;  %vm331_vm2 = vcmask 1041408   ;;  %vm348_vm6 = vcmask 15360  }
  0x11   :  { %230 = vmatpush.msra.mxu1 %v124_v2  ;;  %v122_v5 = vld [vmem:[#allocation6 + $0xe8] sm:$0xff]  ;;  %v105_v6 = vld [vmem:[#allocation6 + $0x60] sm:$0xff]  ;;  %v104_v8 = vld [vmem:[#allocation6 + $0x58] sm:$0xff] }
  0x12   :  { %211 = vmatpush.msra.mxu0 %v107_v1  ;;  %v121_v7 = vld [vmem:[#allocation6 + $0xe0] sm:$0xff]  ;;  %v120_v9 = vld [vmem:[#allocation6 + $0xd8] sm:$0xff]  ;;  %v103_v10 = vld [vmem:[#allocation6 + $0x50] sm:$0xff] }
  0x13   :  { %231 = vmatpush.msra.mxu1 %v123_v3  ;;  %v140_v11 = vld [vmem:[#allocation6 + $0x178] sm:$0xff]  ;;  %v119_v12 = vld [vmem:[#allocation6 + $0xd0] sm:$0xff]  ;;  %v138_v15 = vld [vmem:[#allocation6 + $0x168] sm:$0xff] }
  0x14   :  { %212 = vmatpush.msra.mxu0 %v106_v4  ;;  %250 = vmatpush.msra.mxu2 %v140_v11  ;;  %v139_v13 = vld [vmem:[#allocation6 + $0x170] sm:$0xff]  ;;  %v156_v14 = vld [vmem:[#allocation6 + $0x1f8] sm:$0xff]  ;;  %v102_v17 = vld [vmem:[#allocation6 + $0x48] sm:$0xff] }
  0x15   :  { %232 = vmatpush.msra.mxu1 %v122_v5  ;;  %v155_v16 = vld [vmem:[#allocation6 + $0x1f0] sm:$0xff]  ;;  %v118_v18 = vld [vmem:[#allocation6 + $0xc8] sm:$0xff]  ;;  %270 = vmatpush.msra.mxu3 %v156_v14  ;;  %v137_v19 = vld [vmem:[#allocation6 + $0x160] sm:$0xff] }
  0x16   :  { %213 = vmatpush.msra.mxu0 %v105_v6  ;;  %251 = vmatpush.msra.mxu2 %v139_v13  ;;  %v154_v20 = vld [vmem:[#allocation6 + $0x1e8] sm:$0xff]  ;;  %v101_v21 = vld [vmem:[#allocation6 + $0x40] sm:$0xff]  ;;  %v136_v23 = vld [vmem:[#allocation6 + $0x158] sm:$0xff] }
  0x17   :  { %233 = vmatpush.msra.mxu1 %v121_v7  ;;  %v117_v22 = vld [vmem:[#allocation6 + $0xc0] sm:$0xff]  ;;  %271 = vmatpush.msra.mxu3 %v155_v16  ;;  %v100_v25 = vld [vmem:[#allocation6 + $0x38] sm:$0xff]  ;;  %v135_v27 = vld [vmem:[#allocation6 + $0x150] sm:$0xff] }
  0x18   :  { %214 = vmatpush.msra.mxu0 %v104_v8  ;;  %252 = vmatpush.msra.mxu2 %v138_v15  ;;  %v153_v24 = vld [vmem:[#allocation6 + $0x1e0] sm:$0xff]  ;;  %v116_v26 = vld [vmem:[#allocation6 + $0xb8] sm:$0xff]  ;;  %v99_v29 = vld [vmem:[#allocation6 + $0x30] sm:$0xff] }
  0x19   :  { %234 = vmatpush.msra.mxu1 %v120_v9  ;;  %272 = vmatpush.msra.mxu3 %v154_v20  ;;  %v152_v28 = vld [vmem:[#allocation6 + $0x1d8] sm:$0xff]  ;;  %v115_v30 = vld [vmem:[#allocation6 + $0xb0] sm:$0xff]  ;;  %v134_v31 = vld [vmem:[#allocation6 + $0x148] sm:$0xff] }
  0x1a   :  { %215 = vmatpush.msra.mxu0 %v103_v10  ;;  %253 = vmatpush.msra.mxu2 %v137_v19  ;;  %v151_v32 = vld [vmem:[#allocation6 + $0x1d0] sm:$0xff]  ;;  %v98_v33 = vld [vmem:[#allocation6 + $0x28] sm:$0xff]  ;;  %v133_v35 = vld [vmem:[#allocation6 + $0x140] sm:$0xff] }
  0x1b   :  { %235 = vmatpush.msra.mxu1 %v119_v12  ;;  %273 = vmatpush.msra.mxu3 %v153_v24  ;;  %v114_v34 = vld [vmem:[#allocation6 + $0xa8] sm:$0xff]  ;;  %v97_v37 = vld [vmem:[#allocation6 + $0x20] sm:$0xff]  ;;  %v132_v39 = vld [vmem:[#allocation6 + $0x138] sm:$0xff] }
  0x1c   :  { %216 = vmatpush.msra.mxu0 %v102_v17  ;;  %254 = vmatpush.msra.mxu2 %v136_v23  ;;  %v150_v36 = vld [vmem:[#allocation6 + $0x1c8] sm:$0xff]  ;;  %v113_v38 = vld [vmem:[#allocation6 + $0xa0] sm:$0xff]  ;;  %v96_v41 = vld [vmem:[#allocation6 + $0x18] sm:$0xff] }
  0x1d   :  { %236 = vmatpush.msra.mxu1 %v118_v18  ;;  %274 = vmatpush.msra.mxu3 %v152_v28  ;;  %v149_v40 = vld [vmem:[#allocation6 + $0x1c0] sm:$0xff]  ;;  %v112_v42 = vld [vmem:[#allocation6 + $0x98] sm:$0xff]  ;;  %v131_v43 = vld [vmem:[#allocation6 + $0x130] sm:$0xff] }
  0x1e   :  { %217 = vmatpush.msra.mxu0 %v101_v21  ;;  %255 = vmatpush.msra.mxu2 %v135_v27  ;;  %v148_v44 = vld [vmem:[#allocation6 + $0x1b8] sm:$0xff]  ;;  %v95_v45 = vld [vmem:[#allocation6 + $0x10] sm:$0xff]  ;;  %v130_v47 = vld [vmem:[#allocation6 + $0x128] sm:$0xff] }
  0x1f   :  { %237 = vmatpush.msra.mxu1 %v117_v22  ;;  %275 = vmatpush.msra.mxu3 %v151_v32  ;;  %v111_v46 = vld [vmem:[#allocation6 + $0x90] sm:$0xff]  ;;  %v94_v49 = vld [vmem:[#allocation6 + $0x8] sm:$0xff]  ;;  %v129_v51 = vld [vmem:[#allocation6 + $0x120] sm:$0xff] }
  0x20   :  { %218 = vmatpush.msra.mxu0 %v100_v25  ;;  %256 = vmatpush.msra.mxu2 %v134_v31  ;;  %v147_v48 = vld [vmem:[#allocation6 + $0x1b0] sm:$0xff]  ;;  %v110_v50 = vld [vmem:[#allocation6 + $0x88] sm:$0xff]  ;;  %v93_v53 = vld [vmem:[#allocation6] sm:$0xff] }
  0x21   :  { %238 = vmatpush.msra.mxu1 %v116_v26  ;;  %276 = vmatpush.msra.mxu3 %v150_v36  ;;  %v146_v52 = vld [vmem:[#allocation6 + $0x1a8] sm:$0xff]  ;;  %v109_v54 = vld [vmem:[#allocation6 + $0x80] sm:$0xff]  ;;  %v91_v55 = vld [vmem:[%s3414_s2] sm:$0xff] }
  0x22   :  { %219 = vmatpush.msra.mxu0 %v99_v29  ;;  %257 = vmatpush.msra.mxu2 %v133_v35  ;;  %v172_v56 = vld [vmem:[#allocation6 + $0x278] sm:$0xff]  ;;  %195 = vst [vmem:[#allocation1] ss:$4 sm:$0xff] %v91_v55  ;;  %v145_v59 = vld [vmem:[#allocation6 + $0x1a0] sm:$0xff]  ;;  %v171_v60 = vld [vmem:[#allocation6 + $0x270] sm:$0xff] }
  0x23   :  { %239 = vmatpush.msra.mxu1 %v115_v30  ;;  %277 = vmatpush.msra.mxu3 %v149_v40  ;;  %v188_v57 = vld [vmem:[#allocation6 + $0x2f8] sm:$0xff]  ;;  %v187_v61 = vld [vmem:[#allocation6 + $0x2f0] sm:$0xff]  ;;  %v92_v0 = vld [vmem:[%s3414_s2 + $0x8] sm:$0xf] }
  0x24   :  { %220 = vmatpush.msra.mxu0 %v98_v33  ;;  %258 = vmatpush.msra.mxu2 %v132_v39  ;;  %v128_v58 = vld [vmem:[#allocation6 + $0x118] sm:$0xff]  ;;  %v127_v62 = vld [vmem:[#allocation6 + $0x110] sm:$0xff]  ;;  %v170_v1 = vld [vmem:[#allocation6 + $0x268] sm:$0xff]  ;;  %197 = vst [vmem:[#allocation1 + $0x20] ss:$4 sm:$0xff] %v92_v0 }
  0x25   :  { %240 = vmatpush.msra.mxu1 %v114_v34  ;;  %278 = vmatpush.msra.mxu3 %v148_v44  ;;  %v144_v63 = vld [vmem:[#allocation6 + $0x198] sm:$0xff]  ;;  %v186_v2 = vld [vmem:[#allocation6 + $0x2e8] sm:$0xff]  ;;  %v143_v4 = vld [vmem:[#allocation6 + $0x190] sm:$0xff] }
  0x26   :  { %221 = vmatpush.msra.mxu0 %v97_v37  ;;  %259 = vmatpush.msra.mxu2 %v131_v43  ;;  %v126_v3 = vld [vmem:[#allocation6 + $0x108] sm:$0xff]  ;;  %v169_v5 = vld [vmem:[#allocation6 + $0x260] sm:$0xff]  ;;  %v168_v9 = vld [vmem:[#allocation6 + $0x258] sm:$0xff] }
  0x27   :  { %241 = vmatpush.msra.mxu1 %v113_v38  ;;  %279 = vmatpush.msra.mxu3 %v147_v48  ;;  %v185_v6 = vld [vmem:[#allocation6 + $0x2e0] sm:$0xff]  ;;  %v142_v8 = vld [vmem:[#allocation6 + $0x188] sm:$0xff]  ;;  %v184_v10 = vld [vmem:[#allocation6 + $0x2d8] sm:$0xff] }
  0x28   :  { %222 = vmatpush.msra.mxu0 %v96_v41  ;;  %260 = vmatpush.msra.mxu2 %v130_v47  ;;  %v125_v7 = vld [vmem:[#allocation6 + $0x100] sm:$0xff]  ;;  %v167_v13 = vld [vmem:[#allocation6 + $0x250] sm:$0xff]  ;;  %v166_v17 = vld [vmem:[#allocation6 + $0x248] sm:$0xff] }
  0x29   :  { %242 = vmatpush.msra.mxu1 %v112_v42  ;;  %280 = vmatpush.msra.mxu3 %v146_v52  ;;  %v200_v11 = vld.sshfl [vmem:[#allocation1 + $0x10] sm:$0xff pattern:$0x73625140]  ;;  %v141_v12 = vld [vmem:[#allocation6 + $0x180] sm:$0xff]  ;;  %v183_v14 = vld [vmem:[#allocation6 + $0x2d0] sm:$0xff] }
  0x2a   :  { %223 = vmatpush.msra.mxu0 %v95_v45  ;;  %261 = vmatpush.msra.mxu2 %v129_v51  ;;  %v198_v15 = vld.sshfl [vmem:[#allocation1] sm:$0xff pattern:$0x73625140]  ;;  %v201_v16 = vld.sshfl [vmem:[#allocation1 + $0x18] sm:$0xff pattern:$0x73625140] }
  0x2b   :  { %243 = vmatpush.msra.mxu1 %v111_v46  ;;  %281 = vmatpush.msra.mxu3 %v145_v59  ;;  %v182_v18 = vld [vmem:[#allocation6 + $0x2c8] sm:$0xff]  ;;  %v199_v19 = vld.sshfl [vmem:[#allocation1 + $0x8] sm:$0xff pattern:$0x73625140]  ;;  %v164_v22 = vld [vmem:[#allocation6 + $0x238] sm:$0xff] }
  0x2c   :  { %224 = vmatpush.msra.mxu0 %v94_v49  ;;  %262 = vmatpush.msra.mxu2 %v128_v58  ;;  %v165_v20 = vld [vmem:[#allocation6 + $0x240] sm:$0xff]  ;;  %v180_v23 = vld [vmem:[#allocation6 + $0x2b8] sm:$0xff]  ;;  %v163_v24 = vld [vmem:[#allocation6 + $0x230] sm:$0xff] }
  0x2d   :  { %244 = vmatpush.msra.mxu1 %v110_v50  ;;  %282 = vmatpush.msra.mxu3 %v144_v63  ;;  %v181_v21 = vld [vmem:[#allocation6 + $0x2c0] sm:$0xff]  ;;  %v179_v25 = vld [vmem:[#allocation6 + $0x2b0] sm:$0xff]  ;;  %v162_v26 = vld [vmem:[#allocation6 + $0x228] sm:$0xff] }
  0x2e   :  { %225 = vmatpush.msra.mxu0 %v93_v53  ;;  %263 = vmatpush.msra.mxu2 %v127_v62  ;;  %v178_v27 = vld [vmem:[#allocation6 + $0x2a8] sm:$0xff]  ;;  %v161_v28 = vld [vmem:[#allocation6 + $0x220] sm:$0xff]  ;;  %v160_v30 = vld [vmem:[#allocation6 + $0x218] sm:$0xff] }
  0x2f   :  { %245 = vmatpush.msra.mxu1 %v109_v54  ;;  %283 = vmatpush.msra.mxu3 %v143_v4  ;;  %v177_v29 = vld [vmem:[#allocation6 + $0x2a0] sm:$0xff]  ;;  %v176_v31 = vld [vmem:[#allocation6 + $0x298] sm:$0xff]  ;;  %v159_v32 = vld [vmem:[#allocation6 + $0x210] sm:$0xff] }
  0x30   :  { %290 = vmatpush.msrb.mxu0 %v172_v56  ;;  %264 = vmatpush.msra.mxu2 %v126_v3  ;;  %v175_v33 = vld [vmem:[#allocation6 + $0x290] sm:$0xff]  ;;  %v158_v34 = vld [vmem:[#allocation6 + $0x208] sm:$0xff]  ;;  %v157_v36 = vld [vmem:[#allocation6 + $0x200] sm:$0xff] }
  0x31   :  { %310 = vmatpush.msrb.mxu1 %v188_v57  ;;  %284 = vmatpush.msra.mxu3 %v142_v8  ;;  %v174_v35 = vld [vmem:[#allocation6 + $0x288] sm:$0xff]  ;;  %v173_v37 = vld [vmem:[#allocation6 + $0x280] sm:$0xff]  ;;  %v202_v38 = vld.sshfl [vmem:[#allocation1 + $0x20] sm:$0xff pattern:$0x73625140] }
  0x32   :  { %291 = vmatpush.msrb.mxu0 %v171_v60  ;;  %265 = vmatpush.msra.mxu2 %v125_v7  ;;  %v203_v39 = vld.sshfl [vmem:[#allocation1 + $0x28] sm:$0xff pattern:$0x73625140]  ;;  %v389_v40 = vld [vmem:[%s3412_s0] sm:$0x3f]  ;;  %v2249_v59 = vld [vmem:[#allocation2 + $0x3c8] sm:$0xff] }
  0x33   :  { %311 = vmatpush.msrb.mxu1 %v187_v61  ;;  %266 = vmatmul.f32.vlgmr.msra.gmra.mxu2 %v200_v11  ;;  %v2238_v41 = vld [vmem:[%s3422_s10] sm:$0x3f]  ;;  %v2247_v58 = vld [vmem:[#allocation2 + $0x3c0] sm:$0xff]  ;;  %v2255_v62 = vld [vmem:[#allocation2 + $0x388] sm:$0xff] }
  0x34   :  { %292 = vmatpush.msrb.mxu0 %v170_v1  ;;  %285 = vmatpush.msra.mxu3 %v141_v12  ;;  %v2032_v42 = vld [vmem:[%s3418_s6] ss:$0 sm:$0xff]  ;;  %v2251_v60 = vld [vmem:[#allocation2 + $0x380] sm:$0xff]  ;;  %v2259_v0 = vld [vmem:[#allocation2 + $0x348] sm:$0xff] }
  0x35   :  { %312 = vmatpush.msrb.mxu1 %v186_v2  ;;  %226 = vmatmul.f32.vlgmr.msra.gmra.mxu0 %v198_v15  ;;  %v2257_v63 = vld [vmem:[#allocation2 + $0x340] sm:$0xff]  ;;  %v2265_v2 = vld [vmem:[#allocation2 + $0x308] sm:$0xff] }
  0x36   :  { %293 = vmatpush.msrb.mxu0 %v169_v5  ;;  %286 = vmatmul.f32.vlgmr.msra.gmra.mxu3 %v201_v16  ;;  %v2263_v1 = vld [vmem:[#allocation2 + $0x300] sm:$0xff]  ;;  %v2271_v4 = vld [vmem:[#allocation2 + $0x2c8] sm:$0xff] }
  0x37   :  { %313 = vmatpush.msrb.mxu1 %v185_v6  ;;  %2012 = vmatpush.msk.msrb.mxu3 %vm377_vm0, %v389_v40  ;;  %v2269_v3 = vld [vmem:[#allocation2 + $0x2c0] sm:$0xff]  ;;  %v2277_v6 = vld [vmem:[#allocation2 + $0x288] sm:$0xff] }
  0x38   :  { %294 = vmatpush.msrb.mxu0 %v168_v9  ;;  %246 = vmatmul.f32.vlgmr.msra.gmra.mxu1 %v199_v19  ;;  %v2275_v5 = vld [vmem:[#allocation2 + $0x280] sm:$0xff]  ;;  %v2295_v16 = vld [vmem:[#allocation2 + $0x1c8] sm:$0xff] }
  0x39   :  { %314 = vmatpush.msrb.mxu1 %v184_v10  ;;  %697 = vmatpush.msra.mxu3 %v2247_v58  ;;  %v2281_v9 = vld [vmem:[#allocation2 + $0x240] sm:$0xff]  ;;  %v2283_v10 = vld [vmem:[#allocation2 + $0x248] sm:$0xff] }
  0x3a   :  { %295 = vmatpush.msrb.mxu0 %v167_v13  ;;  %v2287_v12 = vld [vmem:[#allocation2 + $0x200] sm:$0xff]  ;;  %v2289_v13 = vld [vmem:[#allocation2 + $0x208] sm:$0xff] }
  0x3b   :  { %315 = vmatpush.msrb.mxu1 %v183_v14  ;;  %698 = vmatpush.msra.mxu3 %v2251_v60  ;;  %v2293_v15 = vld [vmem:[#allocation2 + $0x1c0] sm:$0xff]  ;;  %v2301_v19 = vld [vmem:[#allocation2 + $0x188] sm:$0xff] }
  0x3c   :  { %296 = vmatpush.msrb.mxu0 %v166_v17  ;;  %v689_v40 = vld [vmem:[#allocation2 + $0x7c0] sm:$0xff] }
  0x3d   :  { %316 = vmatpush.msrb.mxu1 %v182_v18  ;;  %699 = vmatpush.msra.mxu3 %v2257_v63  ;;  %v2299_v18 = vld [vmem:[#allocation2 + $0x180] sm:$0xff] }
  0x3e   :  { %297 = vmatpush.msrb.mxu0 %v165_v20  ;;  %2013 = vmatmul.msk.f32.vlgmr.msrb.gmra.mxu3 %vm391_vm1, %v2238_v41 }
  0x3f   :  { %317 = vmatpush.msrb.mxu1 %v181_v21  ;;  %700 = vmatpush.msra.mxu3 %v2263_v1  ;;  %v2305_v21 = vld [vmem:[#allocation2 + $0x140] sm:$0xff] }
  0x40   :  { %298 = vmatpush.msrb.mxu0 %v164_v22  ;;  %v2307_v22 = vld [vmem:[#allocation2 + $0x148] sm:$0xff] }
  0x41   :  { %318 = vmatpush.msrb.mxu1 %v180_v23  ;;  %701 = vmatpush.msra.mxu3 %v2269_v3 }
  0x42   :  { %299 = vmatpush.msrb.mxu0 %v163_v24  ;;  %v2311_v24 = vld [vmem:[#allocation2 + $0x100] sm:$0xff] }
  0x43   :  { %319 = vmatpush.msrb.mxu1 %v179_v25  ;;  %702 = vmatpush.msra.mxu3 %v2275_v5 }
  0x44   :  { %300 = vmatpush.msrb.mxu0 %v162_v26  ;;  %v347_v26 = vld [vmem:[%s3419_s7] sm:$0x3f] }
  0x45   :  { %320 = vmatpush.msrb.mxu1 %v178_v27  ;;  %703 = vmatpush.msra.mxu3 %v2281_v9  ;;  %v2318_v27 = vld [vmem:[#allocation2 + $0x108] sm:$0xff] }
  0x46   :  { %301 = vmatpush.msrb.mxu0 %v161_v28  ;;  %v390_v28 = vld [vmem:[%s3412_s0 + $0x8] sm:$0x3f] }
  0x47   :  { %321 = vmatpush.msrb.mxu1 %v177_v29  ;;  %704 = vmatpush.msra.mxu3 %v2287_v12  ;;  %v2323_v29 = vld [vmem:[#allocation2 + $0xc0] sm:$0xff] }
  0x48   :  { %302 = vmatpush.msrb.mxu0 %v160_v30  ;;  %v2327_v30 = vld [vmem:[#allocation2 + $0xc8] sm:$0xff] }
  0x49   :  { %322 = vmatpush.msrb.mxu1 %v176_v31  ;;  %705 = vmatpush.msra.mxu3 %v2293_v15  ;;  %v2330_v31 = vld [vmem:[#allocation2 + $0x80] sm:$0xff] }
  0x4a   :  { %303 = vmatpush.msrb.mxu0 %v159_v32  ;;  %v2334_v32 = vld [vmem:[#allocation2 + $0x88] sm:$0xff] }
  0x4b   :  { %323 = vmatpush.msrb.mxu1 %v175_v33  ;;  %706 = vmatpush.msra.mxu3 %v2299_v18  ;;  %v2337_v33 = vld [vmem:[#allocation2 + $0x40] sm:$0xff] }
  0x4c   :  { %304 = vmatpush.msrb.mxu0 %v158_v34  ;;  %v2340_v34 = vld [vmem:[#allocation2 + $0x48] sm:$0xff] }
  0x4d   :  { %324 = vmatpush.msrb.mxu1 %v174_v35  ;;  %707 = vmatpush.msra.mxu3 %v2305_v21  ;;  %v2343_v35 = vld [vmem:[#allocation2] sm:$0xff] }
  0x4e   :  { %305 = vmatpush.msrb.mxu0 %v157_v36  ;;  %v2346_v36 = vld [vmem:[#allocation2 + $0x8] sm:$0xff] }
  0x4f   :  { %325 = vmatpush.msrb.mxu1 %v173_v37  ;;  %306 = vmatmul.f32.vlgmr.msrb.gmra.mxu0 %v202_v38  ;;  %v2349_v37 = vld [vmem:[#allocation2 + $0x3d0] sm:$0xff]  ;;  %v2351_v38 = vld [vmem:[#allocation2 + $0x3d8] sm:$0xff] }
  0x50   :  { %326 = vmatmul.f32.vlgmr.msrb.gmra.mxu1 %v203_v39  ;;  %737 = vmatpush.msra.mxu0 %v2249_v59 }
  0x51   :  { %708 = vmatpush.msra.mxu3 %v2311_v24 }
  0x52   :  { %738 = vmatpush.msra.mxu0 %v2255_v62 }
  0x53   :  { %709 = vmatpush.msra.mxu3 %v2323_v29 }
  0x54   :  { %739 = vmatpush.msra.mxu0 %v2259_v0 }
  0x55   :  { %710 = vmatpush.msra.mxu3 %v2330_v31 }
  0x56   :  { %740 = vmatpush.msra.mxu0 %v2265_v2 }
  0x57   :  { %711 = vmatpush.msra.mxu3 %v2337_v33 }
  0x58   :  { %741 = vmatpush.msra.mxu0 %v2271_v4 }
  0x59   :  { %712 = vmatpush.msra.mxu3 %v2343_v35 }
  0x5a   :  { %742 = vmatpush.msra.mxu0 %v2277_v6 }
  0x5b   :  { %777 = vmatpush.msrb.mxu3 %v2349_v37 }
  0x5c   :  { %743 = vmatpush.msra.mxu0 %v2283_v10 }
  0x5e   :  { %744 = vmatpush.msra.mxu0 %v2289_v13 }
  0x60   :  { %745 = vmatpush.msra.mxu0 %v2295_v16 }
  0x62   :  { %746 = vmatpush.msra.mxu0 %v2301_v19 }
  0x64   :  { %747 = vmatpush.msra.mxu0 %v2307_v22 }
  0x66   :  { %748 = vmatpush.msra.mxu0 %v2318_v27 }
  0x68   :  { %749 = vmatpush.msra.mxu0 %v2327_v30 }
  0x6a   :  { %750 = vmatpush.msra.mxu0 %v2334_v32 }
  0x6c   :  { %751 = vmatpush.msra.mxu0 %v2340_v34 }
  0x6e   :  { %752 = vmatpush.msra.mxu0 %v2346_v36 }
  0x70   :  { %817 = vmatpush.msrb.mxu0 %v2351_v38 }
  0xb2   :  { %v227_v43 = vpop.f32.mrf.mxu0 }
  0xb3   :  { %v228_v44 = vadd.f32 %v2032_v42, %v227_v43  ;;  %v2359_v42 = vld [vmem:[#allocation2 + $0x390] sm:$0xff]  ;;  %v2361_v43 = vld [vmem:[#allocation2 + $0x398] sm:$0xff] }
  0xb4   :  { %778 = vmatpush.msrb.mxu3 %v2359_v42  ;;  %818 = vmatpush.msrb.mxu0 %v2361_v43 }
  0xb5   :  { %v247_v45 = vpop.f32.mrf.mxu1 }
  0xb6   :  { %v248_v46 = vadd.f32 %v247_v45, %v228_v44  ;;  %v267_v47 = vpop.f32.mrf.mxu2  ;;  %v690_v44 = vld [vmem:[#allocation2 + $0x7c8] sm:$0xff]  ;;  %v2365_v45 = vld [vmem:[#allocation2 + $0x350] sm:$0xff] }
  0xb7   :  { %757 = vmatpush.msra.mxu1 %v690_v44  ;;  %779 = vmatpush.msrb.mxu3 %v2365_v45  ;;  %v2419_v44 = vld [vmem:[#allocation2 + $0x600] sm:$0xff] }
  0xb8   :  { %v268_v48 = vadd.f32 %v267_v47, %v248_v46  ;;  %v2367_v46 = vld [vmem:[#allocation2 + $0x358] sm:$0xff]  ;;  %v682_v47 = vld [vmem:[#allocation2 + $0x788] sm:$0xff]  ;;  %3577 = vst [vmem:[#allocation14_spill] sm:$0xff] %v2419_v44 }
  0xb9   :  { %v287_v49 = vpop.f32.mrf.mxu3  ;;  %819 = vmatpush.msrb.mxu0 %v2367_v46  ;;  %758 = vmatpush.msra.mxu1 %v682_v47  ;;  %v2423_v47 = vld [vmem:[#allocation2 + $0x190] sm:$0xff] }
  0xba   :  { %v288_v50 = vadd.f32 %v287_v49, %v268_v48  ;;  %v2372_v48 = vld [vmem:[#allocation2 + $0x310] sm:$0xff]  ;;  %v2374_v49 = vld [vmem:[#allocation2 + $0x318] sm:$0xff]  ;;  %3579 = vst [vmem:[#allocation16_spill] sm:$0xff] %v2423_v47 }
  0xbb   :  { %780 = vmatpush.msrb.mxu3 %v2372_v48  ;;  %820 = vmatpush.msrb.mxu0 %v2374_v49 }
  0xc1   :  { %v2354_v39 = vpop.f32.mrf.mxu3 }
  0xc2   :  { %713 = vmatmul.f32.vlgmr.msra.gmra.mxu3 %v2354_v39  ;;  %753 = vmatmul.f32.vlgmr.msra.gmra.mxu0 %v2354_v39 }
  0xcc   :  { %v307_v51 = vpop.f32.mrf.mxu0 }
  0xcd   :  { %v327_v52 = vpop.f32.mrf.mxu1  ;;  %v308_v53 = vadd.f32 %v307_v51, %v288_v50  ;;  %v673_v50 = vld [vmem:[#allocation2 + $0x740] sm:$0xff]  ;;  %v674_v51 = vld [vmem:[#allocation2 + $0x748] sm:$0xff] }
  0xce   :  { %759 = vmatpush.msra.mxu1 %v674_v51  ;;  %v2431_v51 = vld [vmem:[#allocation2 + $0x5c0] sm:$0xff] }
  0xcf   :  { %v328_v54 = vadd.f32 %v327_v52, %v308_v53  ;;  %v2379_v52 = vld [vmem:[#allocation2 + $0x2d0] sm:$0xff]  ;;  %v2381_v53 = vld [vmem:[#allocation2 + $0x2d8] sm:$0xff]  ;;  %3580 = vst [vmem:[#allocation17_spill] sm:$0xff] %v2431_v51 }
  0xd0   :  { %781 = vmatpush.msrb.mxu3 %v2379_v52  ;;  %821 = vmatpush.msrb.mxu0 %v2381_v53 }
  0xd1   :  { %v330_v55 = vmul.f32 %v328_v54, %v328_v54 }
  0xd3   :  { %v332_v56 = vsel %vm331_vm2, %v330_v55, 0.0  ;;  %v666_v55 = vld [vmem:[#allocation2 + $0x708] sm:$0xff] }
  0xd4   :  { %333 = vadd.xlane.f32.xlu0 %v332_v56  ;;  %v2385_v56 = vld [vmem:[#allocation2 + $0x290] sm:$0xff]  ;;  %760 = vmatpush.msra.mxu1 %v666_v55 }
  0xd5   :  { %782 = vmatpush.msrb.mxu3 %v2385_v56  ;;  %v2435_v55 = vld [vmem:[#allocation2 + $0x150] sm:$0xff] }
  0xd6   :  { %3582 = vst [vmem:[#allocation19_spill] sm:$0xff] %v2435_v55 }
 0x147   :  { %v334_v57 = vpop.xlane.xlu0 %333 }
 0x148   :  { %v335_v61 = vadd.f32 1e-12, %v334_v57  ;;  %v2387_v57 = vld [vmem:[#allocation2 + $0x298] sm:$0xff] }
 0x149   :  { %822 = vmatpush.msrb.mxu0 %v2387_v57 }
 0x14a   :  { %2033 = vrsqrt.f32 %v335_v61  ;;  %vm342_vm4 = vweird.f32 %v335_v61 }
 0x150   :  { %v2034_v7 = vpop.eup %2033 }
 0x151   :  { %v337_v8 = vmul.f32 %v2034_v7, %v335_v61  ;;  %vm343_vm3 = vweird.f32 %v2034_v7  ;;  %v657_v61 = vld [vmem:[#allocation2 + $0x6c0] sm:$0xff] }
 0x152   :  { %vm344_vm5 = vmor %vm342_vm4, %vm343_vm3 }
 0x153   :  { %v338_v11 = vmul.f32 %v2034_v7, %v337_v8  ;;  %v2391_v8 = vld [vmem:[#allocation2 + $0x250] sm:$0xff] }
 0x154   :  { %783 = vmatpush.msrb.mxu3 %v2391_v8 }
 0x155   :  { %v339_v14 = vmul.f32 0.5, %v338_v11  ;;  %v2393_v11 = vld [vmem:[#allocation2 + $0x258] sm:$0xff] }
 0x156   :  { %823 = vmatpush.msrb.mxu0 %v2393_v11 }
 0x157   :  { %v340_v17 = vsub.f32 1.5, %v339_v14  ;;  %v2397_v14 = vld [vmem:[#allocation2 + $0x680] sm:$0xff] }
 0x158   :  { %3572 = vst [vmem:[#allocation9_spill] sm:$0xff] %v2397_v14 }
 0x159   :  { %v341_v20 = vmul.f32 %v2034_v7, %v340_v17  ;;  %v2399_v17 = vld [vmem:[#allocation2 + $0x688] sm:$0xff] }
 0x15a   :  { %3573 = vst [vmem:[#allocation10_spill] sm:$0xff] %v2399_v17 }
 0x15b   :  { %v345_v23 = vsel %vm344_vm5, %v2034_v7, %v341_v20  ;;  %v658_v7 = vld [vmem:[#allocation2 + $0x6c8] sm:$0xff]  ;;  %v2401_v20 = vld [vmem:[#allocation2 + $0x210] sm:$0xff] }
 0x15c   :  { %v346_v25 = vmul.f32 %v345_v23, %v328_v54  ;;  %v665_v54 = vld [vmem:[#allocation2 + $0x700] sm:$0xff]  ;;  %v2403_v23 = vld [vmem:[#allocation2 + $0x218] sm:$0xff]  ;;  %761 = vmatpush.msra.mxu1 %v658_v7  ;;  %784 = vmatpush.msrb.mxu3 %v2401_v20 }
 0x15d   :  { %824 = vmatpush.msrb.mxu0 %v2403_v23  ;;  %v2443_v7 = vld [vmem:[#allocation2 + $0x580] sm:$0xff] }
 0x15e   :  { %2010 = vmatpush.msk.msrb.mxu2 %vm331_vm2, %v346_v25  ;;  %v2407_v25 = vld [vmem:[#allocation2 + $0x640] sm:$0xff]  ;;  %762 = vmatpush.msra.mxu1 %v2399_v17  ;;  %3583 = vst [vmem:[#allocation20_spill] sm:$0xff] %v2443_v7  ;;  %v2459_v17 = vld [vmem:[#allocation2 + $0xd0] sm:$0xff] }
 0x15f   :  { %2011 = vmatmul.msk.f32.vlgmr.msrb.gmra.mxu2 %vm348_vm6, %v347_v26  ;;  %3574 = vst [vmem:[#allocation11_spill] sm:$0xff] %v2407_v25  ;;  %v2409_v26 = vld [vmem:[#allocation2 + $0x648] sm:$0xff] }
 0x160   :  { %2014 = vmatpush.msk.msra.mxu2 %vm377_vm0, %v390_v28  ;;  %3575 = vst [vmem:[#allocation12_spill] sm:$0xff] %v2409_v26  ;;  %v2411_v28 = vld [vmem:[#allocation2 + $0x1d0] sm:$0xff]  ;;  %763 = vmatpush.msra.mxu1 %v2409_v26 }
 0x161   :  { %3576 = vst [vmem:[#allocation13_spill] sm:$0xff] %v2411_v28  ;;  %785 = vmatpush.msrb.mxu3 %v2411_v28  ;;  %v2447_v26 = vld [vmem:[#allocation2 + $0x110] sm:$0xff]  ;;  %v2473_v28 = vld [vmem:[#allocation2 + $0x98] sm:$0xff] }
 0x162   :  { %717 = vmatpush.msrb.mxu2 %v689_v40  ;;  %v2413_v40 = vld [vmem:[#allocation2 + $0x1d8] sm:$0xff]  ;;  %3585 = vst [vmem:[#allocation22_spill] sm:$0xff] %v2447_v26 }
 0x163   :  { %825 = vmatpush.msrb.mxu0 %v2413_v40  ;;  %786 = vmatpush.msrb.mxu3 %v2423_v47  ;;  %3589 = vst [vmem:[#allocation26_spill] sm:$0xff] %v2459_v17  ;;  %v2461_v47 = vld [vmem:[#allocation2 + $0xd8] sm:$0xff] }
 0x164   :  { %3590 = vst [vmem:[#allocation27_spill] sm:$0xff] %v2461_v47 }
 0x165   :  { %787 = vmatpush.msrb.mxu3 %v2435_v55  ;;  %v2471_v55 = vld [vmem:[#allocation2 + $0x90] sm:$0xff]  ;;  %3594 = vst [vmem:[#allocation31_spill] sm:$0xff] %v2473_v28 }
 0x166   :  { %3593 = vst [vmem:[#allocation30_spill] sm:$0xff] %v2471_v55 }
 0x167   :  { %2015 = vmatmul.msk.f32.vlgmr.msra.gmra.mxu2 %vm391_vm1, %v2238_v41  ;;  %v681_v41 = vld [vmem:[#allocation2 + $0x780] sm:$0xff]  ;;  %788 = vmatpush.msrb.mxu3 %v2447_v26  ;;  %v2483_v26 = vld [vmem:[#allocation2 + $0x50] sm:$0xff] }
 0x168   :  { %718 = vmatpush.msrb.mxu2 %v681_v41  ;;  %v2421_v41 = vld [vmem:[#allocation2 + $0x608] sm:$0xff]  ;;  %3597 = vst [vmem:[#allocation34_spill] sm:$0xff] %v2483_v26 }
 0x169   :  { %3578 = vst [vmem:[#allocation15_spill] sm:$0xff] %v2421_v41  ;;  %764 = vmatpush.msra.mxu1 %v2421_v41  ;;  %v2457_v41 = vld [vmem:[#allocation2 + $0x548] sm:$0xff]  ;;  %789 = vmatpush.msrb.mxu3 %v2459_v17  ;;  %v2495_v17 = vld [vmem:[#allocation2 + $0x10] sm:$0xff] }
 0x16a   :  { %719 = vmatpush.msrb.mxu2 %v673_v50  ;;  %v2425_v50 = vld [vmem:[#allocation2 + $0x198] sm:$0xff]  ;;  %3588 = vst [vmem:[#allocation25_spill] sm:$0xff] %v2457_v41 }
 0x16b   :  { %826 = vmatpush.msrb.mxu0 %v2425_v50  ;;  %790 = vmatpush.msrb.mxu3 %v2471_v55  ;;  %3601 = vst [vmem:[#allocation38_spill] sm:$0xff] %v2495_v17  ;;  %v2509_v55 = vld [vmem:[#allocation2 + $0x440] sm:$0xff] }
 0x16c   :  { %720 = vmatpush.msrb.mxu2 %v665_v54  ;;  %v2433_v54 = vld [vmem:[#allocation2 + $0x5c8] sm:$0xff]  ;;  %3605 = vst [vmem:[#allocation42_spill] sm:$0xff] %v2509_v55 }
 0x16d   :  { %3581 = vst [vmem:[#allocation18_spill] sm:$0xff] %v2433_v54  ;;  %765 = vmatpush.msra.mxu1 %v2433_v54  ;;  %v2469_v54 = vld [vmem:[#allocation2 + $0x508] sm:$0xff]  ;;  %791 = vmatpush.msrb.mxu3 %v2483_v26  ;;  %v2521_v26 = vld [vmem:[#allocation2 + $0x400] sm:$0xff] }
 0x16e   :  { %721 = vmatpush.msrb.mxu2 %v657_v61  ;;  %v2437_v61 = vld [vmem:[#allocation2 + $0x158] sm:$0xff]  ;;  %3592 = vst [vmem:[#allocation29_spill] sm:$0xff] %v2469_v54 }
 0x16f   :  { %827 = vmatpush.msrb.mxu0 %v2437_v61  ;;  %792 = vmatpush.msrb.mxu3 %v2495_v17  ;;  %3609 = vst [vmem:[#allocation46_spill] sm:$0xff] %v2521_v26  ;;  %v2533_v17 = vld [vmem:[#allocation2 + $0x7d0] sm:$0xff] }
 0x170   :  { %722 = vmatpush.msrb.mxu2 %v2397_v14  ;;  %v2449_v14 = vld [vmem:[#allocation2 + $0x118] sm:$0xff]  ;;  %3613 = vst [vmem:[#allocation50_spill] sm:$0xff] %v2533_v17  ;;  %793 = vmatmul.f32.vlgmr.msrb.gmra.mxu3 %v2354_v39 }
 0x171   :  { %3586 = vst [vmem:[#allocation23_spill] sm:$0xff] %v2449_v14  ;;  %828 = vmatpush.msrb.mxu0 %v2449_v14  ;;  %v2485_v14 = vld [vmem:[#allocation2 + $0x58] sm:$0xff] }
 0x172   :  { %723 = vmatpush.msrb.mxu2 %v2407_v25  ;;  %v2445_v25 = vld [vmem:[#allocation2 + $0x588] sm:$0xff]  ;;  %3598 = vst [vmem:[#allocation35_spill] sm:$0xff] %v2485_v14 }
 0x173   :  { %3584 = vst [vmem:[#allocation21_spill] sm:$0xff] %v2445_v25  ;;  %766 = vmatpush.msra.mxu1 %v2445_v25  ;;  %829 = vmatpush.msrb.mxu0 %v2461_v47  ;;  %v2481_v25 = vld [vmem:[#allocation2 + $0x4c8] sm:$0xff]  ;;  %v2497_v47 = vld [vmem:[#allocation2 + $0x18] sm:$0xff] }
 0x174   :  { %724 = vmatpush.msrb.mxu2 %v2419_v44  ;;  %v2455_v44 = vld [vmem:[#allocation2 + $0x540] sm:$0xff]  ;;  %3596 = vst [vmem:[#allocation33_spill] sm:$0xff] %v2481_v25 }
 0x175   :  { %3587 = vst [vmem:[#allocation24_spill] sm:$0xff] %v2455_v44  ;;  %767 = vmatpush.msra.mxu1 %v2457_v41  ;;  %830 = vmatpush.msrb.mxu0 %v2473_v28  ;;  %v2493_v41 = vld [vmem:[#allocation2 + $0x488] sm:$0xff] }
 0x176   :  { %725 = vmatpush.msrb.mxu2 %v2431_v51  ;;  %v2467_v51 = vld [vmem:[#allocation2 + $0x500] sm:$0xff]  ;;  %3600 = vst [vmem:[#allocation37_spill] sm:$0xff] %v2493_v41  ;;  %v2511_v28 = vld [vmem:[#allocation2 + $0x448] sm:$0xff] }
 0x177   :  { %3591 = vst [vmem:[#allocation28_spill] sm:$0xff] %v2467_v51  ;;  %768 = vmatpush.msra.mxu1 %v2469_v54  ;;  %831 = vmatpush.msrb.mxu0 %v2485_v14  ;;  %v2505_v54 = vld [vmem:[#allocation2 + $0x3e8] sm:$0xff] }
 0x178   :  { %726 = vmatpush.msrb.mxu2 %v2443_v7  ;;  %v2479_v7 = vld [vmem:[#allocation2 + $0x4c0] sm:$0xff]  ;;  %3602 = vst [vmem:[#allocation39_spill] sm:$0xff] %v2497_v47  ;;  %v2527_v14 = vld [vmem:[#allocation2 + $0x368] sm:$0xff] }
 0x179   :  { %3595 = vst [vmem:[#allocation32_spill] sm:$0xff] %v2479_v7  ;;  %769 = vmatpush.msra.mxu1 %v2481_v25  ;;  %832 = vmatpush.msrb.mxu0 %v2497_v47  ;;  %v2517_v25 = vld [vmem:[#allocation2 + $0x3a8] sm:$0xff] }
 0x17a   :  { %727 = vmatpush.msrb.mxu2 %v2455_v44  ;;  %v2491_v44 = vld [vmem:[#allocation2 + $0x480] sm:$0xff]  ;;  %3604 = vst [vmem:[#allocation41_spill] sm:$0xff] %v2505_v54  ;;  %833 = vmatmul.f32.vlgmr.msrb.gmra.mxu0 %v2354_v39  ;;  %v2583_v47 = vld [vmem:[#allocation2 + $0x228] sm:$0xff] }
 0x17b   :  { %3599 = vst [vmem:[#allocation36_spill] sm:$0xff] %v2491_v44  ;;  %770 = vmatpush.msra.mxu1 %v2493_v41  ;;  %897 = vmatpush.msra.mxu0 %v2505_v54  ;;  %v2525_v41 = vld [vmem:[#allocation2 + $0x360] sm:$0xff]  ;;  %v2537_v54 = vld [vmem:[#allocation2 + $0x328] sm:$0xff] }
 0x17c   :  { %728 = vmatpush.msrb.mxu2 %v2467_v51  ;;  %v2503_v51 = vld [vmem:[#allocation2 + $0x3e0] sm:$0xff]  ;;  %3606 = vst [vmem:[#allocation43_spill] sm:$0xff] %v2511_v28 }
 0x17d   :  { %3603 = vst [vmem:[#allocation40_spill] sm:$0xff] %v2503_v51  ;;  %857 = vmatpush.msra.mxu3 %v2503_v51  ;;  %771 = vmatpush.msra.mxu1 %v2511_v28  ;;  %v2535_v51 = vld [vmem:[#allocation2 + $0x320] sm:$0xff] }
 0x17e   :  { %729 = vmatpush.msrb.mxu2 %v2479_v7  ;;  %v2515_v7 = vld [vmem:[#allocation2 + $0x3a0] sm:$0xff]  ;;  %3608 = vst [vmem:[#allocation45_spill] sm:$0xff] %v2517_v25  ;;  %898 = vmatpush.msra.mxu0 %v2517_v25  ;;  %v2553_v25 = vld [vmem:[#allocation2 + $0x790] sm:$0xff] }
 0x17f   :  { %3607 = vst [vmem:[#allocation44_spill] sm:$0xff] %v2515_v7  ;;  %858 = vmatpush.msra.mxu3 %v2515_v7  ;;  %v2545_v28 = vld [vmem:[#allocation2 + $0x2e0] sm:$0xff]  ;;  %v2547_v7 = vld [vmem:[#allocation2 + $0x2e8] sm:$0xff] }
 0x180   :  { %730 = vmatpush.msrb.mxu2 %v2491_v44  ;;  %v2523_v44 = vld [vmem:[#allocation2 + $0x408] sm:$0xff]  ;;  %3611 = vst [vmem:[#allocation48_spill] sm:$0xff] %v2525_v41  ;;  %899 = vmatpush.msra.mxu0 %v2527_v14 }
 0x181   :  { %3610 = vst [vmem:[#allocation47_spill] sm:$0xff] %v2523_v44  ;;  %772 = vmatpush.msra.mxu1 %v2523_v44  ;;  %859 = vmatpush.msra.mxu3 %v2525_v41  ;;  %v2557_v41 = vld [vmem:[#allocation2 + $0x2a0] sm:$0xff]  ;;  %v2571_v44 = vld [vmem:[#allocation2 + $0x268] sm:$0xff] }
 0x182   :  { %3612 = vst [vmem:[#allocation49_spill] sm:$0xff] %v2527_v14  ;;  %731 = vmatpush.msrb.mxu2 %v2509_v55  ;;  %v2543_v55 = vld [vmem:[#allocation2 + $0x7d8] sm:$0xff]  ;;  %900 = vmatpush.msra.mxu0 %v2537_v54  ;;  %v2559_v14 = vld [vmem:[#allocation2 + $0x2a8] sm:$0xff] }
 0x183   :  { %3614 = vst [vmem:[#allocation51_spill] sm:$0xff] %v2535_v51  ;;  %860 = vmatpush.msra.mxu3 %v2535_v51  ;;  %837 = vmatpush.msrb.mxu1 %v2543_v55  ;;  %v2567_v51 = vld [vmem:[#allocation2 + $0x758] sm:$0xff] }
 0x184   :  { %3615 = vst [vmem:[#allocation52_spill] sm:$0xff] %v2537_v54  ;;  %732 = vmatpush.msrb.mxu2 %v2521_v26  ;;  %v2555_v26 = vld [vmem:[#allocation2 + $0x798] sm:$0xff]  ;;  %901 = vmatpush.msra.mxu0 %v2547_v7  ;;  %v2569_v54 = vld [vmem:[#allocation2 + $0x260] sm:$0xff] }
 0x185   :  { %3616 = vst [vmem:[#allocation53_spill] sm:$0xff] %v2543_v55  ;;  %861 = vmatpush.msra.mxu3 %v2545_v28  ;;  %838 = vmatpush.msrb.mxu1 %v2555_v26  ;;  %v2577_v55 = vld [vmem:[#allocation2 + $0x710] sm:$0xff] }
 0x186   :  { %3617 = vst [vmem:[#allocation54_spill] sm:$0xff] %v2545_v28  ;;  %797 = vmatpush.msra.mxu2 %v2533_v17  ;;  %v2565_v17 = vld [vmem:[#allocation2 + $0x750] sm:$0xff]  ;;  %902 = vmatpush.msra.mxu0 %v2559_v14  ;;  %v2579_v28 = vld [vmem:[#allocation2 + $0x718] sm:$0xff] }
 0x187   :  { %3618 = vst [vmem:[#allocation55_spill] sm:$0xff] %v2547_v7  ;;  %862 = vmatpush.msra.mxu3 %v2557_v41  ;;  %v2581_v7 = vld [vmem:[#allocation2 + $0x220] sm:$0xff]  ;;  %839 = vmatpush.msrb.mxu1 %v2567_v51 }
 0x188   :  { %3619 = vst [vmem:[#allocation56_spill] sm:$0xff] %v2553_v25  ;;  %798 = vmatpush.msra.mxu2 %v2553_v25  ;;  %903 = vmatpush.msra.mxu0 %v2571_v44  ;;  %v2589_v25 = vld [vmem:[#allocation2 + $0x6d0] sm:$0xff] }
 0x189   :  { %3620 = vst [vmem:[#allocation57_spill] sm:$0xff] %v2555_v26  ;;  %863 = vmatpush.msra.mxu3 %v2569_v54  ;;  %v2595_v26 = vld [vmem:[#allocation2 + $0x1e8] sm:$0xff]  ;;  %840 = vmatpush.msrb.mxu1 %v2579_v28 }
 0x18a   :  { %3621 = vst [vmem:[#allocation58_spill] sm:$0xff] %v2557_v41  ;;  %799 = vmatpush.msra.mxu2 %v2565_v17  ;;  %v2591_v41 = vld [vmem:[#allocation2 + $0x6d8] sm:$0xff]  ;;  %904 = vmatpush.msra.mxu0 %v2583_v47 }
 0x18b   :  { %3622 = vst [vmem:[#allocation59_spill] sm:$0xff] %v2559_v14  ;;  %v2593_v14 = vld [vmem:[#allocation2 + $0x1e0] sm:$0xff]  ;;  %864 = vmatpush.msra.mxu3 %v2581_v7  ;;  %841 = vmatpush.msrb.mxu1 %v2591_v41 }
 0x18c   :  { %3623 = vst [vmem:[#allocation60_spill] sm:$0xff] %v2565_v17  ;;  %800 = vmatpush.msra.mxu2 %v2577_v55  ;;  %v2601_v17 = vld [vmem:[#allocation2 + $0x690] sm:$0xff]  ;;  %905 = vmatpush.msra.mxu0 %v2595_v26 }
 0x18d   :  { %3624 = vst [vmem:[#allocation61_spill] sm:$0xff] %v2567_v51  ;;  %v2607_v51 = vld [vmem:[#allocation2 + $0x1a8] sm:$0xff]  ;;  %865 = vmatpush.msra.mxu3 %v2593_v14 }
 0x18e   :  { %3625 = vst [vmem:[#allocation62_spill] sm:$0xff] %v2569_v54  ;;  %v2603_v54 = vld [vmem:[#allocation2 + $0x698] sm:$0xff]  ;;  %801 = vmatpush.msra.mxu2 %v2589_v25  ;;  %906 = vmatpush.msra.mxu0 %v2607_v51 }
 0x18f   :  { %3626 = vst [vmem:[#allocation63_spill] sm:$0xff] %v2571_v44  ;;  %v2605_v44 = vld [vmem:[#allocation2 + $0x1a0] sm:$0xff]  ;;  %842 = vmatpush.msrb.mxu1 %v2603_v54 }
 0x190   :  { %3627 = vst [vmem:[#allocation64_spill] sm:$0xff] %v2577_v55  ;;  %v2613_v55 = vld [vmem:[#allocation2 + $0x650] sm:$0xff]  ;;  %802 = vmatpush.msra.mxu2 %v2601_v17  ;;  %866 = vmatpush.msra.mxu3 %v2605_v44 }
 0x191   :  { %3628 = vst [vmem:[#allocation65_spill] sm:$0xff] %v2579_v28  ;;  %v2619_v28 = vld [vmem:[#allocation2 + $0x168] sm:$0xff] }
 0x192   :  { %3629 = vst [vmem:[#allocation66_spill] sm:$0xff] %v2581_v7  ;;  %v2615_v7 = vld [vmem:[#allocation2 + $0x658] sm:$0xff]  ;;  %803 = vmatpush.msra.mxu2 %v2613_v55  ;;  %907 = vmatpush.msra.mxu0 %v2619_v28 }
 0x193   :  { %3630 = vst [vmem:[#allocation67_spill] sm:$0xff] %v2583_v47  ;;  %v2617_v47 = vld [vmem:[#allocation2 + $0x160] sm:$0xff]  ;;  %843 = vmatpush.msrb.mxu1 %v2615_v7 }
 0x194   :  { %3631 = vst [vmem:[#allocation68_spill] sm:$0xff] %v2589_v25  ;;  %v2625_v25 = vld [vmem:[#allocation2 + $0x610] sm:$0xff]  ;;  %867 = vmatpush.msra.mxu3 %v2617_v47 }
 0x195   :  { %3632 = vst [vmem:[#allocation69_spill] sm:$0xff] %v2591_v41  ;;  %v2631_v41 = vld [vmem:[#allocation2 + $0x128] sm:$0xff]  ;;  %804 = vmatpush.msra.mxu2 %v2625_v25 }
 0x196   :  { %3633 = vst [vmem:[#allocation70_spill] sm:$0xff] %v2593_v14  ;;  %v2627_v14 = vld [vmem:[#allocation2 + $0x618] sm:$0xff]  ;;  %908 = vmatpush.msra.mxu0 %v2631_v41 }
 0x197   :  { %3634 = vst [vmem:[#allocation71_spill] sm:$0xff] %v2595_v26  ;;  %v2629_v26 = vld [vmem:[#allocation2 + $0x120] sm:$0xff]  ;;  %844 = vmatpush.msrb.mxu1 %v2627_v14 }
 0x198   :  { %3635 = vst [vmem:[#allocation72_spill] sm:$0xff] %v2601_v17  ;;  %v2637_v17 = vld [vmem:[#allocation2 + $0x5d0] sm:$0xff]  ;;  %868 = vmatpush.msra.mxu3 %v2629_v26 }
 0x199   :  { %3636 = vst [vmem:[#allocation73_spill] sm:$0xff] %v2603_v54  ;;  %v2643_v54 = vld [vmem:[#allocation2 + $0xe8] sm:$0xff]  ;;  %805 = vmatpush.msra.mxu2 %v2637_v17 }
 0x19a   :  { %3637 = vst [vmem:[#allocation74_spill] sm:$0xff] %v2605_v44  ;;  %v2639_v44 = vld [vmem:[#allocation2 + $0x5d8] sm:$0xff]  ;;  %909 = vmatpush.msra.mxu0 %v2643_v54 }
 0x19b   :  { %3638 = vst [vmem:[#allocation75_spill] sm:$0xff] %v2607_v51  ;;  %v2641_v51 = vld [vmem:[#allocation2 + $0xe0] sm:$0xff]  ;;  %845 = vmatpush.msrb.mxu1 %v2639_v44 }
 0x19c   :  { %3639 = vst [vmem:[#allocation76_spill] sm:$0xff] %v2613_v55  ;;  %v2649_v55 = vld [vmem:[#allocation2 + $0x590] sm:$0xff]  ;;  %869 = vmatpush.msra.mxu3 %v2641_v51 }
 0x19d   :  { %3640 = vst [vmem:[#allocation77_spill] sm:$0xff] %v2615_v7  ;;  %v2655_v7 = vld [vmem:[#allocation2 + $0xa8] sm:$0xff]  ;;  %806 = vmatpush.msra.mxu2 %v2649_v55 }
 0x19e   :  { %3641 = vst [vmem:[#allocation78_spill] sm:$0xff] %v2617_v47  ;;  %v2651_v47 = vld [vmem:[#allocation2 + $0x598] sm:$0xff]  ;;  %910 = vmatpush.msra.mxu0 %v2655_v7 }
 0x19f   :  { %3642 = vst [vmem:[#allocation79_spill] sm:$0xff] %v2619_v28  ;;  %v2653_v28 = vld [vmem:[#allocation2 + $0xa0] sm:$0xff]  ;;  %846 = vmatpush.msrb.mxu1 %v2651_v47 }
 0x1a0   :  { %3643 = vst [vmem:[#allocation80_spill] sm:$0xff] %v2625_v25  ;;  %v2661_v25 = vld [vmem:[#allocation2 + $0x550] sm:$0xff]  ;;  %870 = vmatpush.msra.mxu3 %v2653_v28 }
 0x1a1   :  { %3644 = vst [vmem:[#allocation81_spill] sm:$0xff] %v2627_v14  ;;  %v2667_v14 = vld [vmem:[#allocation2 + $0x68] sm:$0xff]  ;;  %807 = vmatpush.msra.mxu2 %v2661_v25 }
 0x1a2   :  { %3645 = vst [vmem:[#allocation82_spill] sm:$0xff] %v2629_v26  ;;  %v2663_v26 = vld [vmem:[#allocation2 + $0x558] sm:$0xff]  ;;  %911 = vmatpush.msra.mxu0 %v2667_v14 }
 0x1a3   :  { %3646 = vst [vmem:[#allocation83_spill] sm:$0xff] %v2631_v41  ;;  %v2665_v41 = vld [vmem:[#allocation2 + $0x60] sm:$0xff]  ;;  %847 = vmatpush.msrb.mxu1 %v2663_v26 }
 0x1a4   :  { %3647 = vst [vmem:[#allocation84_spill] sm:$0xff] %v2637_v17  ;;  %v2673_v17 = vld [vmem:[#allocation2 + $0x20] sm:$0xff]  ;;  %871 = vmatpush.msra.mxu3 %v2665_v41 }
 0x1a5   :  { %3648 = vst [vmem:[#allocation85_spill] sm:$0xff] %v2641_v51  ;;  %v2675_v51 = vld [vmem:[#allocation2 + $0x28] sm:$0xff] }
 0x1a6   :  { %3649 = vst [vmem:[#allocation86_spill] sm:$0xff] %v2643_v54  ;;  %v2681_v54 = vld [vmem:[#allocation2 + $0x3f0] sm:$0xff]  ;;  %872 = vmatpush.msra.mxu3 %v2673_v17  ;;  %912 = vmatpush.msra.mxu0 %v2675_v51 }
 0x1a7   :  { %3650 = vst [vmem:[#allocation87_spill] sm:$0xff] %v2649_v55  ;;  %v2683_v55 = vld [vmem:[#allocation2 + $0x3f8] sm:$0xff]  ;;  %873 = vmatmul.f32.vlgmr.msra.gmra.mxu3 %v2354_v39  ;;  %913 = vmatmul.f32.vlgmr.msra.gmra.mxu0 %v2354_v39 }
 0x1a8   :  { %3651 = vst [vmem:[#allocation88_spill] sm:$0xff] %v2653_v28  ;;  %v2689_v28 = vld [vmem:[#allocation2 + $0x3b8] sm:$0xff]  ;;  %937 = vmatpush.msrb.mxu3 %v2681_v54  ;;  %977 = vmatpush.msrb.mxu0 %v2683_v55 }
 0x1a9   :  { %3652 = vst [vmem:[#allocation89_spill] sm:$0xff] %v2655_v7  ;;  %v2687_v7 = vld [vmem:[#allocation2 + $0x3b0] sm:$0xff] }
 0x1aa   :  { %3653 = vst [vmem:[#allocation90_spill] sm:$0xff] %v2661_v25  ;;  %v2693_v25 = vld [vmem:[#allocation2 + $0x370] sm:$0xff]  ;;  %938 = vmatpush.msrb.mxu3 %v2687_v7  ;;  %978 = vmatpush.msrb.mxu0 %v2689_v28 }
 0x1ab   :  { %3654 = vst [vmem:[#allocation91_spill] sm:$0xff] %v2665_v41  ;;  %v2695_v41 = vld [vmem:[#allocation2 + $0x378] sm:$0xff] }
 0x1ac   :  { %3655 = vst [vmem:[#allocation92_spill] sm:$0xff] %v2667_v14  ;;  %939 = vmatpush.msrb.mxu3 %v2693_v25  ;;  %979 = vmatpush.msrb.mxu0 %v2695_v41  ;;  %v2713_v14 = vld [vmem:[#allocation2 + $0x2b0] sm:$0xff] }
 0x1ad   :  { %3656 = vst [vmem:[#allocation93_spill] sm:$0xff] %v2673_v17  ;;  %v2703_v17 = vld [vmem:[#allocation2 + $0x338] sm:$0xff] }
 0x1ae   :  { %3657 = vst [vmem:[#allocation94_spill] sm:$0xff] %v2675_v51  ;;  %v2701_v51 = vld [vmem:[#allocation2 + $0x330] sm:$0xff]  ;;  %980 = vmatpush.msrb.mxu0 %v2703_v17 }
 0x1af   :  { %3658 = vst [vmem:[#allocation95_spill] sm:$0xff] %v2681_v54  ;;  %v2709_v54 = vld [vmem:[#allocation2 + $0x2f8] sm:$0xff]  ;;  %940 = vmatpush.msrb.mxu3 %v2701_v51 }
 0x1b0   :  { %3659 = vst [vmem:[#allocation96_spill] sm:$0xff] %v2683_v55  ;;  %v2707_v55 = vld [vmem:[#allocation2 + $0x2f0] sm:$0xff]  ;;  %981 = vmatpush.msrb.mxu0 %v2709_v54 }
 0x1b1   :  { %3660 = vst [vmem:[#allocation97_spill] sm:$0xff] %v2687_v7  ;;  %v2715_v7 = vld [vmem:[#allocation2 + $0x2b8] sm:$0xff]  ;;  %941 = vmatpush.msrb.mxu3 %v2707_v55 }
 0x1b2   :  { %3661 = vst [vmem:[#allocation98_spill] sm:$0xff] %v2689_v28  ;;  %v2719_v28 = vld [vmem:[#allocation2 + $0x270] sm:$0xff]  ;;  %982 = vmatpush.msrb.mxu0 %v2715_v7 }
 0x1b3   :  { %3662 = vst [vmem:[#allocation99_spill] sm:$0xff] %v2693_v25  ;;  %v2721_v25 = vld [vmem:[#allocation2 + $0x278] sm:$0xff]  ;;  %942 = vmatpush.msrb.mxu3 %v2713_v14 }
 0x1b4   :  { %3663 = vst [vmem:[#allocation100_spill] sm:$0xff] %v2695_v41  ;;  %v2725_v41 = vld [vmem:[#allocation2 + $0x230] sm:$0xff]  ;;  %983 = vmatpush.msrb.mxu0 %v2721_v25 }
 0x1b5   :  { %3664 = vst [vmem:[#allocation101_spill] sm:$0xff] %v2701_v51  ;;  %v2727_v51 = vld [vmem:[#allocation2 + $0x238] sm:$0xff]  ;;  %943 = vmatpush.msrb.mxu3 %v2719_v28 }
 0x1b6   :  { %3665 = vst [vmem:[#allocation102_spill] sm:$0xff] %v2703_v17  ;;  %v2731_v17 = vld [vmem:[#allocation2 + $0x1f0] sm:$0xff]  ;;  %984 = vmatpush.msrb.mxu0 %v2727_v51 }
 0x1b7   :  { %3666 = vst [vmem:[#allocation103_spill] sm:$0xff] %v2707_v55  ;;  %v2733_v55 = vld [vmem:[#allocation2 + $0x1f8] sm:$0xff]  ;;  %944 = vmatpush.msrb.mxu3 %v2725_v41 }
 0x1b8   :  { %3667 = vst [vmem:[#allocation104_spill] sm:$0xff] %v2709_v54  ;;  %v2737_v54 = vld [vmem:[#allocation2 + $0x1b0] sm:$0xff]  ;;  %985 = vmatpush.msrb.mxu0 %v2733_v55 }
 0x1b9   :  { %3668 = vst [vmem:[#allocation105_spill] sm:$0xff] %v2713_v14  ;;  %v2739_v14 = vld [vmem:[#allocation2 + $0x1b8] sm:$0xff]  ;;  %945 = vmatpush.msrb.mxu3 %v2731_v17 }
 0x1ba   :  { %3669 = vst [vmem:[#allocation106_spill] sm:$0xff] %v2715_v7  ;;  %v2743_v7 = vld [vmem:[#allocation2 + $0x170] sm:$0xff]  ;;  %986 = vmatpush.msrb.mxu0 %v2739_v14 }
 0x1bb   :  { %3670 = vst [vmem:[#allocation107_spill] sm:$0xff] %v2719_v28  ;;  %v2745_v28 = vld [vmem:[#allocation2 + $0x178] sm:$0xff]  ;;  %946 = vmatpush.msrb.mxu3 %v2737_v54 }
 0x1bc   :  { %3671 = vst [vmem:[#allocation108_spill] sm:$0xff] %v2721_v25  ;;  %987 = vmatpush.msrb.mxu0 %v2745_v28  ;;  %v2755_v25 = vld [vmem:[#allocation2 + $0x130] sm:$0xff] }
 0x1bd   :  { %3672 = vst [vmem:[#allocation109_spill] sm:$0xff] %v2725_v41  ;;  %947 = vmatpush.msrb.mxu3 %v2743_v7  ;;  %v2753_v41 = vld [vmem:[#allocation2 + $0x518] sm:$0xff] }
 0x1be   :  { %3673 = vst [vmem:[#allocation110_spill] sm:$0xff] %v2727_v51  ;;  %v2751_v51 = vld [vmem:[#allocation2 + $0x510] sm:$0xff]  ;;  %848 = vmatpush.msrb.mxu1 %v2753_v41 }
 0x1bf   :  { %3674 = vst [vmem:[#allocation111_spill] sm:$0xff] %v2731_v17  ;;  %808 = vmatpush.msra.mxu2 %v2751_v51  ;;  %948 = vmatpush.msrb.mxu3 %v2755_v25  ;;  %v2773_v17 = vld [vmem:[#allocation2 + $0x490] sm:$0xff] }
 0x1c0   :  { %3675 = vst [vmem:[#allocation112_spill] sm:$0xff] %v2733_v55  ;;  %v2759_v55 = vld [vmem:[#allocation2 + $0x138] sm:$0xff] }
 0x1c1   :  { %3676 = vst [vmem:[#allocation113_spill] sm:$0xff] %v2737_v54  ;;  %988 = vmatpush.msrb.mxu0 %v2759_v55  ;;  %v2771_v54 = vld [vmem:[#allocation2 + $0xf8] sm:$0xff] }
 0x1c2   :  { %3677 = vst [vmem:[#allocation114_spill] sm:$0xff] %v2739_v14  ;;  %v2763_v14 = vld [vmem:[#allocation2 + $0x4d0] sm:$0xff] }
 0x1c3   :  { %3678 = vst [vmem:[#allocation115_spill] sm:$0xff] %v2743_v7  ;;  %v2765_v7 = vld [vmem:[#allocation2 + $0x4d8] sm:$0xff]  ;;  %809 = vmatpush.msra.mxu2 %v2763_v14  ;;  %989 = vmatpush.msrb.mxu0 %v2771_v54 }
 0x1c4   :  { %3679 = vst [vmem:[#allocation116_spill] sm:$0xff] %v2745_v28  ;;  %v2767_v28 = vld [vmem:[#allocation2 + $0xf0] sm:$0xff]  ;;  %849 = vmatpush.msrb.mxu1 %v2765_v7 }
 0x1c5   :  { %3680 = vst [vmem:[#allocation117_spill] sm:$0xff] %v2751_v51  ;;  %v2775_v51 = vld [vmem:[#allocation2 + $0x498] sm:$0xff]  ;;  %949 = vmatpush.msrb.mxu3 %v2767_v28  ;;  %810 = vmatpush.msra.mxu2 %v2773_v17 }
 0x1c6   :  { %3681 = vst [vmem:[#allocation118_spill] sm:$0xff] %v2753_v41  ;;  %850 = vmatpush.msrb.mxu1 %v2775_v51  ;;  %v2789_v41 = vld [vmem:[#allocation2 + $0x70] sm:$0xff] }
 0x1c7   :  { %3682 = vst [vmem:[#allocation119_spill] sm:$0xff] %v2755_v25  ;;  %v2781_v25 = vld [vmem:[#allocation2 + $0xb8] sm:$0xff] }
 0x1c8   :  { %3683 = vst [vmem:[#allocation120_spill] sm:$0xff] %v2759_v55  ;;  %v2779_v55 = vld [vmem:[#allocation2 + $0xb0] sm:$0xff]  ;;  %990 = vmatpush.msrb.mxu0 %v2781_v25 }
 0x1c9   :  { %3684 = vst [vmem:[#allocation121_spill] sm:$0xff] %v2763_v14  ;;  %v2785_v14 = vld [vmem:[#allocation2 + $0x450] sm:$0xff]  ;;  %950 = vmatpush.msrb.mxu3 %v2779_v55 }
 0x1ca   :  { %3685 = vst [vmem:[#allocation122_spill] sm:$0xff] %v2765_v7  ;;  %v2787_v7 = vld [vmem:[#allocation2 + $0x458] sm:$0xff]  ;;  %811 = vmatpush.msra.mxu2 %v2785_v14 }
 0x1cb   :  { %3686 = vst [vmem:[#allocation123_spill] sm:$0xff] %v2767_v28  ;;  %v2793_v28 = vld [vmem:[#allocation2 + $0x78] sm:$0xff]  ;;  %851 = vmatpush.msrb.mxu1 %v2787_v7  ;;  %951 = vmatpush.msrb.mxu3 %v2789_v41 }
 0x1cc   :  { %3687 = vst [vmem:[#allocation124_spill] sm:$0xff] %v2771_v54  ;;  %991 = vmatpush.msrb.mxu0 %v2793_v28  ;;  %v2799_v54 = vld [vmem:[#allocation2 + $0x410] sm:$0xff] }
 0x1cd   :  { %3688 = vst [vmem:[#allocation125_spill] sm:$0xff] %v2773_v17  ;;  %v2801_v17 = vld [vmem:[#allocation2 + $0x418] sm:$0xff]  ;;  %812 = vmatpush.msra.mxu2 %v2799_v54 }
 0x1ce   :  { %3689 = vst [vmem:[#allocation126_spill] sm:$0xff] %v2775_v51  ;;  %v2803_v51 = vld [vmem:[#allocation2 + $0x30] sm:$0xff]  ;;  %852 = vmatpush.msrb.mxu1 %v2801_v17 }
 0x1cf   :  { %3690 = vst [vmem:[#allocation127_spill] sm:$0xff] %v2781_v25  ;;  %v2807_v25 = vld [vmem:[#allocation2 + $0x38] sm:$0xff]  ;;  %952 = vmatpush.msrb.mxu3 %v2803_v51 }
 0x1d0   :  { %3691 = vst [vmem:[#allocation128_spill] sm:$0xff] %v2793_v28  ;;  %992 = vmatpush.msrb.mxu0 %v2807_v25  ;;  %953 = vmatmul.f32.vlgmr.msrb.gmra.mxu3 %v2354_v39  ;;  %v1018_v28 = vld [vmem:[%s3413_s1] sm:$0x3f] }
 0x1d1   :  { %3692 = vst [vmem:[#allocation129_spill] sm:$0xff] %v2807_v25  ;;  %993 = vmatmul.f32.vlgmr.msrb.gmra.mxu0 %v2354_v39  ;;  %2016 = vmatpush.msk.msra.mxu3 %vm377_vm0, %v1018_v28  ;;  %v2823_v25 = vld [vmem:[%s3423_s11] sm:$0x3f]  ;;  %v2960_v39 = vld [vmem:[#allocation2 + $0x4a0] sm:$0xff] }
 0x1d2   :  { %1109 = vmatpush.msra.mxu0 %v2249_v59  ;;  %v375_v59 = vld [vmem:[%s3420_s8] sm:$0x3f] }
 0x1d3   :  { %1069 = vmatpush.msrb.mxu3 %v2247_v58  ;;  %v381_v58 = vld [vmem:[%s3421_s9] sm:$0x3f] }
 0x1d4   :  { %1110 = vmatpush.msra.mxu0 %v2255_v62  ;;  %v3696_v28 = vld [vmem:[#allocation16_spill] sm:$0xff] }
 0x1d5   :  { %1070 = vmatpush.msrb.mxu3 %v2251_v60 }
 0x1d6   :  { %1111 = vmatpush.msra.mxu0 %v2259_v0 }
 0x1d7   :  { %1071 = vmatpush.msrb.mxu3 %v2257_v63 }
 0x1d8   :  { %1112 = vmatpush.msra.mxu0 %v2265_v2  ;;  %2017 = vmatmul.msk.f32.vlgmr.msra.gmra.mxu3 %vm391_vm1, %v2823_v25  ;;  %v2856_v2 = vld [vmem:[#allocation2 + $0x7e0] sm:$0xff] }
 0x1d9   :  { %1072 = vmatpush.msrb.mxu3 %v2263_v1 }
 0x1da   :  { %1113 = vmatpush.msra.mxu0 %v2271_v4 }
 0x1db   :  { %1073 = vmatpush.msrb.mxu3 %v2269_v3  ;;  %v2858_v3 = vld [vmem:[#allocation2 + $0x7e8] sm:$0xff] }
 0x1dc   :  { %1114 = vmatpush.msra.mxu0 %v2277_v6  ;;  %v2868_v6 = vld [vmem:[#allocation2 + $0x7a8] sm:$0xff] }
 0x1dd   :  { %1074 = vmatpush.msrb.mxu3 %v2275_v5  ;;  %v2866_v5 = vld [vmem:[#allocation2 + $0x7a0] sm:$0xff] }
 0x1de   :  { %1115 = vmatpush.msra.mxu0 %v2283_v10  ;;  %v2874_v10 = vld [vmem:[#allocation2 + $0x768] sm:$0xff] }
 0x1df   :  { %1075 = vmatpush.msrb.mxu3 %v2281_v9  ;;  %v2872_v9 = vld [vmem:[#allocation2 + $0x760] sm:$0xff] }
 0x1e0   :  { %1116 = vmatpush.msra.mxu0 %v2289_v13  ;;  %v2882_v13 = vld [vmem:[#allocation2 + $0x728] sm:$0xff] }
 0x1e1   :  { %1076 = vmatpush.msrb.mxu3 %v2287_v12  ;;  %v2880_v12 = vld [vmem:[#allocation2 + $0x720] sm:$0xff] }
 0x1e2   :  { %1117 = vmatpush.msra.mxu0 %v2295_v16  ;;  %v372_v60 = vpop.f32.mrf.mxu2  ;;  %v2890_v16 = vld [vmem:[#allocation2 + $0x6e8] sm:$0xff] }
 0x1e3   :  { %v382_v62 = vmul.f32 %v381_v58, %v372_v60  ;;  %v376_v63 = vmul.f32 %v375_v59, %v372_v60  ;;  %1077 = vmatpush.msrb.mxu3 %v2293_v15  ;;  %v2888_v15 = vld [vmem:[#allocation2 + $0x6e0] sm:$0xff]  ;;  %v3699_v58 = vld [vmem:[#allocation19_spill] sm:$0xff] }
 0x1e4   :  { %1118 = vmatpush.msra.mxu0 %v2301_v19  ;;  %v2900_v19 = vld [vmem:[#allocation2 + $0x6a8] sm:$0xff]  ;;  %v3700_v59 = vld [vmem:[#allocation35_spill] sm:$0xff] }
 0x1e5   :  { %v383_v0 = vsel %vm377_vm0, %v382_v62, 0.0  ;;  %v378_v1 = vsel %vm377_vm0, %v376_v63, 0.0  ;;  %1078 = vmatpush.msrb.mxu3 %v2299_v18  ;;  %v2898_v18 = vld [vmem:[#allocation2 + $0x6a0] sm:$0xff]  ;;  %v3016_v60 = vld [vmem:[#allocation2 + $0x6f0] sm:$0xff]  ;;  %v3018_v62 = vld [vmem:[#allocation2 + $0x6f8] sm:$0xff] }
 0x1e6   :  { %1119 = vmatpush.msra.mxu0 %v2307_v22  ;;  %384 = vadd.xlane.f32.xlu0 %v383_v0  ;;  %v2906_v22 = vld [vmem:[#allocation2 + $0x668] sm:$0xff]  ;;  %v3704_v0 = vld [vmem:[#allocation39_spill] sm:$0xff] }
 0x1e7   :  { %379 = vadd.xlane.f32.xlu1 %v378_v1  ;;  %1079 = vmatpush.msrb.mxu3 %v2305_v21  ;;  %v2904_v21 = vld [vmem:[#allocation2 + $0x660] sm:$0xff]  ;;  %v3703_v63 = vld [vmem:[#allocation22_spill] sm:$0xff]  ;;  %v3024_v1 = vld [vmem:[#allocation2 + $0x6b0] sm:$0xff] }
 0x1e8   :  { %1120 = vmatpush.msra.mxu0 %v2318_v27  ;;  %v2914_v27 = vld [vmem:[#allocation2 + $0x628] sm:$0xff]  ;;  %3705 = vst [vmem:[#allocation16_spill] sm:$0xff] %v3024_v1 }
 0x1e9   :  { %1080 = vmatpush.msrb.mxu3 %v2311_v24  ;;  %v2912_v24 = vld [vmem:[#allocation2 + $0x620] sm:$0xff] }
 0x1ea   :  { %1121 = vmatpush.msra.mxu0 %v2327_v30  ;;  %v2862_v4 = vpop.f32.mrf.mxu2  ;;  %v2922_v30 = vld [vmem:[#allocation2 + $0x5e8] sm:$0xff] }
 0x1eb   :  { %733 = vmatmul.f32.vlgmr.msrb.gmra.mxu2 %v2862_v4  ;;  %773 = vmatmul.f32.vlgmr.msra.gmra.mxu1 %v2862_v4 }
 0x1ec   :  { %1122 = vmatpush.msra.mxu0 %v2334_v32  ;;  %877 = vmatpush.msrb.mxu2 %v2856_v2  ;;  %v2930_v32 = vld [vmem:[#allocation2 + $0x5a8] sm:$0xff] }
 0x1ed   :  { %917 = vmatpush.msra.mxu1 %v2858_v3  ;;  %1081 = vmatpush.msrb.mxu3 %v2323_v29  ;;  %v2920_v29 = vld [vmem:[#allocation2 + $0x5e0] sm:$0xff] }
 0x1ee   :  { %1123 = vmatpush.msra.mxu0 %v2340_v34  ;;  %878 = vmatpush.msrb.mxu2 %v2866_v5  ;;  %v2938_v34 = vld [vmem:[#allocation2 + $0x568] sm:$0xff] }
 0x1ef   :  { %918 = vmatpush.msra.mxu1 %v2868_v6  ;;  %1082 = vmatpush.msrb.mxu3 %v2330_v31  ;;  %v2928_v31 = vld [vmem:[#allocation2 + $0x5a0] sm:$0xff] }
 0x1f0   :  { %1124 = vmatpush.msra.mxu0 %v2346_v36  ;;  %879 = vmatpush.msrb.mxu2 %v2872_v9  ;;  %v2946_v36 = vld [vmem:[#allocation2 + $0x528] sm:$0xff] }
 0x1f1   :  { %919 = vmatpush.msra.mxu1 %v2874_v10  ;;  %1083 = vmatpush.msrb.mxu3 %v2337_v33  ;;  %v2936_v33 = vld [vmem:[#allocation2 + $0x560] sm:$0xff] }
 0x1f2   :  { %1189 = vmatpush.msrb.mxu0 %v2351_v38  ;;  %880 = vmatpush.msrb.mxu2 %v2880_v12  ;;  %v2954_v38 = vld [vmem:[#allocation2 + $0x4e8] sm:$0xff] }
 0x1f3   :  { %920 = vmatpush.msra.mxu1 %v2882_v13  ;;  %813 = vmatmul.f32.vlgmr.msra.gmra.mxu2 %v2862_v4 }
 0x1f4   :  { %1190 = vmatpush.msrb.mxu0 %v2361_v43  ;;  %853 = vmatmul.f32.vlgmr.msrb.gmra.mxu1 %v2862_v4  ;;  %v2968_v43 = vld [vmem:[#allocation2 + $0x460] sm:$0xff] }
 0x1f5   :  { %881 = vmatpush.msrb.mxu2 %v2888_v15  ;;  %921 = vmatpush.msra.mxu1 %v2890_v16 }
 0x1f6   :  { %1191 = vmatpush.msrb.mxu0 %v2367_v46  ;;  %1084 = vmatpush.msrb.mxu3 %v2343_v35  ;;  %v2944_v35 = vld [vmem:[#allocation2 + $0x520] sm:$0xff] }
 0x1f7   :  { %882 = vmatpush.msrb.mxu2 %v2898_v18  ;;  %922 = vmatpush.msra.mxu1 %v2900_v19  ;;  %v2976_v46 = vld [vmem:[#allocation2 + $0x420] sm:$0xff] }
 0x1f8   :  { %1192 = vmatpush.msrb.mxu0 %v2374_v49  ;;  %1149 = vmatpush.msra.mxu3 %v2349_v37  ;;  %v2952_v37 = vld [vmem:[#allocation2 + $0x4e0] sm:$0xff]  ;;  %v3693_v49 = vld [vmem:[#allocation23_spill] sm:$0xff] }
 0x1f9   :  { %883 = vmatpush.msrb.mxu2 %v2904_v21  ;;  %923 = vmatpush.msra.mxu1 %v2906_v22 }
 0x1fa   :  { %1193 = vmatpush.msrb.mxu0 %v2381_v53  ;;  %1150 = vmatpush.msra.mxu3 %v2359_v42  ;;  %v2962_v42 = vld [vmem:[#allocation2 + $0x4a8] sm:$0xff]  ;;  %v2986_v53 = vld [vmem:[#allocation2 + $0x7f8] sm:$0xff] }
 0x1fb   :  { %884 = vmatpush.msrb.mxu2 %v2912_v24  ;;  %924 = vmatpush.msra.mxu1 %v2914_v27 }
 0x1fc   :  { %1194 = vmatpush.msrb.mxu0 %v2387_v57  ;;  %1151 = vmatpush.msra.mxu3 %v2365_v45  ;;  %v2970_v45 = vld [vmem:[#allocation2 + $0x468] sm:$0xff]  ;;  %v3695_v57 = vld [vmem:[#allocation27_spill] sm:$0xff] }
 0x1fd   :  { %885 = vmatpush.msrb.mxu2 %v2920_v29  ;;  %925 = vmatpush.msra.mxu1 %v2922_v30  ;;  %3702 = vst [vmem:[#allocation27_spill] sm:$0xff] %v3018_v62 }
 0x1fe   :  { %1195 = vmatpush.msrb.mxu0 %v2393_v11  ;;  %1152 = vmatpush.msra.mxu3 %v2372_v48  ;;  %v2978_v48 = vld [vmem:[#allocation2 + $0x428] sm:$0xff]  ;;  %v2996_v11 = vld [vmem:[#allocation2 + $0x7b8] sm:$0xff] }
 0x1ff   :  { %886 = vmatpush.msrb.mxu2 %v2928_v31  ;;  %926 = vmatpush.msra.mxu1 %v2930_v32 }
 0x200   :  { %1196 = vmatpush.msrb.mxu0 %v2403_v23  ;;  %1153 = vmatpush.msra.mxu3 %v2379_v52  ;;  %v2984_v52 = vld [vmem:[#allocation2 + $0x7f0] sm:$0xff]  ;;  %v3002_v23 = vld [vmem:[#allocation2 + $0x778] sm:$0xff] }
 0x201   :  { %887 = vmatpush.msrb.mxu2 %v2936_v33  ;;  %927 = vmatpush.msra.mxu1 %v2938_v34 }
 0x202   :  { %1197 = vmatpush.msrb.mxu0 %v2413_v40  ;;  %1154 = vmatpush.msra.mxu3 %v2385_v56  ;;  %v3694_v56 = vld [vmem:[#allocation13_spill] sm:$0xff]  ;;  %v3697_v40 = vld [vmem:[#allocation31_spill] sm:$0xff] }
 0x203   :  { %888 = vmatpush.msrb.mxu2 %v2944_v35  ;;  %928 = vmatpush.msra.mxu1 %v2946_v36  ;;  %3701 = vst [vmem:[#allocation13_spill] sm:$0xff] %v3016_v60 }
 0x204   :  { %1198 = vmatpush.msrb.mxu0 %v2425_v50  ;;  %1155 = vmatpush.msra.mxu3 %v2391_v8  ;;  %v2994_v8 = vld [vmem:[#allocation2 + $0x7b0] sm:$0xff] }
 0x205   :  { %889 = vmatpush.msrb.mxu2 %v2952_v37  ;;  %929 = vmatpush.msra.mxu1 %v2954_v38  ;;  %v3008_v50 = vld [vmem:[#allocation2 + $0x730] sm:$0xff] }
 0x206   :  { %1199 = vmatpush.msrb.mxu0 %v2437_v61  ;;  %1156 = vmatpush.msra.mxu3 %v2401_v20  ;;  %v3000_v20 = vld [vmem:[#allocation2 + $0x770] sm:$0xff]  ;;  %v3010_v61 = vld [vmem:[#allocation2 + $0x738] sm:$0xff] }
 0x207   :  { %890 = vmatpush.msrb.mxu2 %v2960_v39  ;;  %930 = vmatpush.msra.mxu1 %v2962_v42  ;;  %3698 = vst [vmem:[#allocation23_spill] sm:$0xff] %v3010_v61 }
 0x208   :  { %1200 = vmatpush.msrb.mxu0 %v3693_v49  ;;  %1157 = vmatpush.msra.mxu3 %v3694_v56  ;;  %v3026_v49 = vld [vmem:[#allocation2 + $0x6b8] sm:$0xff]  ;;  %v3707_v56 = vld [vmem:[#allocation26_spill] sm:$0xff] }
 0x209   :  { %891 = vmatpush.msrb.mxu2 %v2968_v43  ;;  %931 = vmatpush.msra.mxu1 %v2970_v45  ;;  %3706 = vst [vmem:[#allocation31_spill] sm:$0xff] %v3026_v49 }
 0x20a   :  { %1201 = vmatpush.msrb.mxu0 %v3695_v57  ;;  %1158 = vmatpush.msra.mxu3 %v3696_v28  ;;  %v3031_v57 = vld [vmem:[#allocation2 + $0x670] sm:$0xff]  ;;  %v3033_v28 = vld [vmem:[#allocation2 + $0x678] sm:$0xff] }
 0x20b   :  { %892 = vmatpush.msrb.mxu2 %v2976_v46  ;;  %932 = vmatpush.msra.mxu1 %v2978_v48  ;;  %3708 = vst [vmem:[#allocation19_spill] sm:$0xff] %v3031_v57 }
 0x20c   :  { %893 = vmatmul.f32.vlgmr.msrb.gmra.mxu2 %v2862_v4  ;;  %933 = vmatmul.f32.vlgmr.msra.gmra.mxu1 %v2862_v4  ;;  %3709 = vst [vmem:[#allocation35_spill] sm:$0xff] %v3033_v28 }
 0x20d   :  { %957 = vmatpush.msra.mxu2 %v2984_v52  ;;  %997 = vmatpush.msrb.mxu1 %v2986_v53 }
 0x20e   :  { %1202 = vmatpush.msrb.mxu0 %v3697_v40  ;;  %1159 = vmatpush.msra.mxu3 %v3699_v58  ;;  %v3710_v40 = vld [vmem:[#allocation30_spill] sm:$0xff]  ;;  %v3038_v58 = vld [vmem:[#allocation2 + $0x630] sm:$0xff] }
 0x20f   :  { %958 = vmatpush.msra.mxu2 %v2994_v8  ;;  %998 = vmatpush.msrb.mxu1 %v2996_v11  ;;  %3711 = vst [vmem:[#allocation22_spill] sm:$0xff] %v3038_v58 }
 0x210   :  { %1203 = vmatpush.msrb.mxu0 %v3700_v59  ;;  %1160 = vmatpush.msra.mxu3 %v3703_v63  ;;  %v3040_v59 = vld [vmem:[#allocation2 + $0x638] sm:$0xff]  ;;  %v3713_v63 = vld [vmem:[#allocation34_spill] sm:$0xff] }
 0x211   :  { %959 = vmatpush.msra.mxu2 %v3000_v20  ;;  %999 = vmatpush.msrb.mxu1 %v3002_v23  ;;  %3712 = vst [vmem:[#allocation39_spill] sm:$0xff] %v3040_v59 }
 0x212   :  { %1204 = vmatpush.msrb.mxu0 %v3704_v0  ;;  %1161 = vmatpush.msra.mxu3 %v3707_v56  ;;  %v3045_v0 = vld [vmem:[#allocation2 + $0x5f0] sm:$0xff]  ;;  %v3047_v56 = vld [vmem:[#allocation2 + $0x5f8] sm:$0xff] }
 0x213   :  { %960 = vmatpush.msra.mxu2 %v3008_v50  ;;  %1000 = vmatpush.msrb.mxu1 %v3010_v61  ;;  %3714 = vst [vmem:[#allocation26_spill] sm:$0xff] %v3045_v0  ;;  %v3774_v61 = vld [vmem:[#allocation48_spill] sm:$0xff] }
 0x214   :  { %1162 = vmatpush.msra.mxu3 %v3710_v40  ;;  %3715 = vst [vmem:[#allocation30_spill] sm:$0xff] %v3047_v56  ;;  %v3052_v40 = vld [vmem:[#allocation2 + $0x5b0] sm:$0xff] }
 0x215   :  { %961 = vmatpush.msra.mxu2 %v3016_v60  ;;  %1001 = vmatpush.msrb.mxu1 %v3018_v62  ;;  %v3716_v62 = vld [vmem:[#allocation38_spill] sm:$0xff]  ;;  %3717 = vst [vmem:[#allocation34_spill] sm:$0xff] %v3052_v40  ;;  %v3756_v60 = vld [vmem:[#allocation56_spill] sm:$0xff] }
 0x216   :  { %1163 = vmatpush.msra.mxu3 %v3713_v63  ;;  %v3058_v63 = vld [vmem:[#allocation2 + $0x570] sm:$0xff] }
 0x217   :  { %962 = vmatpush.msra.mxu2 %v3024_v1  ;;  %1002 = vmatpush.msrb.mxu1 %v3026_v49  ;;  %v3054_v49 = vld [vmem:[#allocation2 + $0x5b8] sm:$0xff]  ;;  %3719 = vst [vmem:[#allocation130_spill] sm:$0xff] %v3058_v63 }
 0x218   :  { %1164 = vmatpush.msra.mxu3 %v3716_v62  ;;  %3718 = vst [vmem:[#allocation38_spill] sm:$0xff] %v3054_v49  ;;  %v3064_v62 = vld [vmem:[#allocation2 + $0x530] sm:$0xff] }
 0x219   :  { %963 = vmatpush.msra.mxu2 %v3031_v57  ;;  %1003 = vmatpush.msrb.mxu1 %v3033_v28  ;;  %v3060_v28 = vld [vmem:[#allocation2 + $0x578] sm:$0xff]  ;;  %3721 = vst [vmem:[#allocation132_spill] sm:$0xff] %v3064_v62 }
 0x21a   :  { %3720 = vst [vmem:[#allocation131_spill] sm:$0xff] %v3060_v28  ;;  %v3744_v57 = vld [vmem:[#allocation28_spill] sm:$0xff] }
 0x21b   :  { %964 = vmatpush.msra.mxu2 %v3038_v58  ;;  %1004 = vmatpush.msrb.mxu1 %v3040_v59  ;;  %v3066_v58 = vld [vmem:[#allocation2 + $0x538] sm:$0xff]  ;;  %v3070_v59 = vld [vmem:[#allocation2 + $0x4f0] sm:$0xff] }
 0x21c   :  { %3722 = vst [vmem:[#allocation133_spill] sm:$0xff] %v3066_v58 }
 0x21d   :  { %965 = vmatpush.msra.mxu2 %v3045_v0  ;;  %1005 = vmatpush.msrb.mxu1 %v3047_v56  ;;  %3723 = vst [vmem:[#allocation134_spill] sm:$0xff] %v3070_v59  ;;  %v3072_v0 = vld [vmem:[#allocation2 + $0x4f8] sm:$0xff]  ;;  %v3076_v56 = vld [vmem:[#allocation2 + $0x4b0] sm:$0xff] }
 0x21e   :  { %3724 = vst [vmem:[#allocation135_spill] sm:$0xff] %v3072_v0 }
 0x21f   :  { %966 = vmatpush.msra.mxu2 %v3052_v40  ;;  %1006 = vmatpush.msrb.mxu1 %v3054_v49  ;;  %3725 = vst [vmem:[#allocation136_spill] sm:$0xff] %v3076_v56  ;;  %v3078_v40 = vld [vmem:[#allocation2 + $0x4b8] sm:$0xff]  ;;  %v3082_v49 = vld [vmem:[#allocation2 + $0x470] sm:$0xff] }
 0x220   :  { %3726 = vst [vmem:[#allocation137_spill] sm:$0xff] %v3078_v40 }
 0x221   :  { %967 = vmatpush.msra.mxu2 %v3058_v63  ;;  %1007 = vmatpush.msrb.mxu1 %v3060_v28  ;;  %3727 = vst [vmem:[#allocation138_spill] sm:$0xff] %v3082_v49  ;;  %v3084_v63 = vld [vmem:[#allocation2 + $0x478] sm:$0xff]  ;;  %v3088_v28 = vld [vmem:[#allocation2 + $0x430] sm:$0xff] }
 0x222   :  { %3728 = vst [vmem:[#allocation139_spill] sm:$0xff] %v3084_v63 }
 0x223   :  { %968 = vmatpush.msra.mxu2 %v3064_v62  ;;  %1008 = vmatpush.msrb.mxu1 %v3066_v58  ;;  %3729 = vst [vmem:[#allocation140_spill] sm:$0xff] %v3088_v28  ;;  %v3090_v62 = vld [vmem:[#allocation2 + $0x438] sm:$0xff]  ;;  %v2056_v58 = vld [vmem:[#allocation2 + $0x740] sm:$0xff] }
 0x224   :  { %3730 = vst [vmem:[#allocation141_spill] sm:$0xff] %v3090_v62 }
 0x225   :  { %969 = vmatpush.msra.mxu2 %v3070_v59  ;;  %1009 = vmatpush.msrb.mxu1 %v3072_v0  ;;  %v1019_v0 = vld [vmem:[%s3413_s1 + $0x8] sm:$0x3f]  ;;  %v2055_v59 = vld [vmem:[#allocation2 + $0x748] sm:$0xff] }
 0x227   :  { %970 = vmatpush.msra.mxu2 %v3076_v56  ;;  %1010 = vmatpush.msrb.mxu1 %v3078_v40  ;;  %v2051_v40 = vld [vmem:[#allocation2 + $0x7c8] sm:$0xff]  ;;  %v2052_v56 = vld [vmem:[#allocation2 + $0x7c0] sm:$0xff] }
 0x229   :  { %971 = vmatpush.msra.mxu2 %v3082_v49  ;;  %1011 = vmatpush.msrb.mxu1 %v3084_v63  ;;  %v2053_v49 = vld [vmem:[#allocation2 + $0x788] sm:$0xff]  ;;  %v2054_v63 = vld [vmem:[#allocation2 + $0x780] sm:$0xff] }
 0x22b   :  { %972 = vmatpush.msra.mxu2 %v3088_v28  ;;  %1012 = vmatpush.msrb.mxu1 %v3090_v62  ;;  %v3102_v28 = vpop.f32.mrf.mxu3  ;;  %v2057_v62 = vld [vmem:[#allocation2 + $0x708] sm:$0xff] }
 0x22c   :  { %973 = vmatmul.f32.vlgmr.msra.gmra.mxu2 %v2862_v4  ;;  %1013 = vmatmul.f32.vlgmr.msrb.gmra.mxu1 %v2862_v4  ;;  %v2058_v4 = vld [vmem:[#allocation2 + $0x700] sm:$0xff] }
 0x22d   :  { %2018 = vmatpush.msk.msrb.mxu2 %vm377_vm0, %v1019_v0  ;;  %1129 = vmatpush.msra.mxu1 %v2051_v40  ;;  %v2059_v0 = vld [vmem:[#allocation2 + $0x6c8] sm:$0xff]  ;;  %v3732_v40 = vld [vmem:[#allocation9_spill] sm:$0xff] }
 0x22f   :  { %1089 = vmatpush.msra.mxu2 %v2052_v56  ;;  %1130 = vmatpush.msra.mxu1 %v2053_v49  ;;  %v2060_v56 = vld [vmem:[#allocation2 + $0x6c0] sm:$0xff]  ;;  %v3731_v49 = vld [vmem:[#allocation10_spill] sm:$0xff] }
 0x231   :  { %1090 = vmatpush.msra.mxu2 %v2054_v63  ;;  %1131 = vmatpush.msra.mxu1 %v2055_v59  ;;  %v3733_v59 = vld [vmem:[#allocation12_spill] sm:$0xff]  ;;  %v3735_v63 = vld [vmem:[#allocation15_spill] sm:$0xff] }
 0x233   :  { %1091 = vmatpush.msra.mxu2 %v2056_v58  ;;  %1132 = vmatpush.msra.mxu1 %v2057_v62  ;;  %v3734_v58 = vld [vmem:[#allocation11_spill] sm:$0xff]  ;;  %v2146_v62 = vmov 0  }
 0x234   :  { %2019 = vmatmul.msk.f32.vlgmr.msrb.gmra.mxu2 %vm391_vm1, %v2823_v25  ;;  %2030 = vset.pattern.permute.xlu1 %v2146_v62  ;;  %v3111_v25 = vpop.f32.mrf.mxu3 }
 0x235   :  { %1092 = vmatpush.msra.mxu2 %v2058_v4  ;;  %1133 = vmatpush.msra.mxu1 %v2059_v0  ;;  %v3736_v4 = vld [vmem:[#allocation14_spill] sm:$0xff] }
 0x236   :  { %2031 = vset.pattern.permute.xlu0 %v2146_v62  ;;  %v3737_v0 = vld [vmem:[#allocation18_spill] sm:$0xff]  ;;  %v3745_v62 = vld [vmem:[#allocation33_spill] sm:$0xff] }
 0x237   :  { %1093 = vmatpush.msra.mxu2 %v2060_v56  ;;  %1134 = vmatpush.msra.mxu1 %v3731_v49  ;;  %v3738_v56 = vld [vmem:[#allocation17_spill] sm:$0xff] }
 0x238   :  { %v3739_v49 = vld [vmem:[#allocation21_spill] sm:$0xff] }
 0x239   :  { %1094 = vmatpush.msra.mxu2 %v3732_v40  ;;  %1135 = vmatpush.msra.mxu1 %v3733_v59  ;;  %v3740_v40 = vld [vmem:[#allocation20_spill] sm:$0xff]  ;;  %v3741_v59 = vld [vmem:[#allocation25_spill] sm:$0xff] }
 0x23b   :  { %1095 = vmatpush.msra.mxu2 %v3734_v58  ;;  %1136 = vmatpush.msra.mxu1 %v3735_v63  ;;  %v3742_v58 = vld [vmem:[#allocation24_spill] sm:$0xff]  ;;  %v3743_v63 = vld [vmem:[#allocation29_spill] sm:$0xff] }
 0x23c   :  { %v3123_v1 = vpop.f32.mrf.mxu3 }
 0x23d   :  { %1096 = vmatpush.msra.mxu2 %v3736_v4  ;;  %1137 = vmatpush.msra.mxu1 %v3737_v0  ;;  %v3746_v4 = vld [vmem:[#allocation32_spill] sm:$0xff]  ;;  %v3747_v0 = vld [vmem:[#allocation37_spill] sm:$0xff] }
 0x23f   :  { %1097 = vmatpush.msra.mxu2 %v3738_v56  ;;  %1138 = vmatpush.msra.mxu1 %v3739_v49  ;;  %v3748_v56 = vld [vmem:[#allocation36_spill] sm:$0xff]  ;;  %v3749_v49 = vld [vmem:[#allocation43_spill] sm:$0xff] }
 0x241   :  { %1098 = vmatpush.msra.mxu2 %v3740_v40  ;;  %1139 = vmatpush.msra.mxu1 %v3741_v59  ;;  %v3750_v40 = vld [vmem:[#allocation42_spill] sm:$0xff]  ;;  %v3751_v59 = vld [vmem:[#allocation47_spill] sm:$0xff] }
 0x243   :  { %1099 = vmatpush.msra.mxu2 %v3742_v58  ;;  %1140 = vmatpush.msra.mxu1 %v3743_v63  ;;  %v3752_v58 = vld [vmem:[#allocation53_spill] sm:$0xff]  ;;  %v3753_v63 = vld [vmem:[#allocation46_spill] sm:$0xff] }
 0x245   :  { %1100 = vmatpush.msra.mxu2 %v3744_v57  ;;  %1141 = vmatpush.msra.mxu1 %v3745_v62  ;;  %v3754_v57 = vld [vmem:[#allocation50_spill] sm:$0xff]  ;;  %v3755_v62 = vld [vmem:[#allocation57_spill] sm:$0xff] }
 0x247   :  { %1101 = vmatpush.msra.mxu2 %v3746_v4  ;;  %1142 = vmatpush.msra.mxu1 %v3747_v0  ;;  %v3757_v4 = vld [vmem:[#allocation61_spill] sm:$0xff] }
 0x249   :  { %1102 = vmatpush.msra.mxu2 %v3748_v56  ;;  %1143 = vmatpush.msra.mxu1 %v3749_v49  ;;  %v3759_v56 = vld [vmem:[#allocation60_spill] sm:$0xff]  ;;  %v3760_v49 = vld [vmem:[#allocation65_spill] sm:$0xff] }
 0x24b   :  { %1103 = vmatpush.msra.mxu2 %v3750_v40  ;;  %1144 = vmatpush.msra.mxu1 %v3751_v59  ;;  %v3761_v40 = vld [vmem:[#allocation64_spill] sm:$0xff]  ;;  %v3762_v59 = vld [vmem:[#allocation69_spill] sm:$0xff] }
 0x24d   :  { %1209 = vmatpush.msrb.mxu1 %v3752_v58  ;;  %1104 = vmatpush.msra.mxu2 %v3753_v63  ;;  %v3763_v58 = vld [vmem:[#allocation68_spill] sm:$0xff]  ;;  %v3764_v63 = vld [vmem:[#allocation73_spill] sm:$0xff] }
 0x24f   :  { %1169 = vmatpush.msrb.mxu2 %v3754_v57  ;;  %1210 = vmatpush.msrb.mxu1 %v3755_v62  ;;  %v3765_v57 = vld [vmem:[#allocation72_spill] sm:$0xff]  ;;  %v3766_v62 = vld [vmem:[#allocation77_spill] sm:$0xff] }
 0x251   :  { %1170 = vmatpush.msrb.mxu2 %v3756_v60  ;;  %1211 = vmatpush.msrb.mxu1 %v3757_v4  ;;  %v386_v60 = vld [vmem:[%s3424_s12] sm:$0x3f] }
 0x253   :  { %v3137_v0 = vpop.f32.mrf.mxu3  ;;  %1171 = vmatpush.msrb.mxu2 %v3759_v56  ;;  %1212 = vmatpush.msrb.mxu1 %v3760_v49 }
 0x254   :  { %3758 = vst [vmem:[#allocation10_spill] sm:$0xff] %v3137_v0  ;;  %v3773_v0 = vld [vmem:[#allocation80_spill] sm:$0xff] }
 0x255   :  { %1172 = vmatpush.msrb.mxu2 %v3761_v40  ;;  %1213 = vmatpush.msrb.mxu1 %v3762_v59  ;;  %v3767_v40 = vld [vmem:[#allocation40_spill] sm:$0xff]  ;;  %v3768_v59 = vld [vmem:[#allocation41_spill] sm:$0xff] }
 0x257   :  { %1173 = vmatpush.msrb.mxu2 %v3763_v58  ;;  %1214 = vmatpush.msrb.mxu1 %v3764_v63  ;;  %v3769_v58 = vld [vmem:[#allocation76_spill] sm:$0xff]  ;;  %v3770_v63 = vld [vmem:[#allocation81_spill] sm:$0xff] }
 0x259   :  { %1174 = vmatpush.msrb.mxu2 %v3765_v57  ;;  %1215 = vmatpush.msrb.mxu1 %v3766_v62  ;;  %v385_v56 = vpop.xlane.xlu0 %384  ;;  %v3771_v57 = vld [vmem:[#allocation44_spill] sm:$0xff]  ;;  %v3772_v62 = vld [vmem:[#allocation45_spill] sm:$0xff] }
 0x25a   :  { %v387_v49 = vadd.f32 %v386_v60, %v385_v56  ;;  %v3775_v60 = vld [vmem:[#allocation49_spill] sm:$0xff]  ;;  %v3776_v56 = vld [vmem:[#allocation84_spill] sm:$0xff] }
 0x25b   :  { %v3150_v4 = vpop.f32.mrf.mxu3  ;;  %1175 = vmatpush.msrb.mxu2 %v3769_v58  ;;  %1216 = vmatpush.msrb.mxu1 %v3770_v63  ;;  %v3783_v58 = vld [vmem:[#allocation59_spill] sm:$0xff]  ;;  %v3784_v63 = vld [vmem:[#allocation90_spill] sm:$0xff] }
 0x25c   :  { %1085 = vmatmul.f32.vlgmr.msrb.gmra.mxu3 %v3150_v4  ;;  %1125 = vmatmul.f32.vlgmr.msra.gmra.mxu0 %v3150_v4 }
 0x25d   :  { %1229 = vmatpush.msrb.mxu3 %v3767_v40  ;;  %1269 = vmatpush.msra.mxu0 %v3768_v59  ;;  %v3777_v40 = vld [vmem:[#allocation51_spill] sm:$0xff]  ;;  %v3778_v59 = vld [vmem:[#allocation52_spill] sm:$0xff] }
 0x25e   :  { %1407 = vperm.xlu1 %2030, %v387_v49   ;;  %1176 = vmatpush.msrb.mxu2 %v3773_v0  ;;  %v3779_v49 = vld [vmem:[#allocation54_spill] sm:$0xff]  ;;  %v3780_v0 = vld [vmem:[#allocation55_spill] sm:$0xff] }
 0x25f   :  { %1230 = vmatpush.msrb.mxu3 %v3771_v57  ;;  %1270 = vmatpush.msra.mxu0 %v3772_v62  ;;  %v3786_v57 = vld [vmem:[#allocation118_spill] sm:$0xff]  ;;  %v3787_v62 = vld [vmem:[#allocation63_spill] sm:$0xff] }
 0x260   :  { %1217 = vmatpush.msrb.mxu1 %v2639_v44  ;;  %1177 = vmatpush.msrb.mxu2 %v3776_v56  ;;  %v3782_v44 = vld [vmem:[#allocation58_spill] sm:$0xff] }
 0x261   :  { %1231 = vmatpush.msrb.mxu3 %v3774_v61  ;;  %1271 = vmatpush.msra.mxu0 %v3775_v60  ;;  %v3781_v61 = vld [vmem:[#allocation87_spill] sm:$0xff]  ;;  %v3788_v60 = vld [vmem:[#allocation117_spill] sm:$0xff]  ;;  %v3789_v56 = vld [vmem:[#allocation66_spill] sm:$0xff] }
 0x262   :  { %1218 = vmatpush.msrb.mxu1 %v2651_v47  ;;  %1178 = vmatpush.msrb.mxu2 %v3781_v61  ;;  %v3785_v47 = vld [vmem:[#allocation62_spill] sm:$0xff]  ;;  %v3795_v61 = vld [vmem:[#allocation71_spill] sm:$0xff] }
 0x263   :  { %1232 = vmatpush.msrb.mxu3 %v3777_v40  ;;  %1272 = vmatpush.msra.mxu0 %v3778_v59  ;;  %v3790_v40 = vld [vmem:[#allocation122_spill] sm:$0xff]  ;;  %v3791_v59 = vld [vmem:[#allocation67_spill] sm:$0xff] }
 0x264   :  { %1165 = vmatmul.f32.vlgmr.msra.gmra.mxu3 %v3150_v4  ;;  %1205 = vmatmul.f32.vlgmr.msrb.gmra.mxu0 %v3150_v4 }
 0x265   :  { %1233 = vmatpush.msrb.mxu3 %v3779_v49  ;;  %1273 = vmatpush.msra.mxu0 %v3780_v0  ;;  %v3792_v49 = vld [vmem:[#allocation121_spill] sm:$0xff]  ;;  %v3794_v0 = vld [vmem:[#allocation126_spill] sm:$0xff] }
 0x266   :  { %1219 = vmatpush.msrb.mxu1 %v2663_v26  ;;  %1179 = vmatpush.msrb.mxu2 %v3784_v63  ;;  %v3793_v26 = vld [vmem:[#allocation70_spill] sm:$0xff]  ;;  %v3798_v63 = vld [vmem:[#allocation75_spill] sm:$0xff] }
 0x267   :  { %1234 = vmatpush.msrb.mxu3 %v3782_v44  ;;  %1274 = vmatpush.msra.mxu0 %v3783_v58  ;;  %v3796_v44 = vld [vmem:[#allocation125_spill] sm:$0xff]  ;;  %v3797_v58 = vld [vmem:[#allocation74_spill] sm:$0xff] }
 0x268   :  { %1220 = vmatpush.msrb.mxu1 %v3786_v57  ;;  %1180 = vmatpush.msrb.mxu2 %v3788_v60  ;;  %v3799_v57 = vld [vmem:[#allocation78_spill] sm:$0xff]  ;;  %v3800_v60 = vld [vmem:[#allocation79_spill] sm:$0xff] }
 0x269   :  { %1235 = vmatpush.msrb.mxu3 %v3785_v47  ;;  %1275 = vmatpush.msra.mxu0 %v3787_v62 }
 0x26a   :  { %1221 = vmatpush.msrb.mxu1 %v3790_v40  ;;  %1181 = vmatpush.msrb.mxu2 %v3792_v49  ;;  %v3802_v40 = vld [vmem:[#allocation83_spill] sm:$0xff]  ;;  %v3806_v49 = vld [vmem:[#allocation89_spill] sm:$0xff] }
 0x26b   :  { %1236 = vmatpush.msrb.mxu3 %v3789_v56  ;;  %1276 = vmatpush.msra.mxu0 %v3791_v59  ;;  %v3801_v56 = vld [vmem:[#allocation82_spill] sm:$0xff] }
 0x26c   :  { %1222 = vmatpush.msrb.mxu1 %v3794_v0  ;;  %1182 = vmatpush.msrb.mxu2 %v3796_v44  ;;  %v3804_v59 = vld [vmem:[#allocation86_spill] sm:$0xff]  ;;  %v3808_v0 = vld [vmem:[#allocation92_spill] sm:$0xff]  ;;  %v3811_v44 = vld [vmem:[#allocation95_spill] sm:$0xff] }
 0x26d   :  { %1237 = vmatpush.msrb.mxu3 %v3793_v26  ;;  %1277 = vmatpush.msra.mxu0 %v3795_v61  ;;  %v3807_v26 = vld [vmem:[#allocation91_spill] sm:$0xff]  ;;  %v3810_v61 = vld [vmem:[#allocation94_spill] sm:$0xff] }
 0x26e   :  { %1223 = vmatpush.msrb.mxu1 %v2787_v7  ;;  %1183 = vmatpush.msrb.mxu2 %v2785_v14  ;;  %v734_v47 = vpop.f32.mrf.mxu2  ;;  %v3803_v7 = vld [vmem:[#allocation85_spill] sm:$0xff]  ;;  %v3805_v14 = vld [vmem:[#allocation88_spill] sm:$0xff] }
 0x26f   :  { %1238 = vmatpush.msrb.mxu3 %v3797_v58  ;;  %1278 = vmatpush.msra.mxu0 %v3798_v63  ;;  %v3196_v62 = vadd.f32 %v734_v47, %v3102_v28  ;;  %v3812_v58 = vld [vmem:[#allocation96_spill] sm:$0xff]  ;;  %v3813_v63 = vld [vmem:[#allocation97_spill] sm:$0xff]  ;;  %v3814_v47 = vld [vmem:[#allocation98_spill] sm:$0xff] }
 0x270   :  { %1224 = vmatpush.msrb.mxu1 %v2801_v17  ;;  %1184 = vmatpush.msrb.mxu2 %v2799_v54  ;;  %v3809_v54 = vld [vmem:[#allocation93_spill] sm:$0xff] }
 0x271   :  { %1239 = vmatpush.msrb.mxu3 %v3799_v57  ;;  %1279 = vmatpush.msra.mxu0 %v3800_v60  ;;  %v3816_v57 = vld [vmem:[#allocation100_spill] sm:$0xff]  ;;  %v3817_v60 = vld [vmem:[#allocation101_spill] sm:$0xff] }
 0x273   :  { %1240 = vmatpush.msrb.mxu3 %v3801_v56  ;;  %1280 = vmatpush.msra.mxu0 %v3802_v40  ;;  %v3818_v56 = vld [vmem:[#allocation102_spill] sm:$0xff]  ;;  %v3819_v40 = vld [vmem:[#allocation103_spill] sm:$0xff] }
 0x275   :  { %1241 = vmatpush.msrb.mxu3 %v3803_v7  ;;  %1281 = vmatpush.msra.mxu0 %v3804_v59  ;;  %v3820_v7 = vld [vmem:[#allocation104_spill] sm:$0xff]  ;;  %v3821_v59 = vld [vmem:[#allocation105_spill] sm:$0xff] }
 0x276   :  { %v814_v17 = vpop.f32.mrf.mxu2 }
 0x277   :  { %1242 = vmatpush.msrb.mxu3 %v3805_v14  ;;  %1282 = vmatpush.msra.mxu0 %v3806_v49  ;;  %v3208_v28 = vadd.f32 %v814_v17, %v3111_v25  ;;  %v3815_v25 = vld [vmem:[#allocation99_spill] sm:$0xff]  ;;  %v3822_v14 = vld [vmem:[#allocation106_spill] sm:$0xff]  ;;  %v3824_v17 = vld [vmem:[#allocation108_spill] sm:$0xff] }
 0x278   :  { %v3823_v49 = vld [vmem:[#allocation107_spill] sm:$0xff] }
 0x279   :  { %1243 = vmatpush.msrb.mxu3 %v3807_v26  ;;  %1283 = vmatpush.msra.mxu0 %v3808_v0  ;;  %v3825_v26 = vld [vmem:[#allocation109_spill] sm:$0xff]  ;;  %v3826_v0 = vld [vmem:[#allocation110_spill] sm:$0xff] }
 0x27b   :  { %1244 = vmatpush.msrb.mxu3 %v3809_v54  ;;  %1284 = vmatpush.msra.mxu0 %v3810_v61  ;;  %v3827_v54 = vld [vmem:[#allocation111_spill] sm:$0xff]  ;;  %v3232_v61 = vpop.f32.mrf.mxu0 }
 0x27c   :  { %1245 = vmatmul.f32.vlgmr.msrb.gmra.mxu3 %v3150_v4  ;;  %1285 = vmatmul.f32.vlgmr.msra.gmra.mxu0 %v3150_v4 }
 0x27d   :  { %1309 = vmatpush.msra.mxu3 %v3811_v44  ;;  %1349 = vmatpush.msrb.mxu0 %v3812_v58  ;;  %v3828_v44 = vld [vmem:[#allocation112_spill] sm:$0xff]  ;;  %v3829_v58 = vld [vmem:[#allocation113_spill] sm:$0xff] }
 0x27f   :  { %1310 = vmatpush.msra.mxu3 %v3813_v63  ;;  %1350 = vmatpush.msrb.mxu0 %v3814_v47  ;;  %v3830_v63 = vld [vmem:[#allocation114_spill] sm:$0xff]  ;;  %v3831_v47 = vld [vmem:[#allocation115_spill] sm:$0xff] }
 0x281   :  { %1311 = vmatpush.msra.mxu3 %v3815_v25  ;;  %1351 = vmatpush.msrb.mxu0 %v3816_v57  ;;  %v3238_v25 = vpop.f32.mrf.mxu1 }
 0x283   :  { %1312 = vmatpush.msra.mxu3 %v3817_v60  ;;  %1352 = vmatpush.msrb.mxu0 %v3818_v56  ;;  %v3832_v60 = vld [vmem:[#allocation116_spill] sm:$0xff] }
 0x285   :  { %1313 = vmatpush.msra.mxu3 %v3819_v40  ;;  %1353 = vmatpush.msrb.mxu0 %v3820_v7  ;;  %v3833_v40 = vld [vmem:[#allocation119_spill] sm:$0xff]  ;;  %v3834_v7 = vld [vmem:[#allocation120_spill] sm:$0xff] }
 0x287   :  { %1314 = vmatpush.msra.mxu3 %v3821_v59  ;;  %1354 = vmatpush.msrb.mxu0 %v3822_v14  ;;  %v3835_v59 = vld [vmem:[#allocation123_spill] sm:$0xff]  ;;  %v3836_v14 = vld [vmem:[#allocation124_spill] sm:$0xff] }
 0x289   :  { %1315 = vmatpush.msra.mxu3 %v3823_v49  ;;  %1355 = vmatpush.msrb.mxu0 %v3824_v17  ;;  %v3249_v49 = vpop.f32.mrf.mxu0  ;;  %v3837_v17 = vld [vmem:[#allocation127_spill] sm:$0xff] }
 0x28b   :  { %1316 = vmatpush.msra.mxu3 %v3825_v26  ;;  %1356 = vmatpush.msrb.mxu0 %v3826_v0  ;;  %v3838_v26 = vld [vmem:[#allocation128_spill] sm:$0xff]  ;;  %v3839_v0 = vld [vmem:[#allocation129_spill] sm:$0xff] }
 0x28d   :  { %1317 = vmatpush.msra.mxu3 %v3827_v54  ;;  %1357 = vmatpush.msrb.mxu0 %v3828_v44 }
 0x28f   :  { %1318 = vmatpush.msra.mxu3 %v3829_v58  ;;  %1358 = vmatpush.msrb.mxu0 %v3830_v63  ;;  %v894_v57 = vpop.f32.mrf.mxu2 }
 0x290   :  { %v3242_v56 = vadd.f32 %v894_v57, %v3123_v1  ;;  %v3255_v1 = vpop.f32.mrf.mxu1  ;;  %v1430_v57 = vld [vmem:[#allocation4 + $0x20] sm:$0xff] }
 0x291   :  { %1319 = vmatpush.msra.mxu3 %v3831_v47  ;;  %1359 = vmatpush.msrb.mxu0 %v3832_v60  ;;  %v3260_v54 = vpop.f32.mrf.mxu0  ;;  %v1550_v60 = vld [vmem:[#allocation4 + $0x3e0] sm:$0xff] }
 0x293   :  { %1320 = vmatpush.msra.mxu3 %v3833_v40  ;;  %1360 = vmatpush.msrb.mxu0 %v3834_v7  ;;  %v1484_v40 = vld [vmem:[#allocation4 + $0x1d0] sm:$0xff] }
 0x294   :  { %v1428_v7 = vld [vmem:[#allocation4 + $0x10] sm:$0xff] }
 0x295   :  { %1321 = vmatpush.msra.mxu3 %v3835_v59  ;;  %1361 = vmatpush.msrb.mxu0 %v3836_v14  ;;  %v1548_v59 = vld [vmem:[#allocation4 + $0x3d0] sm:$0xff]  ;;  %v1482_v14 = vld [vmem:[#allocation4 + $0x1c0] sm:$0xff] }
 0x297   :  { %1322 = vmatpush.msra.mxu3 %v2779_v55  ;;  %1362 = vmatpush.msrb.mxu0 %v3837_v17  ;;  %v1426_v17 = vld [vmem:[#allocation4] sm:$0xff] }
 0x298   :  { %v3262_v55 = vpop.f32.mrf.mxu1 }
 0x299   :  { %1323 = vmatpush.msra.mxu3 %v2789_v41  ;;  %1363 = vmatpush.msrb.mxu0 %v3838_v26  ;;  %v994_v44 = vpop.f32.mrf.mxu0  ;;  %v1520_v26 = vld [vmem:[#allocation4 + $0x2f0] sm:$0xff] }
 0x29b   :  { %1324 = vmatpush.msra.mxu3 %v2803_v51  ;;  %1364 = vmatpush.msrb.mxu0 %v3839_v0  ;;  %v1456_v51 = vld [vmem:[#allocation4 + $0xf0] sm:$0xff]  ;;  %v1546_v0 = vld [vmem:[#allocation4 + $0x3c0] sm:$0xff] }
 0x29c   :  { %1325 = vmatmul.f32.vlgmr.msra.gmra.mxu3 %v3150_v4  ;;  %1365 = vmatmul.f32.vlgmr.msrb.gmra.mxu0 %v3150_v4  ;;  %v1486_v4 = vld [vmem:[#allocation4 + $0x1e0] sm:$0xff] }
 0x29d   :  { %1682 = vmatpush.msrb.mxu3 %v1456_v51  ;;  %1722 = vmatpush.msra.mxu0 %v1520_v26  ;;  %v1544_v51 = vld [vmem:[#allocation4 + $0x3b0] sm:$0xff] }
 0x29e   :  { %v1524_v26 = vld [vmem:[#allocation4 + $0x310] sm:$0xff] }
 0x2a9   :  { %v1014_v58 = vpop.f32.mrf.mxu1 }
 0x2aa   :  { %v3264_v63 = vadd.f32 %v1014_v58, %v994_v44  ;;  %v1584_v44 = vld [vmem:[#allocation4 + $0x4f0] sm:$0xff] }
 0x2ab   :  { %v1480_v58 = vld [vmem:[#allocation4 + $0x1b0] sm:$0xff] }
 0x2af   :  { %v3266_v41 = vpop.f32.mrf.mxu2 }
 0x2b7   :  { %v3268_v47 = vpop.f32.mrf.mxu2 }
 0x2b8   :  { %1105 = vmatmul.f32.vlgmr.msra.gmra.mxu2 %v3268_v47  ;;  %1145 = vmatmul.f32.vlgmr.msra.gmra.mxu1 %v3268_v47 }
 0x2b9   :  { %1249 = vmatpush.msra.mxu2 %v2856_v2  ;;  %1289 = vmatpush.msra.mxu1 %v2858_v3  ;;  %v3840_v2 = vld [vmem:[#allocation23_spill] sm:$0xff]  ;;  %v1454_v3 = vld [vmem:[#allocation4 + $0xe0] sm:$0xff] }
 0x2ba   :  { %1683 = vmatpush.msrb.mxu3 %v1454_v3  ;;  %v1478_v3 = vld [vmem:[#allocation4 + $0x1a0] sm:$0xff] }
 0x2bb   :  { %1250 = vmatpush.msra.mxu2 %v2866_v5  ;;  %1290 = vmatpush.msra.mxu1 %v2868_v6  ;;  %v3841_v5 = vld [vmem:[#allocation13_spill] sm:$0xff]  ;;  %v3842_v6 = vld [vmem:[#allocation27_spill] sm:$0xff] }
 0x2bd   :  { %1251 = vmatpush.msra.mxu2 %v2872_v9  ;;  %1291 = vmatpush.msra.mxu1 %v2874_v10  ;;  %v1452_v9 = vld [vmem:[#allocation4 + $0xd0] sm:$0xff]  ;;  %v3843_v10 = vld [vmem:[#allocation16_spill] sm:$0xff] }
 0x2be   :  { %1684 = vmatpush.msrb.mxu3 %v1452_v9  ;;  %v1580_v9 = vld [vmem:[#allocation4 + $0x4d0] sm:$0xff] }
 0x2bf   :  { %1252 = vmatpush.msra.mxu2 %v2880_v12  ;;  %1292 = vmatpush.msra.mxu1 %v2882_v13  ;;  %v3844_v12 = vld [vmem:[#allocation31_spill] sm:$0xff]  ;;  %v1450_v13 = vld [vmem:[#allocation4 + $0xc0] sm:$0xff] }
 0x2c0   :  { %1185 = vmatmul.f32.vlgmr.msrb.gmra.mxu2 %v3268_v47  ;;  %1225 = vmatmul.f32.vlgmr.msrb.gmra.mxu1 %v3268_v47 }
 0x2c1   :  { %1253 = vmatpush.msra.mxu2 %v2888_v15  ;;  %1293 = vmatpush.msra.mxu1 %v2890_v16  ;;  %v3845_v15 = vld [vmem:[#allocation19_spill] sm:$0xff] }
 0x2c2   :  { %1685 = vmatpush.msrb.mxu3 %v1450_v13  ;;  %v3846_v16 = vld [vmem:[#allocation35_spill] sm:$0xff] }
 0x2c3   :  { %1254 = vmatpush.msra.mxu2 %v2898_v18  ;;  %1294 = vmatpush.msra.mxu1 %v2900_v19  ;;  %v1448_v18 = vld [vmem:[#allocation4 + $0xb0] sm:$0xff]  ;;  %v3847_v19 = vld [vmem:[#allocation22_spill] sm:$0xff] }
 0x2c4   :  { %1686 = vmatpush.msrb.mxu3 %v1448_v18  ;;  %v1540_v13 = vld [vmem:[#allocation4 + $0x390] sm:$0xff] }
 0x2c5   :  { %1255 = vmatpush.msra.mxu2 %v2904_v21  ;;  %1295 = vmatpush.msra.mxu1 %v2906_v22  ;;  %v3848_v21 = vld [vmem:[#allocation39_spill] sm:$0xff]  ;;  %v1446_v22 = vld [vmem:[#allocation4 + $0xa0] sm:$0xff] }
 0x2c6   :  { %1687 = vmatpush.msrb.mxu3 %v1446_v22  ;;  %v1512_v18 = vld [vmem:[#allocation4 + $0x2b0] sm:$0xff] }
 0x2c7   :  { %1256 = vmatpush.msra.mxu2 %v2912_v24  ;;  %1296 = vmatpush.msra.mxu1 %v2914_v27  ;;  %v3849_v24 = vld [vmem:[#allocation26_spill] sm:$0xff]  ;;  %v1472_v22 = vld [vmem:[#allocation4 + $0x170] sm:$0xff] }
 0x2c8   :  { %v3850_v27 = vld [vmem:[#allocation30_spill] sm:$0xff] }
 0x2c9   :  { %1257 = vmatpush.msra.mxu2 %v2920_v29  ;;  %1297 = vmatpush.msra.mxu1 %v2922_v30  ;;  %v1444_v29 = vld [vmem:[#allocation4 + $0x90] sm:$0xff]  ;;  %v3851_v30 = vld [vmem:[#allocation34_spill] sm:$0xff] }
 0x2ca   :  { %1688 = vmatpush.msrb.mxu3 %v1444_v29  ;;  %v1574_v29 = vld [vmem:[#allocation4 + $0x4a0] sm:$0xff] }
 0x2cb   :  { %1258 = vmatpush.msra.mxu2 %v2928_v31  ;;  %1298 = vmatpush.msra.mxu1 %v2930_v32  ;;  %v3852_v31 = vld [vmem:[#allocation38_spill] sm:$0xff]  ;;  %v1442_v32 = vld [vmem:[#allocation4 + $0x80] sm:$0xff] }
 0x2cc   :  { %1689 = vmatpush.msrb.mxu3 %v1442_v32  ;;  %v1466_v32 = vld [vmem:[#allocation4 + $0x140] sm:$0xff] }
 0x2cd   :  { %1259 = vmatpush.msra.mxu2 %v2936_v33  ;;  %1299 = vmatpush.msra.mxu1 %v2938_v34  ;;  %v3853_v33 = vld [vmem:[#allocation130_spill] sm:$0xff]  ;;  %v3854_v34 = vld [vmem:[#allocation131_spill] sm:$0xff] }
 0x2cf   :  { %1260 = vmatpush.msra.mxu2 %v2944_v35  ;;  %1300 = vmatpush.msra.mxu1 %v2946_v36  ;;  %v1440_v35 = vld [vmem:[#allocation4 + $0x70] sm:$0xff]  ;;  %v3855_v36 = vld [vmem:[#allocation132_spill] sm:$0xff] }
 0x2d0   :  { %1690 = vmatpush.msrb.mxu3 %v1440_v35  ;;  %v1460_v35 = vld [vmem:[#allocation4 + $0x110] sm:$0xff] }
 0x2d1   :  { %1261 = vmatpush.msra.mxu2 %v2952_v37  ;;  %1301 = vmatpush.msra.mxu1 %v2954_v38  ;;  %v3856_v37 = vld [vmem:[#allocation133_spill] sm:$0xff] }
 0x2d2   :  { %v1438_v38 = vld [vmem:[#allocation4 + $0x60] sm:$0xff] }
 0x2d3   :  { %1262 = vmatpush.msra.mxu2 %v2960_v39  ;;  %1302 = vmatpush.msra.mxu1 %v2962_v42  ;;  %v3857_v39 = vld [vmem:[#allocation134_spill] sm:$0xff]  ;;  %v3858_v42 = vld [vmem:[#allocation135_spill] sm:$0xff] }
 0x2d4   :  { %1691 = vmatpush.msrb.mxu3 %v1438_v38  ;;  %v1614_v38 = vld [vmem:[#allocation4 + $0x5e0] sm:$0xff] }
 0x2d5   :  { %1263 = vmatpush.msra.mxu2 %v2968_v43  ;;  %1303 = vmatpush.msra.mxu1 %v2970_v45  ;;  %v1436_v43 = vld [vmem:[#allocation4 + $0x50] sm:$0xff]  ;;  %v3859_v45 = vld [vmem:[#allocation136_spill] sm:$0xff] }
 0x2d6   :  { %1692 = vmatpush.msrb.mxu3 %v1436_v43  ;;  %v1572_v43 = vld [vmem:[#allocation4 + $0x490] sm:$0xff] }
 0x2d7   :  { %1264 = vmatpush.msra.mxu2 %v2976_v46  ;;  %1304 = vmatpush.msra.mxu1 %v2978_v48  ;;  %v3860_v46 = vld [vmem:[#allocation137_spill] sm:$0xff] }
 0x2d8   :  { %1265 = vmatmul.f32.vlgmr.msra.gmra.mxu2 %v3268_v47  ;;  %1305 = vmatmul.f32.vlgmr.msra.gmra.mxu1 %v3268_v47  ;;  %v1434_v48 = vld [vmem:[#allocation4 + $0x40] sm:$0xff] }
 0x2d9   :  { %1329 = vmatpush.msrb.mxu2 %v2984_v52  ;;  %1369 = vmatpush.msrb.mxu1 %v2986_v53  ;;  %v3861_v52 = vld [vmem:[#allocation138_spill] sm:$0xff]  ;;  %v3862_v53 = vld [vmem:[#allocation139_spill] sm:$0xff] }
 0x2da   :  { %1693 = vmatpush.msrb.mxu3 %v1434_v48  ;;  %v1532_v48 = vld [vmem:[#allocation4 + $0x350] sm:$0xff] }
 0x2db   :  { %1330 = vmatpush.msrb.mxu2 %v2994_v8  ;;  %1370 = vmatpush.msrb.mxu1 %v2996_v11  ;;  %v1432_v8 = vld [vmem:[#allocation4 + $0x30] sm:$0xff] }
 0x2dc   :  { %v1488_v11 = vld [vmem:[#allocation4 + $0x1f0] sm:$0xff]  ;;  %1694 = vmatpush.msrb.mxu3 %v1432_v8 }
 0x2dd   :  { %1331 = vmatpush.msrb.mxu2 %v3000_v20  ;;  %1371 = vmatpush.msrb.mxu1 %v3002_v23  ;;  %v3863_v20 = vld [vmem:[#allocation140_spill] sm:$0xff]  ;;  %v3864_v23 = vld [vmem:[#allocation141_spill] sm:$0xff]  ;;  %v1504_v8 = vld [vmem:[#allocation4 + $0x270] sm:$0xff] }
 0x2de   :  { %1695 = vmatpush.msrb.mxu3 %v1430_v57  ;;  %v1566_v57 = vld [vmem:[#allocation4 + $0x460] sm:$0xff] }
 0x2df   :  { %1332 = vmatpush.msrb.mxu2 %v3008_v50  ;;  %1372 = vmatpush.msrb.mxu1 %v3840_v2  ;;  %v1552_v50 = vld [vmem:[#allocation4 + $0x3f0] sm:$0xff]  ;;  %v1582_v2 = vld [vmem:[#allocation4 + $0x4e0] sm:$0xff] }
 0x2e0   :  { %1696 = vmatpush.msrb.mxu3 %v1428_v7  ;;  %v1526_v7 = vld [vmem:[#allocation4 + $0x320] sm:$0xff] }
 0x2e1   :  { %1333 = vmatpush.msrb.mxu2 %v3841_v5  ;;  %1373 = vmatpush.msrb.mxu1 %v3842_v6  ;;  %v1516_v5 = vld [vmem:[#allocation4 + $0x2d0] sm:$0xff]  ;;  %v1542_v6 = vld [vmem:[#allocation4 + $0x3a0] sm:$0xff] }
 0x2e2   :  { %1697 = vmatpush.msrb.mxu3 %v1426_v17  ;;  %v1498_v17 = vld [vmem:[#allocation4 + $0x240] sm:$0xff] }
 0x2e3   :  { %1334 = vmatpush.msrb.mxu2 %v3843_v10  ;;  %1374 = vmatpush.msrb.mxu1 %v3844_v12  ;;  %v1476_v10 = vld [vmem:[#allocation4 + $0x190] sm:$0xff]  ;;  %v1514_v12 = vld [vmem:[#allocation4 + $0x2c0] sm:$0xff] }
 0x2e4   :  { %1762 = vmatpush.msra.mxu3 %v1584_v44  ;;  %v1602_v44 = vld [vmem:[#allocation4 + $0x580] sm:$0xff] }
 0x2e5   :  { %1335 = vmatpush.msrb.mxu2 %v3845_v15  ;;  %1375 = vmatpush.msrb.mxu1 %v3846_v16  ;;  %v1578_v15 = vld [vmem:[#allocation4 + $0x4c0] sm:$0xff] }
 0x2e6   :  { %1763 = vmatpush.msra.mxu3 %v1582_v2  ;;  %v1474_v16 = vld [vmem:[#allocation4 + $0x180] sm:$0xff]  ;;  %v1680_v2 = vld [vmem:[#allocation4 + $0x7f0] sm:$0xff] }
 0x2e7   :  { %1336 = vmatpush.msrb.mxu2 %v3847_v19  ;;  %1376 = vmatpush.msrb.mxu1 %v3848_v21  ;;  %v1538_v19 = vld [vmem:[#allocation4 + $0x380] sm:$0xff]  ;;  %v1576_v21 = vld [vmem:[#allocation4 + $0x4b0] sm:$0xff] }
 0x2e8   :  { %1764 = vmatpush.msra.mxu3 %v1580_v9  ;;  %v1678_v9 = vld [vmem:[#allocation4 + $0x7e0] sm:$0xff] }
 0x2e9   :  { %1337 = vmatpush.msrb.mxu2 %v3849_v24  ;;  %1377 = vmatpush.msrb.mxu1 %v3850_v27  ;;  %v1510_v24 = vld [vmem:[#allocation4 + $0x2a0] sm:$0xff]  ;;  %v1536_v27 = vld [vmem:[#allocation4 + $0x370] sm:$0xff] }
 0x2ea   :  { %1765 = vmatpush.msra.mxu3 %v1578_v15  ;;  %v1676_v15 = vld [vmem:[#allocation4 + $0x7d0] sm:$0xff] }
 0x2eb   :  { %1338 = vmatpush.msrb.mxu2 %v3851_v30  ;;  %1378 = vmatpush.msrb.mxu1 %v3852_v31  ;;  %v1470_v30 = vld [vmem:[#allocation4 + $0x160] sm:$0xff]  ;;  %v1468_v31 = vld [vmem:[#allocation4 + $0x150] sm:$0xff] }
 0x2ec   :  { %1766 = vmatpush.msra.mxu3 %v1576_v21  ;;  %v1648_v21 = vld [vmem:[#allocation4 + $0x6f0] sm:$0xff] }
 0x2ed   :  { %1339 = vmatpush.msrb.mxu2 %v3853_v33  ;;  %1379 = vmatpush.msrb.mxu1 %v3854_v34  ;;  %v1464_v33 = vld [vmem:[#allocation4 + $0x130] sm:$0xff]  ;;  %v1462_v34 = vld [vmem:[#allocation4 + $0x120] sm:$0xff] }
 0x2ee   :  { %1767 = vmatpush.msra.mxu3 %v1574_v29  ;;  %v1672_v29 = vld [vmem:[#allocation4 + $0x7b0] sm:$0xff] }
 0x2ef   :  { %1340 = vmatpush.msrb.mxu2 %v3855_v36  ;;  %1380 = vmatpush.msrb.mxu1 %v3856_v37  ;;  %v1458_v36 = vld [vmem:[#allocation4 + $0x100] sm:$0xff]  ;;  %v1616_v37 = vld [vmem:[#allocation4 + $0x5f0] sm:$0xff] }
 0x2f0   :  { %1768 = vmatpush.msra.mxu3 %v1572_v43  ;;  %v1126_v43 = vpop.f32.mrf.mxu0 }
 0x2f1   :  { %1341 = vmatpush.msrb.mxu2 %v3857_v39  ;;  %1381 = vmatpush.msrb.mxu1 %v3858_v42  ;;  %v1508_v39 = vld [vmem:[#allocation4 + $0x290] sm:$0xff]  ;;  %v1534_v42 = vld [vmem:[#allocation4 + $0x360] sm:$0xff] }
 0x2f3   :  { %1342 = vmatpush.msrb.mxu2 %v3859_v45  ;;  %1382 = vmatpush.msrb.mxu1 %v3860_v46  ;;  %v1612_v45 = vld [vmem:[#allocation4 + $0x5d0] sm:$0xff]  ;;  %v1506_v46 = vld [vmem:[#allocation4 + $0x280] sm:$0xff] }
 0x2f5   :  { %1343 = vmatpush.msrb.mxu2 %v3861_v52  ;;  %1383 = vmatpush.msrb.mxu1 %v3862_v53  ;;  %v1570_v52 = vld [vmem:[#allocation4 + $0x480] sm:$0xff] }
 0x2f6   :  { %v1610_v53 = vld [vmem:[#allocation4 + $0x5c0] sm:$0xff]  ;;  %1769 = vmatpush.msra.mxu3 %v1570_v52 }
 0x2f7   :  { %1344 = vmatpush.msrb.mxu2 %v3863_v20  ;;  %1384 = vmatpush.msrb.mxu1 %v3864_v23  ;;  %v1568_v20 = vld [vmem:[#allocation4 + $0x470] sm:$0xff] }
 0x2f8   :  { %1345 = vmatmul.f32.vlgmr.msrb.gmra.mxu2 %v3268_v47  ;;  %1385 = vmatmul.f32.vlgmr.msrb.gmra.mxu1 %v3268_v47  ;;  %v1518_v47 = vld [vmem:[#allocation4 + $0x2e0] sm:$0xff]  ;;  %v1608_v23 = vld [vmem:[#allocation4 + $0x5b0] sm:$0xff] }
 0x2f9   :  { %1702 = vmatpush.msra.mxu2 %v1488_v11  ;;  %1742 = vmatpush.msra.mxu1 %v1552_v50  ;;  %v1530_v11 = vld [vmem:[#allocation4 + $0x340] sm:$0xff] }
 0x2fa   :  { %1723 = vmatpush.msra.mxu0 %v1518_v47  ;;  %1770 = vmatpush.msra.mxu3 %v1568_v20  ;;  %v1502_v50 = vld [vmem:[#allocation4 + $0x260] sm:$0xff] }
 0x2fb   :  { %1703 = vmatpush.msra.mxu2 %v1486_v4  ;;  %1743 = vmatpush.msra.mxu1 %v1550_v60  ;;  %v1528_v4 = vld [vmem:[#allocation4 + $0x330] sm:$0xff]  ;;  %v1606_v60 = vld [vmem:[#allocation4 + $0x5a0] sm:$0xff] }
 0x2fc   :  { %1724 = vmatpush.msra.mxu0 %v1516_v5  ;;  %1771 = vmatpush.msra.mxu3 %v1566_v57  ;;  %v1522_v47 = vld [vmem:[#allocation4 + $0x300] sm:$0xff]  ;;  %v855_v57 = vadd.f32 %v3255_v1, %v3249_v49 }
 0x2fd   :  { %1704 = vmatpush.msra.mxu2 %v1484_v40  ;;  %1744 = vmatpush.msra.mxu1 %v1548_v59  ;;  %v1500_v40 = vld [vmem:[#allocation4 + $0x250] sm:$0xff]  ;;  %v1494_v5 = vld [vmem:[#allocation4 + $0x220] sm:$0xff] }
 0x2fe   :  { %1725 = vmatpush.msra.mxu0 %v1514_v12  ;;  %v1564_v59 = vld [vmem:[#allocation4 + $0x450] sm:$0xff]  ;;  %v1662_v20 = vld [vmem:[#allocation4 + $0x760] sm:$0xff] }
 0x2ff   :  { %1705 = vmatpush.msra.mxu2 %v1482_v14  ;;  %1745 = vmatpush.msra.mxu1 %v1546_v0  ;;  %v1604_v14 = vld [vmem:[#allocation4 + $0x590] sm:$0xff]  ;;  %v1562_v0 = vld [vmem:[#allocation4 + $0x440] sm:$0xff] }
 0x300   :  { %1726 = vmatpush.msra.mxu0 %v1512_v18  ;;  %1772 = vmatpush.msra.mxu3 %v1564_v59  ;;  %v1492_v12 = vld [vmem:[#allocation4 + $0x210] sm:$0xff]  ;;  %v1490_v18 = vld [vmem:[#allocation4 + $0x200] sm:$0xff] }
 0x301   :  { %1706 = vmatpush.msra.mxu2 %v1480_v58  ;;  %1746 = vmatpush.msra.mxu1 %v1544_v51  ;;  %v1496_v58 = vld [vmem:[#allocation4 + $0x230] sm:$0xff] }
 0x302   :  { %1727 = vmatpush.msra.mxu0 %v1510_v24  ;;  %1773 = vmatpush.msra.mxu3 %v1562_v0  ;;  %v1560_v51 = vld [vmem:[#allocation4 + $0x430] sm:$0xff]  ;;  %v1594_v24 = vld [vmem:[#allocation4 + $0x540] sm:$0xff] }
 0x303   :  { %1707 = vmatpush.msra.mxu2 %v1478_v3  ;;  %1747 = vmatpush.msra.mxu1 %v1542_v6  ;;  %v1600_v3 = vld [vmem:[#allocation4 + $0x570] sm:$0xff]  ;;  %v1558_v6 = vld [vmem:[#allocation4 + $0x420] sm:$0xff] }
 0x304   :  { %1728 = vmatpush.msra.mxu0 %v1508_v39  ;;  %1774 = vmatpush.msra.mxu3 %v1560_v51  ;;  %v775_v39 = vadd.f32 %v3238_v25, %v3232_v61  ;;  %v1634_v25 = vld [vmem:[#allocation4 + $0x680] sm:$0xff]  ;;  %v1656_v0 = vld [vmem:[#allocation4 + $0x730] sm:$0xff] }
 0x305   :  { %1708 = vmatpush.msra.mxu2 %v1476_v10  ;;  %1748 = vmatpush.msra.mxu1 %v1540_v13  ;;  %v1598_v10 = vld [vmem:[#allocation4 + $0x560] sm:$0xff]  ;;  %v1556_v13 = vld [vmem:[#allocation4 + $0x410] sm:$0xff] }
 0x306   :  { %1729 = vmatpush.msra.mxu0 %v1506_v46  ;;  %1775 = vmatpush.msra.mxu3 %v1558_v6  ;;  %v1638_v46 = vld [vmem:[#allocation4 + $0x6a0] sm:$0xff]  ;;  %v1628_v51 = vld [vmem:[#allocation4 + $0x650] sm:$0xff] }
 0x307   :  { %1709 = vmatpush.msra.mxu2 %v1474_v16  ;;  %1749 = vmatpush.msra.mxu1 %v1538_v19  ;;  %v1596_v16 = vld [vmem:[#allocation4 + $0x550] sm:$0xff]  ;;  %v1554_v19 = vld [vmem:[#allocation4 + $0x400] sm:$0xff] }
 0x308   :  { %1730 = vmatpush.msra.mxu0 %v1504_v8  ;;  %1776 = vmatpush.msra.mxu3 %v1556_v13  ;;  %v1652_v6 = vld [vmem:[#allocation4 + $0x710] sm:$0xff] }
 0x309   :  { %1710 = vmatpush.msra.mxu2 %v1472_v22  ;;  %1750 = vmatpush.msra.mxu1 %v1536_v27  ;;  %v1674_v22 = vld [vmem:[#allocation4 + $0x7c0] sm:$0xff]  ;;  %v1624_v13 = vld [vmem:[#allocation4 + $0x630] sm:$0xff] }
 0x30a   :  { %1731 = vmatpush.msra.mxu0 %v1502_v50  ;;  %1777 = vmatpush.msra.mxu3 %v1554_v19  ;;  %v1646_v27 = vld [vmem:[#allocation4 + $0x6e0] sm:$0xff]  ;;  %v1487_v19 = vld [vmem:[#allocation4 + $0x1e8] sm:$0xff] }
 0x30b   :  { %1711 = vmatpush.msra.mxu2 %v1470_v30  ;;  %1751 = vmatpush.msra.mxu1 %v1534_v42  ;;  %v1592_v30 = vld [vmem:[#allocation4 + $0x530] sm:$0xff]  ;;  %v1666_v42 = vld [vmem:[#allocation4 + $0x780] sm:$0xff] }
 0x30c   :  { %1732 = vmatpush.msra.mxu0 %v1500_v40  ;;  %v1632_v40 = vld [vmem:[#allocation4 + $0x670] sm:$0xff] }
 0x30d   :  { %1712 = vmatpush.msra.mxu2 %v1468_v31  ;;  %1752 = vmatpush.msra.mxu1 %v1532_v48  ;;  %v1644_v31 = vld [vmem:[#allocation4 + $0x6d0] sm:$0xff] }
 0x30e   :  { %1733 = vmatpush.msra.mxu0 %v1498_v17  ;;  %v1664_v48 = vld [vmem:[#allocation4 + $0x770] sm:$0xff] }
 0x30f   :  { %1713 = vmatpush.msra.mxu2 %v1466_v32  ;;  %1753 = vmatpush.msra.mxu1 %v1530_v11  ;;  %v1670_v32 = vld [vmem:[#allocation4 + $0x7a0] sm:$0xff]  ;;  %v1636_v11 = vld [vmem:[#allocation4 + $0x690] sm:$0xff] }
 0x310   :  { %1734 = vmatpush.msra.mxu0 %v1496_v58 }
 0x311   :  { %1714 = vmatpush.msra.mxu2 %v1464_v33  ;;  %1754 = vmatpush.msra.mxu1 %v1528_v4  ;;  %v1590_v33 = vld [vmem:[#allocation4 + $0x520] sm:$0xff]  ;;  %v1086_v4 = vpop.f32.mrf.mxu3 }
 0x312   :  { %1735 = vmatpush.msra.mxu0 %v1494_v5 }
 0x313   :  { %1715 = vmatpush.msra.mxu2 %v1462_v34  ;;  %1755 = vmatpush.msra.mxu1 %v1526_v7  ;;  %v1642_v34 = vld [vmem:[#allocation4 + $0x6c0] sm:$0xff] }
 0x314   :  { %1736 = vmatpush.msra.mxu0 %v1492_v12  ;;  %v1658_v7 = vld [vmem:[#allocation4 + $0x740] sm:$0xff] }
 0x315   :  { %1716 = vmatpush.msra.mxu2 %v1460_v35  ;;  %1756 = vmatpush.msra.mxu1 %v1524_v26  ;;  %v1668_v35 = vld [vmem:[#allocation4 + $0x790] sm:$0xff]  ;;  %v1630_v26 = vld [vmem:[#allocation4 + $0x660] sm:$0xff] }
 0x316   :  { %1737 = vmatpush.msra.mxu0 %v1490_v18 }
 0x317   :  { %1717 = vmatpush.msra.mxu2 %v1458_v36  ;;  %1757 = vmatpush.msra.mxu1 %v1522_v47  ;;  %v3342_v36 = vpop.xlane.xlu1 %379 }
 0x318   :  { %1802 = vmatpush.msrb.mxu0 %v1648_v21  ;;  %v1392_v49 = vmul.f32 %v855_v57, %v3342_v36  ;;  %v1391_v21 = vmul.f32 %v3208_v28, %v3342_v36  ;;  %v1618_v28 = vld [vmem:[#allocation4 + $0x600] sm:$0xff]  ;;  %v1519_v57 = vld [vmem:[#allocation4 + $0x2e8] sm:$0xff] }
 0x319   :  { %1782 = vmatpush.msrb.mxu2 %v1616_v37  ;;  %1822 = vmatpush.msrb.mxu1 %v1680_v2  ;;  %v1588_v37 = vld [vmem:[#allocation4 + $0x510] sm:$0xff]  ;;  %v1654_v2 = vld [vmem:[#allocation4 + $0x720] sm:$0xff] }
 0x31a   :  { %1803 = vmatpush.msrb.mxu0 %v1646_v27  ;;  %v1485_v27 = vld [vmem:[#allocation4 + $0x1d8] sm:$0xff] }
 0x31b   :  { %1783 = vmatpush.msrb.mxu2 %v1614_v38  ;;  %1823 = vmatpush.msrb.mxu1 %v1678_v9  ;;  %v1640_v38 = vld [vmem:[#allocation4 + $0x6b0] sm:$0xff]  ;;  %v1489_v9 = vld [vmem:[#allocation4 + $0x1f8] sm:$0xff] }
 0x31c   :  { %1804 = vmatpush.msrb.mxu0 %v1644_v31  ;;  %v1457_v31 = vld [vmem:[#allocation4 + $0xf8] sm:$0xff] }
 0x31d   :  { %1784 = vmatpush.msrb.mxu2 %v1612_v45  ;;  %1824 = vmatpush.msrb.mxu1 %v1676_v15  ;;  %v1586_v45 = vld [vmem:[#allocation4 + $0x500] sm:$0xff] }
 0x31e   :  { %1805 = vmatpush.msrb.mxu0 %v1642_v34  ;;  %v1650_v15 = vld [vmem:[#allocation4 + $0x700] sm:$0xff] }
 0x31f   :  { %1785 = vmatpush.msrb.mxu2 %v1610_v53  ;;  %1825 = vmatpush.msrb.mxu1 %v1674_v22  ;;  %v1390_v53 = vmul.f32 %v775_v39, %v3342_v36  ;;  %v3347_v50 = vpop.permute.xlu1 %1407  ;;  %v1553_v39 = vld [vmem:[#allocation4 + $0x3f8] sm:$0xff] }
 0x320   :  { %1806 = vmatpush.msrb.mxu0 %v1640_v38 }
 0x321   :  { %1786 = vmatpush.msrb.mxu2 %v1608_v23  ;;  %1826 = vmatpush.msrb.mxu1 %v1672_v29  ;;  %v1660_v23 = vld [vmem:[#allocation4 + $0x750] sm:$0xff] }
 0x322   :  { %1807 = vmatpush.msrb.mxu0 %v1638_v46  ;;  %v1451_v46 = vld [vmem:[#allocation4 + $0xc8] sm:$0xff] }
 0x323   :  { %1787 = vmatpush.msrb.mxu2 %v1606_v60  ;;  %1827 = vmatpush.msrb.mxu1 %v1670_v32  ;;  %v1483_v32 = vld [vmem:[#allocation4 + $0x1c8] sm:$0xff] }
 0x324   :  { %1808 = vmatpush.msrb.mxu0 %v1636_v11 }
 0x325   :  { %1788 = vmatpush.msrb.mxu2 %v1604_v14  ;;  %1828 = vmatpush.msrb.mxu1 %v1668_v35  ;;  %v1389_v14 = vmul.f32 %v3196_v62, %v3342_v36  ;;  %v1626_v62 = vld [vmem:[#allocation4 + $0x640] sm:$0xff]  ;;  %v1455_v35 = vld [vmem:[#allocation4 + $0xe8] sm:$0xff] }
 0x326   :  { %1809 = vmatpush.msrb.mxu0 %v1634_v25  ;;  %v1447_v25 = vld [vmem:[#allocation4 + $0xa8] sm:$0xff] }
 0x327   :  { %1789 = vmatpush.msrb.mxu2 %v1602_v44  ;;  %1829 = vmatpush.msrb.mxu1 %v1666_v42  ;;  %v1206_v44 = vpop.f32.mrf.mxu0  ;;  %v1453_v42 = vld [vmem:[#allocation4 + $0xd8] sm:$0xff] }
 0x328   :  { %1810 = vmatpush.msrb.mxu0 %v1632_v40  ;;  %v1445_v40 = vld [vmem:[#allocation4 + $0x98] sm:$0xff] }
 0x329   :  { %1790 = vmatpush.msrb.mxu2 %v1600_v3  ;;  %1830 = vmatpush.msrb.mxu1 %v1664_v48  ;;  %v1477_v48 = vld [vmem:[#allocation4 + $0x198] sm:$0xff] }
 0x32a   :  { %1811 = vmatpush.msrb.mxu0 %v1630_v26 }
 0x32b   :  { %1791 = vmatpush.msrb.mxu2 %v1598_v10  ;;  %1831 = vmatpush.msrb.mxu1 %v1662_v20  ;;  %v1521_v20 = vld [vmem:[#allocation4 + $0x2f8] sm:$0xff] }
 0x32c   :  { %1812 = vmatpush.msrb.mxu0 %v1628_v51 }
 0x32d   :  { %1792 = vmatpush.msrb.mxu2 %v1596_v16  ;;  %1832 = vmatpush.msrb.mxu1 %v1660_v23  ;;  %v1166_v16 = vpop.f32.mrf.mxu3  ;;  %v1473_v23 = vld [vmem:[#allocation4 + $0x178] sm:$0xff] }
 0x32e   :  { %1813 = vmatpush.msrb.mxu0 %v1626_v62  ;;  %v1465_v62 = vld [vmem:[#allocation4 + $0x138] sm:$0xff] }
 0x32f   :  { %1793 = vmatpush.msrb.mxu2 %v1594_v24  ;;  %1833 = vmatpush.msrb.mxu1 %v1658_v7  ;;  %v1622_v24 = vld [vmem:[#allocation4 + $0x620] sm:$0xff]  ;;  %v1471_v7 = vld [vmem:[#allocation4 + $0x168] sm:$0xff] }
 0x330   :  { %1814 = vmatpush.msrb.mxu0 %v1624_v13 }
 0x331   :  { %1794 = vmatpush.msrb.mxu2 %v1592_v30  ;;  %1834 = vmatpush.msrb.mxu1 %v1656_v0  ;;  %v1620_v30 = vld [vmem:[#allocation4 + $0x610] sm:$0xff]  ;;  %v1443_v0 = vld [vmem:[#allocation4 + $0x88] sm:$0xff] }
 0x332   :  { %1815 = vmatpush.msrb.mxu0 %v1622_v24  ;;  %v1535_v24 = vld [vmem:[#allocation4 + $0x368] sm:$0xff] }
 0x333   :  { %1795 = vmatpush.msrb.mxu2 %v1590_v33  ;;  %1835 = vmatpush.msrb.mxu1 %v1654_v2  ;;  %v1513_v2 = vld [vmem:[#allocation4 + $0x2b8] sm:$0xff] }
 0x334   :  { %1816 = vmatpush.msrb.mxu0 %v1620_v30 }
 0x335   :  { %1796 = vmatpush.msrb.mxu2 %v1588_v37  ;;  %v1146_v52 = vpop.f32.mrf.mxu1  ;;  %1836 = vmatpush.msrb.mxu1 %v1652_v6  ;;  %v1481_v37 = vld [vmem:[#allocation4 + $0x1b8] sm:$0xff]  ;;  %v1246_v13 = vpop.f32.mrf.mxu3 }
 0x336   :  { %v1147_v8 = vadd.f32 %v1146_v52, %v1126_v43  ;;  %v1479_v43 = vld [vmem:[#allocation4 + $0x1a8] sm:$0xff]  ;;  %1817 = vmatpush.msrb.mxu0 %v1618_v28  ;;  %v1549_v52 = vld [vmem:[#allocation4 + $0x3d8] sm:$0xff] }
 0x337   :  { %1797 = vmatpush.msrb.mxu2 %v1586_v45  ;;  %1837 = vmatpush.msrb.mxu1 %v1650_v15  ;;  %v1551_v45 = vld [vmem:[#allocation4 + $0x3e8] sm:$0xff] }
 0x338   :  { %v1398_v61 = vadd.f32 %v1390_v53, %v1147_v8  ;;  %v1449_v53 = vld [vmem:[#allocation4 + $0xb8] sm:$0xff]  ;;  %v1475_v8 = vld [vmem:[#allocation4 + $0x188] sm:$0xff] }
 0x339   :  { %v1459_v28 = vld [vmem:[#allocation4 + $0x108] sm:$0xff] }
 0x33a   :  { %v1411_v60 = vadd.f32 %v3347_v50, %v1398_v61  ;;  %v1547_v61 = vld [vmem:[#allocation4 + $0x3c8] sm:$0xff] }
 0x33b   :  { %v1106_v59 = vpop.f32.mrf.mxu2 }
 0x33c   :  { %2035 = vtanh.f32 %v1411_v60  ;;  %v1107_v17 = vadd.f32 %v1106_v59, %v1086_v4  ;;  %v935_v4 = vadd.f32 %v3262_v55, %v3260_v54  ;;  %v1545_v60 = vld [vmem:[#allocation4 + $0x3b8] sm:$0xff] }
 0x33d   :  { %v1226_v58 = vpop.f32.mrf.mxu1  ;;  %v1517_v59 = vld [vmem:[#allocation4 + $0x2d8] sm:$0xff] }
 0x33e   :  { %v1397_v1 = vadd.f32 %v1389_v14, %v1107_v17  ;;  %v1227_v47 = vadd.f32 %v1226_v58, %v1206_v44  ;;  %v1543_v14 = vld [vmem:[#allocation4 + $0x3a8] sm:$0xff]  ;;  %v1286_v17 = vpop.f32.mrf.mxu0  ;;  %v1469_v44 = vld [vmem:[#allocation4 + $0x158] sm:$0xff]  ;;  %v1394_v54 = vmul.f32 %v935_v4, %v3342_v36 }
 0x33f   :  { %v1515_v58 = vld [vmem:[#allocation4 + $0x2c8] sm:$0xff] }
 0x340   :  { %v1410_v3 = vadd.f32 %v3347_v50, %v1397_v1  ;;  %v1400_v5 = vadd.f32 %v1392_v49, %v1227_v47  ;;  %v1541_v49 = vld [vmem:[#allocation4 + $0x398] sm:$0xff]  ;;  %v1467_v47 = vld [vmem:[#allocation4 + $0x148] sm:$0xff] }
 0x341   :  { %v1441_v1 = vld [vmem:[#allocation4 + $0x78] sm:$0xff] }
 0x342   :  { %v3356_v10 = vpop.eup %2035  ;;  %2037 = vtanh.f32 %v1410_v3  ;;  %v1413_v12 = vadd.f32 %v3347_v50, %v1400_v5  ;;  %v1539_v3 = vld [vmem:[#allocation4 + $0x388] sm:$0xff] }
 0x343   :  { %v1186_v18 = vpop.f32.mrf.mxu2  ;;  %1718 = vmatmul.f32.vlgmr.msra.gmra.mxu2 %v3356_v10  ;;  %v1439_v5 = vld [vmem:[#allocation4 + $0x68] sm:$0xff] }
 0x344   :  { %2039 = vtanh.f32 %v1413_v12  ;;  %v1187_v22 = vadd.f32 %v1186_v18, %v1166_v16  ;;  %1862 = vmatpush.msra.mxu2 %v1489_v9  ;;  %v1511_v9 = vld [vmem:[#allocation4 + $0x2a8] sm:$0xff]  ;;  %v1537_v12 = vld [vmem:[#allocation4 + $0x378] sm:$0xff] }
 0x345   :  { %v1437_v16 = vld [vmem:[#allocation4 + $0x58] sm:$0xff]  ;;  %v1463_v18 = vld [vmem:[#allocation4 + $0x128] sm:$0xff] }
 0x346   :  { %v1399_v29 = vadd.f32 %v1391_v21, %v1187_v22  ;;  %1863 = vmatpush.msra.mxu2 %v1487_v19  ;;  %v1393_v19 = vmul.f32 %v3242_v56, %v3342_v36  ;;  %v1509_v22 = vld [vmem:[#allocation4 + $0x298] sm:$0xff] }
 0x348   :  { %v3362_v33 = vpop.eup %2037  ;;  %v1412_v34 = vadd.f32 %v3347_v50, %v1399_v29  ;;  %1864 = vmatpush.msra.mxu2 %v1485_v27  ;;  %v1435_v27 = vld [vmem:[#allocation4 + $0x48] sm:$0xff]  ;;  %v1461_v29 = vld [vmem:[#allocation4 + $0x118] sm:$0xff] }
 0x349   :  { %1698 = vmatmul.f32.vlgmr.msrb.gmra.mxu3 %v3362_v33 }
 0x34a   :  { %v3366_v38 = vpop.eup %2039  ;;  %2041 = vtanh.f32 %v1412_v34  ;;  %1842 = vmatpush.msrb.mxu3 %v1457_v31  ;;  %1865 = vmatpush.msra.mxu2 %v1483_v32  ;;  %v1507_v31 = vld [vmem:[#allocation4 + $0x288] sm:$0xff]  ;;  %v1533_v32 = vld [vmem:[#allocation4 + $0x358] sm:$0xff] }
 0x34b   :  { %1758 = vmatmul.f32.vlgmr.msra.gmra.mxu1 %v3366_v38  ;;  %v1433_v34 = vld [vmem:[#allocation4 + $0x38] sm:$0xff] }
 0x34c   :  { %1843 = vmatpush.msrb.mxu3 %v1455_v35  ;;  %1866 = vmatpush.msra.mxu2 %v1481_v37  ;;  %v1505_v35 = vld [vmem:[#allocation4 + $0x278] sm:$0xff] }
 0x34d   :  { %1902 = vmatpush.msra.mxu1 %v1553_v39  ;;  %v1617_v37 = vld [vmem:[#allocation4 + $0x5f8] sm:$0xff]  ;;  %v1431_v39 = vld [vmem:[#allocation4 + $0x28] sm:$0xff] }
 0x34e   :  { %1844 = vmatpush.msrb.mxu3 %v1453_v42  ;;  %1867 = vmatpush.msra.mxu2 %v1479_v43  ;;  %v1531_v43 = vld [vmem:[#allocation4 + $0x348] sm:$0xff] }
 0x34f   :  { %1903 = vmatpush.msra.mxu1 %v1551_v45  ;;  %v1503_v45 = vld [vmem:[#allocation4 + $0x268] sm:$0xff] }
 0x350   :  { %v3369_v11 = vpop.eup %2041  ;;  %1845 = vmatpush.msrb.mxu3 %v1451_v46  ;;  %1868 = vmatpush.msra.mxu2 %v1477_v48  ;;  %v1615_v46 = vld [vmem:[#allocation4 + $0x5e8] sm:$0xff]  ;;  %v1429_v48 = vld [vmem:[#allocation4 + $0x18] sm:$0xff] }
 0x351   :  { %1738 = vmatmul.f32.vlgmr.msra.gmra.mxu0 %v3369_v11  ;;  %1904 = vmatpush.msra.mxu1 %v1549_v52  ;;  %v1529_v52 = vld [vmem:[#allocation4 + $0x338] sm:$0xff] }
 0x352   :  { %1846 = vmatpush.msrb.mxu3 %v1449_v53  ;;  %1869 = vmatpush.msra.mxu2 %v1475_v8  ;;  %v1501_v53 = vld [vmem:[#allocation4 + $0x258] sm:$0xff] }
 0x353   :  { %1882 = vmatpush.msra.mxu0 %v1521_v20  ;;  %1905 = vmatpush.msra.mxu1 %v1547_v61  ;;  %v1613_v8 = vld [vmem:[#allocation4 + $0x5d8] sm:$0xff]  ;;  %v1427_v20 = vld [vmem:[#allocation4 + $0x8] sm:$0xff] }
 0x354   :  { %1847 = vmatpush.msrb.mxu3 %v1447_v25  ;;  %1870 = vmatpush.msra.mxu2 %v1473_v23  ;;  %v1527_v61 = vld [vmem:[#allocation4 + $0x328] sm:$0xff]  ;;  %v1585_v25 = vld [vmem:[#allocation4 + $0x4f8] sm:$0xff] }
 0x355   :  { %v1306_v26 = vpop.f32.mrf.mxu1  ;;  %1883 = vmatpush.msra.mxu0 %v1519_v57  ;;  %1906 = vmatpush.msra.mxu1 %v1545_v60  ;;  %v1611_v23 = vld [vmem:[#allocation4 + $0x5c8] sm:$0xff] }
 0x356   :  { %v1307_v55 = vadd.f32 %v1306_v26, %v1286_v17  ;;  %1848 = vmatpush.msrb.mxu3 %v1445_v40  ;;  %1871 = vmatpush.msra.mxu2 %v1471_v7  ;;  %v1499_v57 = vld [vmem:[#allocation4 + $0x248] sm:$0xff]  ;;  %v1609_v40 = vld [vmem:[#allocation4 + $0x5b8] sm:$0xff] }
 0x357   :  { %1884 = vmatpush.msra.mxu0 %v1517_v59  ;;  %1907 = vmatpush.msra.mxu1 %v1543_v14  ;;  %v1583_v60 = vld [vmem:[#allocation4 + $0x4e8] sm:$0xff]  ;;  %v1525_v7 = vld [vmem:[#allocation4 + $0x318] sm:$0xff] }
 0x358   :  { %v1402_v51 = vadd.f32 %v1394_v54, %v1307_v55  ;;  %1849 = vmatpush.msrb.mxu3 %v1443_v0  ;;  %1872 = vmatpush.msra.mxu2 %v1469_v44  ;;  %v1497_v59 = vld [vmem:[#allocation4 + $0x238] sm:$0xff]  ;;  %v1607_v17 = vld [vmem:[#allocation4 + $0x5a8] sm:$0xff] }
 0x359   :  { %1885 = vmatpush.msra.mxu0 %v1515_v58  ;;  %1908 = vmatpush.msra.mxu1 %v1541_v49  ;;  %v1581_v14 = vld [vmem:[#allocation4 + $0x4d8] sm:$0xff]  ;;  %v1523_v26 = vld [vmem:[#allocation4 + $0x308] sm:$0xff] }
 0x35a   :  { %v1415_v6 = vadd.f32 %v3347_v50, %v1402_v51  ;;  %1850 = vmatpush.msrb.mxu3 %v1441_v1  ;;  %1873 = vmatpush.msra.mxu2 %v1467_v47  ;;  %v1495_v0 = vld [vmem:[#allocation4 + $0x228] sm:$0xff]  ;;  %v1605_v54 = vld [vmem:[#allocation4 + $0x598] sm:$0xff] }
 0x35b   :  { %v1266_v15 = vpop.f32.mrf.mxu2  ;;  %1886 = vmatpush.msra.mxu0 %v1513_v2  ;;  %1909 = vmatpush.msra.mxu1 %v1539_v3  ;;  %v1579_v44 = vld [vmem:[#allocation4 + $0x4c8] sm:$0xff]  ;;  %v1493_v55 = vld [vmem:[#allocation4 + $0x218] sm:$0xff]  ;;  %v1366_v3 = vpop.f32.mrf.mxu0 }
 0x35c   :  { %2043 = vtanh.f32 %v1415_v6  ;;  %v1267_v21 = vadd.f32 %v1266_v15, %v1246_v13  ;;  %1851 = vmatpush.msrb.mxu3 %v1439_v5  ;;  %1874 = vmatpush.msra.mxu2 %v1465_v62  ;;  %v1577_v58 = vld [vmem:[#allocation4 + $0x4b8] sm:$0xff]  ;;  %v1603_v49 = vld [vmem:[#allocation4 + $0x588] sm:$0xff] }
 0x35d   :  { %1887 = vmatpush.msra.mxu0 %v1511_v9  ;;  %1910 = vmatpush.msra.mxu1 %v1537_v12  ;;  %v1575_v1 = vld [vmem:[#allocation4 + $0x4a8] sm:$0xff]  ;;  %v1601_v47 = vld [vmem:[#allocation4 + $0x578] sm:$0xff]  ;;  %v1396_v9 = vmul.f32 %v3264_v63, %v3342_v36 }
 0x35e   :  { %v1401_v30 = vadd.f32 %v1393_v19, %v1267_v21  ;;  %1852 = vmatpush.msrb.mxu3 %v1437_v16  ;;  %1875 = vmatpush.msra.mxu2 %v1463_v18  ;;  %v1573_v51 = vld [vmem:[#allocation4 + $0x498] sm:$0xff]  ;;  %v1599_v2 = vld [vmem:[#allocation4 + $0x568] sm:$0xff] }
 0x35f   :  { %1888 = vmatpush.msra.mxu0 %v1509_v22  ;;  %1911 = vmatpush.msra.mxu1 %v1535_v24  ;;  %v1571_v62 = vld [vmem:[#allocation4 + $0x488] sm:$0xff]  ;;  %v1597_v6 = vld [vmem:[#allocation4 + $0x558] sm:$0xff]  ;;  %v1326_v24 = vpop.f32.mrf.mxu3 }
 0x360   :  { %v1414_v56 = vadd.f32 %v3347_v50, %v1401_v30  ;;  %1853 = vmatpush.msrb.mxu3 %v1435_v27  ;;  %1876 = vmatpush.msra.mxu2 %v1461_v29  ;;  %v1595_v13 = vld [vmem:[#allocation4 + $0x548] sm:$0xff]  ;;  %v1593_v21 = vld [vmem:[#allocation4 + $0x538] sm:$0xff] }
 0x361   :  { %1889 = vmatpush.msra.mxu0 %v1507_v31  ;;  %1912 = vmatpush.msra.mxu1 %v1533_v32  ;;  %v3865_v15 = vld [vmem:[#allocation10_spill] sm:$0xff]  ;;  %v1565_v63 = vld [vmem:[#allocation4 + $0x458] sm:$0xff] }
 0x362   :  { %v3379_v42 = vpop.eup %2043  ;;  %2045 = vtanh.f32 %v1414_v56  ;;  %1854 = vmatpush.msrb.mxu3 %v1433_v34  ;;  %1877 = vmatpush.msra.mxu2 %v1459_v28  ;;  %v975_v16 = vadd.f32 %v3266_v41, %v3865_v15  ;;  %v1567_v19 = vld [vmem:[#allocation4 + $0x468] sm:$0xff]  ;;  %v1589_v32 = vld [vmem:[#allocation4 + $0x518] sm:$0xff] }
 0x363   :  { %1798 = vmatmul.f32.vlgmr.msrb.gmra.mxu2 %v3379_v42  ;;  %1890 = vmatpush.msra.mxu0 %v1505_v35  ;;  %v1591_v29 = vld [vmem:[#allocation4 + $0x528] sm:$0xff]  ;;  %v1561_v28 = vld [vmem:[#allocation4 + $0x438] sm:$0xff] }
 0x364   :  { %1942 = vmatpush.msrb.mxu2 %v1617_v37  ;;  %1855 = vmatpush.msrb.mxu3 %v1431_v39  ;;  %v1395_v30 = vmul.f32 %v975_v16, %v3342_v36  ;;  %v1563_v41 = vld [vmem:[#allocation4 + $0x448] sm:$0xff]  ;;  %v1681_v37 = vld [vmem:[#allocation4 + $0x7f8] sm:$0xff] }
 0x365   :  { %1913 = vmatpush.msra.mxu1 %v1531_v43  ;;  %1891 = vmatpush.msra.mxu0 %v1503_v45  ;;  %v1587_v56 = vld [vmem:[#allocation4 + $0x508] sm:$0xff]  ;;  %v1557_v45 = vld [vmem:[#allocation4 + $0x418] sm:$0xff] }
 0x366   :  { %1943 = vmatpush.msrb.mxu2 %v1615_v46  ;;  %1856 = vmatpush.msrb.mxu3 %v1429_v48  ;;  %v1559_v39 = vld [vmem:[#allocation4 + $0x428] sm:$0xff]  ;;  %v1677_v46 = vld [vmem:[#allocation4 + $0x7d8] sm:$0xff] }
 0x367   :  { %1914 = vmatpush.msra.mxu1 %v1529_v52  ;;  %1892 = vmatpush.msra.mxu0 %v1501_v53  ;;  %v1679_v36 = vld [vmem:[#allocation4 + $0x7e8] sm:$0xff] }
 0x368   :  { %v3382_v4 = vpop.eup %2045  ;;  %1944 = vmatpush.msrb.mxu2 %v1613_v8  ;;  %1857 = vmatpush.msrb.mxu3 %v1427_v20  ;;  %v1555_v48 = vld [vmem:[#allocation4 + $0x408] sm:$0xff]  ;;  %v1645_v20 = vld [vmem:[#allocation4 + $0x6d8] sm:$0xff] }
 0x369   :  { %1778 = vmatmul.f32.vlgmr.msra.gmra.mxu3 %v3382_v4  ;;  %1915 = vmatpush.msra.mxu1 %v1527_v61  ;;  %v1675_v52 = vld [vmem:[#allocation4 + $0x7c8] sm:$0xff] }
 0x36a   :  { %1922 = vmatpush.msra.mxu3 %v1585_v25  ;;  %1945 = vmatpush.msrb.mxu2 %v1611_v23  ;;  %v1647_v8 = vld [vmem:[#allocation4 + $0x6e8] sm:$0xff]  ;;  %v1669_v23 = vld [vmem:[#allocation4 + $0x798] sm:$0xff] }
 0x36b   :  { %1878 = vmatmul.f32.vlgmr.msra.gmra.mxu2 %v3356_v10  ;;  %1893 = vmatpush.msra.mxu0 %v1499_v57  ;;  %v1491_v10 = vld [vmem:[#allocation4 + $0x208] sm:$0xff]  ;;  %v1641_v57 = vld [vmem:[#allocation4 + $0x6b8] sm:$0xff] }
 0x36c   :  { %1923 = vmatpush.msra.mxu3 %v1583_v60  ;;  %1946 = vmatpush.msrb.mxu2 %v1609_v40  ;;  %v1671_v61 = vld [vmem:[#allocation4 + $0x7a8] sm:$0xff]  ;;  %v1665_v40 = vld [vmem:[#allocation4 + $0x778] sm:$0xff] }
 0x36d   :  { %1916 = vmatpush.msra.mxu1 %v1525_v7  ;;  %1894 = vmatpush.msra.mxu0 %v1497_v59  ;;  %v1643_v25 = vld [vmem:[#allocation4 + $0x6c8] sm:$0xff]  ;;  %v1637_v7 = vld [vmem:[#allocation4 + $0x698] sm:$0xff] }
 0x36e   :  { %1924 = vmatpush.msra.mxu3 %v1581_v14  ;;  %1947 = vmatpush.msrb.mxu2 %v1607_v17  ;;  %v1667_v60 = vld [vmem:[#allocation4 + $0x788] sm:$0xff]  ;;  %v1661_v14 = vld [vmem:[#allocation4 + $0x758] sm:$0xff] }
 0x36f   :  { %1917 = vmatpush.msra.mxu1 %v1523_v26  ;;  %1895 = vmatpush.msra.mxu0 %v1495_v0  ;;  %v1635_v59 = vld [vmem:[#allocation4 + $0x688] sm:$0xff]  ;;  %v1633_v17 = vld [vmem:[#allocation4 + $0x678] sm:$0xff] }
 0x370   :  { %1925 = vmatpush.msra.mxu3 %v1579_v44  ;;  %1948 = vmatpush.msrb.mxu2 %v1605_v54  ;;  %v1659_v26 = vld [vmem:[#allocation4 + $0x748] sm:$0xff]  ;;  %v1657_v44 = vld [vmem:[#allocation4 + $0x738] sm:$0xff] }
 0x371   :  { %1858 = vmatmul.f32.vlgmr.msrb.gmra.mxu3 %v3362_v33  ;;  %1896 = vmatpush.msra.mxu0 %v1493_v55  ;;  %v1569_v33 = vld [vmem:[#allocation4 + $0x478] sm:$0xff]  ;;  %v1631_v0 = vld [vmem:[#allocation4 + $0x668] sm:$0xff] }
 0x372   :  { %1926 = vmatpush.msra.mxu3 %v1577_v58  ;;  %1949 = vmatpush.msrb.mxu2 %v1603_v49  ;;  %v1655_v54 = vld [vmem:[#allocation4 + $0x728] sm:$0xff]  ;;  %v1653_v58 = vld [vmem:[#allocation4 + $0x718] sm:$0xff] }
 0x373   :  { %1897 = vmatpush.msra.mxu0 %v1491_v10  ;;  %v1627_v55 = vld [vmem:[#allocation4 + $0x648] sm:$0xff]  ;;  %v1625_v49 = vld [vmem:[#allocation4 + $0x638] sm:$0xff] }
 0x374   :  { %1927 = vmatpush.msra.mxu3 %v1575_v1  ;;  %1950 = vmatpush.msrb.mxu2 %v1601_v47  ;;  %v1651_v10 = vld [vmem:[#allocation4 + $0x708] sm:$0xff]  ;;  %v1621_v47 = vld [vmem:[#allocation4 + $0x618] sm:$0xff] }
 0x375   :  { %v1386_v5 = vpop.f32.mrf.mxu1  ;;  %v1623_v1 = vld [vmem:[#allocation4 + $0x628] sm:$0xff] }
 0x376   :  { %v1387_v12 = vadd.f32 %v1386_v5, %v1366_v3  ;;  %1928 = vmatpush.msra.mxu3 %v1573_v51  ;;  %1951 = vmatpush.msrb.mxu2 %v1599_v2  ;;  %v1619_v51 = vld [vmem:[#allocation4 + $0x608] sm:$0xff] }
 0x378   :  { %v1404_v18 = vadd.f32 %v1396_v9, %v1387_v12  ;;  %1929 = vmatpush.msra.mxu3 %v1571_v62  ;;  %1952 = vmatpush.msrb.mxu2 %v1597_v6 }
 0x37a   :  { %v1417_v22 = vadd.f32 %v3347_v50, %v1404_v18  ;;  %1930 = vmatpush.msra.mxu3 %v1569_v33  ;;  %1953 = vmatpush.msrb.mxu2 %v1595_v13 }
 0x37b   :  { %v1346_v27 = vpop.f32.mrf.mxu2 }
 0x37c   :  { %2047 = vtanh.f32 %v1417_v22  ;;  %v1347_v31 = vadd.f32 %v1346_v27, %v1326_v24  ;;  %1931 = vmatpush.msra.mxu3 %v1567_v19  ;;  %1954 = vmatpush.msrb.mxu2 %v1593_v21 }
 0x37e   :  { %v1403_v34 = vadd.f32 %v1395_v30, %v1347_v31  ;;  %1932 = vmatpush.msra.mxu3 %v1565_v63  ;;  %1955 = vmatpush.msrb.mxu2 %v1591_v29 }
 0x380   :  { %v1416_v35 = vadd.f32 %v3347_v50, %v1403_v34  ;;  %1933 = vmatpush.msra.mxu3 %v1563_v41  ;;  %1956 = vmatpush.msrb.mxu2 %v1589_v32  ;;  %v1649_v50 = vld [vmem:[#allocation4 + $0x6f8] sm:$0xff] }
 0x382   :  { %v3394_v43 = vpop.eup %2047  ;;  %2049 = vtanh.f32 %v1416_v35  ;;  %1934 = vmatpush.msra.mxu3 %v1561_v28  ;;  %1957 = vmatpush.msrb.mxu2 %v1587_v56 }
 0x383   :  { %1838 = vmatmul.f32.vlgmr.msrb.gmra.mxu1 %v3394_v43  ;;  %1958 = vmatmul.f32.vlgmr.msrb.gmra.mxu2 %v3379_v42  ;;  %v1673_v42 = vld [vmem:[#allocation4 + $0x7b8] sm:$0xff] }
 0x384   :  { %1982 = vmatpush.msrb.mxu1 %v1681_v37  ;;  %1935 = vmatpush.msra.mxu3 %v1559_v39 }
 0x386   :  { %1983 = vmatpush.msrb.mxu1 %v1679_v36  ;;  %1936 = vmatpush.msra.mxu3 %v1557_v45 }
 0x388   :  { %v3398_v53 = vpop.eup %2049  ;;  %1984 = vmatpush.msrb.mxu1 %v1677_v46  ;;  %1937 = vmatpush.msra.mxu3 %v1555_v48 }
 0x389   :  { %1818 = vmatmul.f32.vlgmr.msrb.gmra.mxu0 %v3398_v53  ;;  %1938 = vmatmul.f32.vlgmr.msra.gmra.mxu3 %v3382_v4  ;;  %v1639_v4 = vld [vmem:[#allocation4 + $0x6a8] sm:$0xff] }
 0x38a   :  { %1962 = vmatpush.msrb.mxu0 %v1649_v50  ;;  %1985 = vmatpush.msrb.mxu1 %v1675_v52 }
 0x38b   :  { %1918 = vmatmul.f32.vlgmr.msra.gmra.mxu1 %v3366_v38  ;;  %v1663_v38 = vld [vmem:[#allocation4 + $0x768] sm:$0xff] }
 0x38c   :  { %1963 = vmatpush.msrb.mxu0 %v1647_v8  ;;  %1986 = vmatpush.msrb.mxu1 %v1673_v42 }
 0x38e   :  { %1964 = vmatpush.msrb.mxu0 %v1645_v20  ;;  %1987 = vmatpush.msrb.mxu1 %v1671_v61 }
 0x390   :  { %1965 = vmatpush.msrb.mxu0 %v1643_v25  ;;  %1988 = vmatpush.msrb.mxu1 %v1669_v23 }
 0x391   :  { %1898 = vmatmul.f32.vlgmr.msra.gmra.mxu0 %v3369_v11  ;;  %v1629_v11 = vld [vmem:[#allocation4 + $0x658] sm:$0xff] }
 0x392   :  { %1966 = vmatpush.msrb.mxu0 %v1641_v57  ;;  %1989 = vmatpush.msrb.mxu1 %v1667_v60 }
 0x394   :  { %1967 = vmatpush.msrb.mxu0 %v1639_v4  ;;  %1990 = vmatpush.msrb.mxu1 %v1665_v40 }
 0x396   :  { %1968 = vmatpush.msrb.mxu0 %v1637_v7  ;;  %1991 = vmatpush.msrb.mxu1 %v1663_v38 }
 0x398   :  { %1969 = vmatpush.msrb.mxu0 %v1635_v59  ;;  %1992 = vmatpush.msrb.mxu1 %v1661_v14 }
 0x39a   :  { %1970 = vmatpush.msrb.mxu0 %v1633_v17  ;;  %1993 = vmatpush.msrb.mxu1 %v1659_v26 }
 0x39c   :  { %1971 = vmatpush.msrb.mxu0 %v1631_v0  ;;  %1994 = vmatpush.msrb.mxu1 %v1657_v44 }
 0x39e   :  { %1972 = vmatpush.msrb.mxu0 %v1629_v11  ;;  %1995 = vmatpush.msrb.mxu1 %v1655_v54 }
 0x3a0   :  { %1973 = vmatpush.msrb.mxu0 %v1627_v55  ;;  %1996 = vmatpush.msrb.mxu1 %v1653_v58 }
 0x3a2   :  { %1974 = vmatpush.msrb.mxu0 %v1625_v49  ;;  %1997 = vmatpush.msrb.mxu1 %v1651_v10 }
 0x3a3   :  { %1998 = vmatmul.f32.vlgmr.msrb.gmra.mxu1 %v3394_v43 }
 0x3a4   :  { %1975 = vmatpush.msrb.mxu0 %v1623_v1 }
 0x3a6   :  { %1976 = vmatpush.msrb.mxu0 %v1621_v47 }
 0x3a8   :  { %1977 = vmatpush.msrb.mxu0 %v1619_v51 }
 0x3a9   :  { %1978 = vmatmul.f32.vlgmr.msrb.gmra.mxu0 %v3398_v53 }
 0x3c6   :  { %v1719_v3 = vpop.f32.mrf.mxu2 }
 0x3c8   :  { %v1759_v9 = vpop.f32.mrf.mxu1 }
 0x3cc   :  { %v1699_v2 = vpop.f32.mrf.mxu3 }
 0x3cd   :  { %v1720_v5 = vadd.f32 %v1719_v3, %v1699_v2 }
 0x3ce   :  { %v1739_v62 = vpop.f32.mrf.mxu0 }
 0x3cf   :  { %v1740_v6 = vadd.f32 %v1739_v62, %v1720_v5 }
 0x3d1   :  { %v1760_v33 = vadd.f32 %v1759_v9, %v1740_v6 }
 0x3e6   :  { %v1799_v15 = vpop.f32.mrf.mxu2 }
 0x3ec   :  { %v1779_v12 = vpop.f32.mrf.mxu3 }
 0x3ed   :  { %v1780_v13 = vadd.f32 %v1779_v12, %v1760_v33 }
 0x3ee   :  { %v1879_v27 = vpop.f32.mrf.mxu2 }
 0x3ef   :  { %v1800_v16 = vadd.f32 %v1799_v15, %v1780_v13 }
 0x3f4   :  { %v1859_v24 = vpop.f32.mrf.mxu3 }
 0x3f5   :  { %v1880_v29 = vadd.f32 %v1879_v27, %v1859_v24 }
 0x400   :  { %v1839_v21 = vpop.f32.mrf.mxu1 }
 0x406   :  { %v1819_v18 = vpop.f32.mrf.mxu0  ;;  %v1959_v28 = vpop.f32.mrf.mxu2 }
 0x407   :  { %v1820_v19 = vadd.f32 %v1819_v18, %v1800_v16 }
 0x408   :  { %v1919_v31 = vpop.f32.mrf.mxu1 }
 0x409   :  { %v1840_v22 = vadd.f32 %v1839_v21, %v1820_v19 }
 0x40b   :  { %2002 = vst [vmem:[%s3425_s13] sm:$0x3f] %v1840_v22 }
 0x40c   :  { %v1939_v32 = vpop.f32.mrf.mxu3 }
 0x40e   :  { %v1899_v63 = vpop.f32.mrf.mxu0 }
 0x40f   :  { %v1900_v30 = vadd.f32 %v1899_v63, %v1880_v29 }
 0x411   :  { %v1920_v41 = vadd.f32 %v1919_v31, %v1900_v30 }
 0x413   :  { %v1940_v34 = vadd.f32 %v1939_v32, %v1920_v41 }
 0x415   :  { %v1960_v56 = vadd.f32 %v1959_v28, %v1940_v34 }
 0x420   :  { %v1999_v39 = vpop.f32.mrf.mxu1 }
 0x426   :  { %v1979_v35 = vpop.f32.mrf.mxu0 }
 0x427   :  { %v1980_v37 = vadd.f32 %v1979_v35, %v1960_v56 }
 0x429   :  { %v2000_v43 = vadd.f32 %v1999_v39, %v1980_v37 }
 0x42b   :  { %2003 = vst [vmem:[%s3425_s13 + $0x8] sm:$0x3f] %v2000_v43 }
 0x42c   :  { %2008 = vsyncpa [#allocation3], 1 }
 0x42d   :  { %2009 = vsyncpa [#allocation5], 1 }

</bundles_post_ra>
